<compile_context>
chip_gen: v6e
topology: v6e:2x2x1
jax: 0.10.0
libtpu: 0.0.40
codegen_flags: <defaults>
</compile_context>

<pallas_src>
import jax
import jax.numpy as jnp
from jax import lax
from jax.experimental import pallas as pl
from jax.experimental.pallas import tpu as pltpu


_INV_SQRT2 = 0.7071067811865476


def _linear_gelu_kernel(x_ref, w_ref, b_ref, o_ref):
    # x_ref: (M, K) f32   w_ref: (K, TN) f32   b_ref: (1, TN) f32   o_ref: (M, TN) f32
    acc = jnp.dot(x_ref[...], w_ref[...], preferred_element_type=jnp.float32)
    acc = acc + b_ref[...]  # broadcast bias over rows
    # Exact (non-approximate) GELU: 0.5 * x * (1 + erf(x / sqrt(2)))
    o_ref[...] = 0.5 * acc * (1.0 + lax.erf(acc * jnp.float32(_INV_SQRT2)))


def linear_gelu(x, weight, bias, *, tn=384):
    """x: (..., K) f32, weight: (K, N) f32, bias: (N,) f32 -> (..., N) f32.

    Equivalent to PyTorch  GELU(approximate='none')(Linear(K, N)(x))  with
    weight stored as (K, N) (i.e. the transpose of torch's (N, K) layout).
    """
    orig_shape = x.shape
    K = orig_shape[-1]
    N = weight.shape[1]
    M = 1
    for d in orig_shape[:-1]:
        M *= d

    assert weight.shape == (K, N), weight.shape
    assert bias.shape == (N,), bias.shape
    assert N % tn == 0 and tn % 128 == 0, "output-feature tile must divide N and be lane-aligned"

    x2d = x.reshape(M, K)
    b2d = bias.reshape(1, N)

    cost = pl.CostEstimate(
        flops=2 * M * K * N,
        transcendentals=M * N,  # one erf per output element
        bytes_accessed=M * K * 4 + K * N * 4 + N * 4 + M * N * 4,
    )

    out = pl.pallas_call(
        _linear_gelu_kernel,
        out_shape=jax.ShapeDtypeStruct((M, N), jnp.float32),
        grid_spec=pl.GridSpec(
            grid=(N // tn,),
            in_specs=[
                pl.BlockSpec((M, K), lambda j: (0, 0)),   # full activation block (fetched once)
                pl.BlockSpec((K, tn), lambda j: (0, j)),  # weight tile over output features
                pl.BlockSpec((1, tn), lambda j: (0, j)),  # bias tile
            ],
            out_specs=pl.BlockSpec((M, tn), lambda j: (0, j)),
        ),
        compiler_params=pltpu.CompilerParams(
            dimension_semantics=("parallel",),  # grid steps are independent -> megacore shards them
        ),
        cost_estimate=cost,
    )(x2d, weight, b2d)

    return out.reshape(*orig_shape[:-1], N)


def _reference(x, weight, bias):
    y = jnp.einsum("...k,kn->...n", x, weight, precision=lax.Precision.HIGHEST) + bias
    return 0.5 * y * (1.0 + lax.erf(y * jnp.float32(_INV_SQRT2)))


if __name__ == "__main__":
    key = jax.random.PRNGKey(0)
    k_x, k_w, k_b = jax.random.split(key, 3)

    IN_FEATURES, OUT_FEATURES = 768, 3072
    # Input matching the module's forward: [1, 14, 14, 768] (channels-last)
    x = jax.random.normal(k_x, (1, 14, 14, IN_FEATURES), dtype=jnp.float32)

    # Deterministic parameter init mimicking PyTorch Linear default (uniform +-1/sqrt(fan_in)).
    # Stored as (K, N) so the kernel does x @ W directly (equivalent to PyTorch's x @ W.T).
    bound = 1.0 / jnp.sqrt(jnp.float32(IN_FEATURES))
    weight = jax.random.uniform(k_w, (IN_FEATURES, OUT_FEATURES), jnp.float32, -bound, bound)
    bias = jax.random.uniform(k_b, (OUT_FEATURES,), jnp.float32, -bound, bound)

    out = jax.block_until_ready(linear_gelu(x, weight, bias))
    assert out.shape == (1, 14, 14, OUT_FEATURES), out.shape
    assert out.dtype == jnp.float32, out.dtype

    # Check against f32 module semantics (tolerance covers MXU pass-precision differences).
    ref = jax.block_until_ready(_reference(x, weight, bias))
    max_err = float(jnp.max(jnp.abs(out - ref)))
    assert jnp.allclose(out, ref, atol=1e-2, rtol=1e-2), f"mismatch vs f32 reference, max_err={max_err}"

    print("KERNEL_OK")
</pallas_src>

<mosaic_0001>
module attributes {stable_mosaic.version = 11 : i64} {
  func.func @_linear_gelu_kernel(%arg0: i32, %arg1: memref<196x768xf32, #tpu.memory_space<vmem>>, %arg2: memref<768x384xf32, #tpu.memory_space<vmem>>, %arg3: memref<1x384xf32, #tpu.memory_space<vmem>>, %arg4: memref<196x384xf32, #tpu.memory_space<vmem>>) attributes {dimension_semantics = [#tpu.dimension_semantics<parallel>], iteration_bounds = array<i64: 8>, scalar_prefetch = 0 : i64, scratch_operands = 0 : i64, tpu.core_type = #tpu.core_type<tc>, window_params = [{pipeline_mode = #tpu.pipeline_mode<synchronous>, transform_indices = @transform_0, window_bounds = array<i64: 196, 768>}, {transform_indices = @transform_1, window_bounds = array<i64: 768, 384>}, {transform_indices = @transform_2, window_bounds = array<i64: 1, 384>}, {transform_indices = @transform_3, window_bounds = array<i64: 196, 384>}]} {
    %c0 = arith.constant 0 : index
    %c0_0 = arith.constant 0 : index
    %0 = vector.load %arg1[%c0, %c0_0] : memref<196x768xf32, #tpu.memory_space<vmem>>, vector<196x768xf32>
    %c0_1 = arith.constant 0 : index
    %c0_2 = arith.constant 0 : index
    %1 = vector.load %arg2[%c0_1, %c0_2] : memref<768x384xf32, #tpu.memory_space<vmem>>, vector<768x384xf32>
    %cst = arith.constant dense<0.000000e+00> : vector<196x384xf32>
    %2 = tpu.matmul %0, %1, %cst {dimension_numbers = #tpu.dot_dimension_numbers<[1], [0], [0], [1], [0, 0, 1, 1], [], []>} : vector<196x768xf32>, vector<768x384xf32>, vector<196x384xf32> -> vector<196x384xf32>
    %c0_3 = arith.constant 0 : index
    %c0_4 = arith.constant 0 : index
    %3 = vector.load %arg3[%c0_3, %c0_4] : memref<1x384xf32, #tpu.memory_space<vmem>>, vector<1x384xf32>
    %4 = vector.broadcast %3 : vector<1x384xf32> to vector<196x384xf32>
    %5 = arith.addf %2, %4 : vector<196x384xf32>
    %cst_5 = arith.constant 5.000000e-01 : f32
    %6 = vector.broadcast %cst_5 : f32 to vector<196x384xf32>
    %7 = arith.mulf %6, %5 : vector<196x384xf32>
    %cst_6 = arith.constant 0.707106769 : f32
    %8 = vector.broadcast %cst_6 : f32 to vector<196x384xf32>
    %9 = arith.mulf %5, %8 : vector<196x384xf32>
    %10 = math.erf %9 : vector<196x384xf32>
    %cst_7 = arith.constant 1.000000e+00 : f32
    %11 = vector.broadcast %cst_7 : f32 to vector<196x384xf32>
    %12 = arith.addf %11, %10 : vector<196x384xf32>
    %13 = arith.mulf %7, %12 : vector<196x384xf32>
    %c0_8 = arith.constant 0 : index
    %c0_9 = arith.constant 0 : index
    %14 = vector.load %arg4[%c0_8, %c0_9] : memref<196x384xf32, #tpu.memory_space<vmem>>, vector<196x384xf32>
    tpu.vector_store %arg4[%c0_8, %c0_9], %13 {strides = array<i32>} : memref<196x384xf32, #tpu.memory_space<vmem>>, vector<196x384xf32>,
    return
  }
  func.func @transform_0(%arg0: i32) -> (i32, i32) {
    %c0_i32 = arith.constant 0 : i32
    %c0_i32_0 = arith.constant 0 : i32
    %c0_i32_1 = arith.constant 0 : i32
    return %c0_i32, %c0_i32_0 : i32, i32
  }
  func.func @transform_1(%arg0: i32) -> (i32, i32) {
    %c0_i32 = arith.constant 0 : i32
    %c0_i32_0 = arith.constant 0 : i32
    return %c0_i32, %arg0 : i32, i32
  }
  func.func @transform_2(%arg0: i32) -> (i32, i32) {
    %c0_i32 = arith.constant 0 : i32
    %c0_i32_0 = arith.constant 0 : i32
    return %c0_i32, %arg0 : i32, i32
  }
  func.func @transform_3(%arg0: i32) -> (i32, i32) {
    %c0_i32 = arith.constant 0 : i32
    %c0_i32_0 = arith.constant 0 : i32
    return %c0_i32, %arg0 : i32, i32
  }
}

</mosaic_0001>

<bundles_post_ra>
// kernel: tpu_custom_call.1
= control target key start
LH: loop header
LB: loop body
LE: loop exit
PB: predicated region body
PF: predicated region fallthrough
CT: control target
= control target key end

     0   :  { %s4565_s0 = inlined_call_operand.hbm [shape: f32[196,768], index: 0, kind: input, shape index: {}]   ;;  %s4566_s1 = inlined_call_operand.hbm [shape: f32[768,3072], index: 1, kind: input, shape index: {}]   ;;  %s4567_s2 = inlined_call_operand.hbm [shape: f32[1,3072], index: 2, kind: input, shape index: {}]   ;;  %s4568_s3 = inlined_call_operand.hbm [shape: f32[196,3072], index: 3, kind: output, shape index: {}]  }
   0x1   :  { %4583 = sst [smem:[#allocation31_spill]] %s4566_s1 }
   0x2   :  { %8 = vsyncpa [#allocation3], 0 }
   0x3   :  { %9 = vsyncpa [#allocation6], 0 }
   0x4   :  { %11 = vsyncpa [#allocation6 + $0x1], 0 }
   0x5   :  { %12 = vsyncpa [#allocation4], 0 }
   0x6   :  { %14 = vsyncpa [#allocation4 + $0x1], 0  ;;  %s2957_s12 = smov 0   ;;  %s2959_s13 = smov 0  }
   0x7   :  { %s2961_s14 = smov 0   ;;  %s2963_s15 = smov 0  }
   0x8 LB: > { %s2978_s16 = sadd.s32 1, %s2922_s15   ;;  %s48_s17 = sadd.s32 1, %s2918_s14  ;;  %s2922_s15 = sphi %s2963_s15, %s4649_s15   ;;  %s2918_s14 = sphi %s2961_s14, %s4648_s14   ;;  %s2914_s13 = sphi %s2959_s13, %s4647_s13   ;;  %s2910_s12 = sphi %s2957_s12, %s4646_s12  }
   0x9   : > { %s45_s18 = ssub.s32 %s2922_s15, %s2978_s16  ;;  %p55_p0 = scmp.ne.s32.totalorder %s2918_s14, %s2914_s13 }
   0xa   : > { %p46_p1 = scmp.eq.s32.totalorder %s45_s18, 0  ;;  %p56_p2 = scmp.eq.s32.totalorder %s2922_s15, 0 }
   0xb   : > { %p2526_p3 = scmp.lt.s32.totalorder %s2922_s15, 8  ;;  %s150_s20 = sand.u32 1, %s2922_s15  }
   0xc   : > { %s2988_s19 = scalar_select %p46_p1, %s2918_s14, %s48_s17  }
   0xd   : > { %p57_p4 = por %p56_p2, %p55_p0  ;;  %s152_s21 = sand.u32 1, %s2918_s14  }
   0xe   : > { %4584 = sst [smem:[#allocation12_spill]] %s2988_s19  ;;  %s2495_s22 = smul.u32 2304, %s152_s21 }
   0xf   : > { %p2997_p5 = pnand %p2526_p3, %p57_p4  ;;  %s2492_s24 = smul.u32 384, %s2922_s15 }
  0x10   : > { %s4586_s1 = sld [smem:[#allocation31_spill]]  ;;  %s154_s28 = scalar_lea.vmem [#allocation5], %s2495_s22 }
  0x11   : > { %s161_s29 = sshll.u32 %s154_s28, 4  ;;  %s3009_s30 = scalar_lea.sflag [#allocation6], %s150_s20  ;;  %s3007_s29 = int_to_ptr.vmem [resolvable:$true] %s161_s29 }
  0x12   : > { %p4569_p7 = pneg %p2997_p5 }
  0x16   : > { %s3005_s27 = scalar_lea.hbm %s4586_s1, %s2492_s24  ;;  %s2777_s7 = scalar_lea.hbm %s4586_s1, 294912 }
  0x17   : > { %s2772_s4 = scalar_lea.hbm %s3005_s27, 36864  ;;  %p2778_p10 = scmp.lt.s32.totalorder %s3005_s27, %s4586_s1 }
  0x18   : > { %p2773_p6 = scmp.ne.s32.totalorder %s3005_s27, %s2772_s4  ;;  %p2779_p11 = scmp.lt.s32.totalorder %s2777_s7, %s2772_s4 }
  0x1a   : > { %p2775_p8 = pnand %p4569_p7, %p2773_p6  ;;  %p2780_p12 = por %p2779_p11, %p2778_p10 }
  0x1c   : > { %p2776_p9 = pneg %p2775_p8 }
  0x1e   : > { %p2781_p13 = pnand %p2780_p12, %p2776_p9 }
  0x20   : > { %2784 = shalt.err (!%p2781_p13)
}
  0x21   : > { %s2785_s10 = scalar_lea.vmem %s3007_s29, 36864  ;;  %s2924_s11 = smov [#allocation5]  }
  0x22   : > { %p2786_p1 = scmp.ne.s32.totalorder %s3007_s29, %s2785_s10  ;;  %s2790_s17 = sshll.u32 %s2924_s11, 4  ;;  %s2791_s17 = int_to_ptr.vmem [resolvable:$false] %s2790_s17 }
  0x23   : > { %s2792_s18 = scalar_lea.vmem %s2791_s17, 73728  ;;  %p2793_p4 = scmp.lt.s32.totalorder %s3007_s29, %s2791_s17 }
  0x24   : > { %p2788_p2 = pnand %p2786_p1, %p4569_p7  ;;  %p2794_p6 = scmp.lt.s32.totalorder %s2792_s18, %s2785_s10 }
  0x26   : > { %p2789_p3 = pneg %p2788_p2  ;;  %p2795_p8 = por %p2794_p6, %p2793_p4 }
  0x28   : > { %p2796_p10 = pnand %p2795_p8, %p2789_p3 }
  0x2a   : > { %2799 = shalt.err (!%p2796_p10)
}
  0x2b   : > { %s2925_s20 = smov 3072   ;;  %s2926_s22 = smov 384  }
  0x2c   : > { %s2927_s24 = smov 24   ;;  %s3037_s25 = sadd.s32 4294967295, %s2922_s15  }
  0x2d   : > { %2517 = dma.hbm_to_vmem [thread:$0]  (!%p2997_p5), %s3005_s27, 36864, %s3007_s29, %s3009_s30, %s2925_s20, %s2926_s22, %s2927_s24  }
  0x2e   : > { %s2481_s26 = sadd.s32 4294967294, %s2922_s15   ;;  %p61_p9 = scmp.ne.s32.totalorder %s2914_s13, %s2910_s12 }
  0x2f   : > { %p4570_p11 = scmp.eq.s32.totalorder %s3037_s25, 0  ;;  %p111_p12 = scmp.eq.s32.totalorder %s3037_s25, 7 }
  0x30   : > { %p117_p13 = scmp.eq.s32.totalorder %s2481_s26, 7  ;;  %p2482_p1 = scmp.ge.s32.totalorder %s2922_s15, 1 }
  0x31   : > { %p3047_p2 = por %p4570_p11, %p61_p9  ;;  %p3054_p3 = por %p111_p12, %p55_p0 }
  0x32   : > { %p3058_p4 = por %p117_p13, %p61_p9  ;;  %p124_p6 = scmp.lt.s32.totalorder %s2922_s15, 9 }
  0x33   : > { %s4587_s28 = scalar_select %p3047_p2, 1, 0 }
  0x34   : > { %s4588_s27 = scalar_select %p3054_p3, 1, 0 }
  0x35   : > { %s4589_s29 = scalar_select %p3058_p4, 1, 0 }
  0x36   : > { %p3063_p8 = pnand %p2482_p1, %p124_p6  ;;  %s2928_s5 = smov [#allocation2]  }
  0x37   : > { %s136_s6 = sshll.u32 %s2928_s5, 4  ;;  %s2496_s7 = smul.u32 3, %s152_s21  ;;  %s137_s6 = int_to_ptr.vmem [resolvable:$true] %s136_s6 }
  0x38   : > { %s4590_s4 = scalar_select %p3063_p8, 1, 0 }
  0x39   : > { %p2510_p10 = pneg %p3063_p8  ;;  %s2493_s9 = smul.u32 48, %s2922_s15 }
  0x3a   : > { %s2811_s18 = scalar_lea.vmem %s137_s6, 19200  ;;  %p2819_p6 = scmp.lt.s32.totalorder %s137_s6, %s137_s6 }
  0x3b   : > { %p3073_p0 = pnand %p2510_p10, %p4570_p11  ;;  %s3081_s17 = scalar_lea.hbm %s4567_s2, %s2493_s9 }
  0x3c   : > { %p2812_p12 = scmp.ne.s32.totalorder %s137_s6, %s2811_s18  ;;  %p2820_p7 = scmp.lt.s32.totalorder %s2811_s18, %s2811_s18 }
  0x3d   : > { %p2802_p9 = pneg %p3073_p0 }
  0x3e   : > { %p2821_p4 = por %p2820_p7, %p2819_p6 }
  0x3f   : > { %p2814_p13 = pnand %p2812_p12, %p2802_p9 }
  0x41   : > { %p2815_p1 = pneg %p2814_p13 }
  0x43   : > { %p2822_p10 = pnand %p2821_p4, %p2815_p1 }
  0x45   : > { %2825 = shalt.err (!%p2822_p10)
}
  0x46   : > { %s2929_s21 = smov 768   ;;  %s2930_s20 = smov 48  }
  0x47   : > { %2513 = dma.hbm_to_vmem [thread:$0]  (!%p3073_p0), %s4565_s0, 19200, %s137_s6, [#allocation3], %s2929_s21, %s2929_s21, %s2930_s20  }
  0x48   : > { %s175_s26 = scalar_lea.vmem [#allocation7], %s2496_s7  ;;  %s2826_s9 = scalar_lea.hbm %s3081_s17, 48 }
  0x49   : > { %s183_s5 = sshll.u32 %s175_s26, 4  ;;  %p2827_p9 = scmp.ne.s32.totalorder %s3081_s17, %s2826_s9  ;;  %s184_s5 = int_to_ptr.vmem [resolvable:$true] %s183_s5 }
  0x4a   : > { %p4592_p7 = pneg %p2997_p5  ;;  %s2831_s18 = scalar_lea.hbm %s4567_s2, 384 }
  0x4b   : > { %p2832_p13 = scmp.lt.s32.totalorder %s3081_s17, %s4567_s2  ;;  %p2833_p1 = scmp.lt.s32.totalorder %s2831_s18, %s2826_s9 }
  0x4c   : > { %p2829_p4 = pnand %p2827_p9, %p4592_p7 }
  0x4d   : > { %p2834_p6 = por %p2833_p1, %p2832_p13 }
  0x4e   : > { %p2830_p12 = pneg %p2829_p4 }
  0x50   : > { %p2835_p0 = pnand %p2834_p6, %p2830_p12 }
  0x52   : > { %2838 = shalt.err (!%p2835_p0)
}
  0x53   : > { %s2839_s6 = scalar_lea.vmem %s184_s5, 48  ;;  %p4593_p11 = pmov %p4592_p7 }
  0x54   : > { %p2840_p10 = scmp.ne.s32.totalorder %s184_s5, %s2839_s6  ;;  %s2931_s7 = smov [#allocation7]  }
  0x55   : > { %s2844_s8 = sshll.u32 %s2931_s7, 4  ;;  %s2845_s8 = int_to_ptr.vmem [resolvable:$false] %s2844_s8 }
  0x56   : > { %p2842_p3 = pnand %p2840_p10, %p4593_p11  ;;  %s2846_s21 = scalar_lea.vmem %s2845_s8, 96 }
  0x57   : > { %p2847_p7 = scmp.lt.s32.totalorder %s184_s5, %s2845_s8  ;;  %p2848_p4 = scmp.lt.s32.totalorder %s2846_s21, %s2839_s6 }
  0x58   : > { %p2843_p9 = pneg %p2842_p3 }
  0x59   : > { %p2849_p2 = por %p2848_p4, %p2847_p7 }
  0x5b   : > { %p2850_p8 = pnand %p2849_p2, %p2843_p9 }
  0x5d   : > { %2853 = shalt.err (!%p2850_p8)
}
  0x5e   : > { %2520 = dma.hbm_to_vmem [thread:$0]  (!%p2997_p5), %s3081_s17, 48, %s184_s5, %s3009_s30  }
  0x5f   : > { %p4594_p12 = scmp.ne.s32.totalorder %s4590_s4, 0 }
  0x61   : > { %192 = sbr.rel (%p4594_p12) target bundleno = 732 (0x2dc), region = 32 }
  0x66   : > { %p4595_p11 = scmp.eq.s32.totalorder %s3037_s25, 0 }
  0x68   : > { %2897 = dma.done.wait (%p4595_p11), [#allocation3], 19200   ;;  %p4596_p3 = pmov %p4595_p11 }
  0x69   : > { %s198_s1 = sand.u32 1, %s3037_s25   ;;  %s3117_s19 = sand.u32 1, %s2914_s13  }
  0x6a   : > { %2899 = vsyncadd (%p4596_p3), [#allocation3], 4294948096  ;;  %s2497_s23 = smul.u32 2304, %s3117_s19  ;;  %s199_s20 = scalar_lea.sflag [#allocation6], %s198_s1 }
  0x6b   : > { %p4597_p5 = scmp.ne.s32.totalorder %s4587_s28, 0 }
  0x6c   : > { %s3120_s22 = scalar_lea.vmem [#allocation5], %s2497_s23 }
  0x6d   : > { %2901 = dma.done.wait (%p4597_p5), %s199_s20, 36912  }
  0x6e   : > { %2903 = vsyncadd (%p4597_p5), %s199_s20, 4294930384  ;;  %v438_v0 = vld [vmem:[%s3120_s22 + $0x170] sm:$0xff]  ;;  %v437_v1 = vld [vmem:[%s3120_s22 + $0x168] sm:$0xff]  ;;  %s2498_s30 = smul.u32 3, %s3117_s19  ;;  %s2363_s11 = scalar_lea.sflag [#allocation4], %s3117_s19 }
  0x6f   : > { %v534_v2 = vld [vmem:[%s3120_s22 + $0x470] sm:$0xff]  ;;  %697 = vmatprep.subr.mxu0 %v438_v0  ;;  %v435_v3 = vld [vmem:[%s3120_s22 + $0x158] sm:$0xff]  ;;  %v533_v4 = vld [vmem:[%s3120_s22 + $0x468] sm:$0xff]  ;;  %s2499_s4 = smul.u32 600, %s3117_s19  ;;  %p4643_p8 = scmp.ne.s32.totalorder %s4588_s27, 0 }
  0x70   : > { %912 = vmatprep.subr.mxu1 %v534_v2  ;;  %v434_v5 = vld [vmem:[%s3120_s22 + $0x150] sm:$0xff]  ;;  %698 = vmatpush1.msra.mxu0 %v437_v1  ;;  %v531_v6 = vld [vmem:[%s3120_s22 + $0x458] sm:$0xff]  ;;  %v432_v7 = vld [vmem:[%s3120_s22 + $0x140] sm:$0xff]  ;;  %s3751_s28 = scalar_lea.vmem [#allocation7], %s2498_s30  ;;  %s2494_s24 = smul.u32 384, %s3037_s25 }
  0x71   : > { %913 = vmatpush1.msra.mxu1 %v533_v4  ;;  %v530_v8 = vld [vmem:[%s3120_s22 + $0x450] sm:$0xff]  ;;  %699 = vmatprep.subr.mxu0 %v435_v3  ;;  %v431_v9 = vld [vmem:[%s3120_s22 + $0x138] sm:$0xff]  ;;  %v528_v10 = vld [vmem:[%s3120_s22 + $0x440] sm:$0xff]  ;;  %s4124_s17 = scalar_lea.vmem [#allocation8], %s2499_s4  ;;  %s2933_s18 = smov [#allocation8]  }
  0x72   : > { %914 = vmatprep.subr.mxu1 %v531_v6  ;;  %700 = vmatpush1.msra.mxu0 %v434_v5  ;;  %v429_v11 = vld [vmem:[%s3120_s22 + $0x128] sm:$0xff]  ;;  %v527_v12 = vld [vmem:[%s3120_s22 + $0x438] sm:$0xff]  ;;  %v428_v14 = vld [vmem:[%s3120_s22 + $0x120] sm:$0xff]  ;;  %s2376_s26 = sshll.u32 %s4124_s17, 4  ;;  %s4520_s10 = scalar_lea.hbm %s4568_s3, %s2494_s24  ;;  %s4522_s26 = int_to_ptr.vmem [resolvable:$true] %s2376_s26 }
  0x73   : > { %915 = vmatpush1.msra.mxu1 %v530_v8  ;;  %v525_v13 = vld [vmem:[%s3120_s22 + $0x428] sm:$0xff]  ;;  %701 = vmatprep.subr.mxu0 %v432_v7  ;;  %v524_v15 = vld [vmem:[%s3120_s22 + $0x420] sm:$0xff]  ;;  %v426_v16 = vld [vmem:[%s3120_s22 + $0x110] sm:$0xff]  ;;  %s2854_s25 = scalar_lea.vmem %s4522_s26, 9600  ;;  %s2858_s6 = sshll.u32 %s2933_s18, 4  ;;  %s2859_s6 = int_to_ptr.vmem [resolvable:$false] %s2858_s6 }
  0x74   : > { %916 = vmatprep.subr.mxu1 %v528_v10  ;;  %702 = vmatpush1.msra.mxu0 %v431_v9  ;;  %v522_v17 = vld [vmem:[%s3120_s22 + $0x410] sm:$0xff]  ;;  %v425_v18 = vld [vmem:[%s3120_s22 + $0x108] sm:$0xff]  ;;  %v423_v20 = vld [vmem:[%s3120_s22 + $0xf8] sm:$0xff]  ;;  %p2855_p2 = scmp.ne.s32.totalorder %s4522_s26, %s2854_s25  ;;  %s2860_s7 = scalar_lea.vmem %s2859_s6, 19200 }
  0x75   : > { %917 = vmatpush1.msra.mxu1 %v527_v12  ;;  %703 = vmatprep.subr.mxu0 %v429_v11  ;;  %v521_v19 = vld [vmem:[%s3120_s22 + $0x408] sm:$0xff]  ;;  %v519_v21 = vld [vmem:[%s3120_s22 + $0x3f8] sm:$0xff]  ;;  %v422_v22 = vld [vmem:[%s3120_s22 + $0xf0] sm:$0xff]  ;;  %p2861_p6 = scmp.lt.s32.totalorder %s4522_s26, %s2859_s6  ;;  %p2862_p0 = scmp.lt.s32.totalorder %s2860_s7, %s2854_s25 }
  0x76   : > { %918 = vmatprep.subr.mxu1 %v525_v13  ;;  %704 = vmatpush1.msra.mxu0 %v428_v14  ;;  %v518_v23 = vld [vmem:[%s3120_s22 + $0x3f0] sm:$0xff]  ;;  %v420_v24 = vld [vmem:[%s3120_s22 + $0xe0] sm:$0xff]  ;;  %v419_v26 = vld [vmem:[%s3120_s22 + $0xd8] sm:$0xff]  ;;  %p2856_p13 = pnand %p2855_p2, %p4643_p8 }
  0x77   : > { %919 = vmatpush1.msra.mxu1 %v524_v15  ;;  %705 = vmatprep.subr.mxu0 %v426_v16  ;;  %v516_v25 = vld [vmem:[%s3120_s22 + $0x3e0] sm:$0xff]  ;;  %v515_v27 = vld [vmem:[%s3120_s22 + $0x3d8] sm:$0xff]  ;;  %v417_v28 = vld [vmem:[%s3120_s22 + $0xc8] sm:$0xff]  ;;  %p2863_p10 = por %p2862_p0, %p2861_p6 }
  0x78   : > { %920 = vmatprep.subr.mxu1 %v522_v17  ;;  %706 = vmatpush1.msra.mxu0 %v425_v18  ;;  %v513_v29 = vld [vmem:[%s3120_s22 + $0x3c8] sm:$0xff]  ;;  %v416_v30 = vld [vmem:[%s3120_s22 + $0xc0] sm:$0xff]  ;;  %v414_v32 = vld [vmem:[%s3120_s22 + $0xb0] sm:$0xff]  ;;  %p2857_p1 = pneg %p2856_p13 }
  0x79   : > { %921 = vmatpush1.msra.mxu1 %v521_v19  ;;  %707 = vmatprep.subr.mxu0 %v423_v20  ;;  %v512_v31 = vld [vmem:[%s3120_s22 + $0x3c0] sm:$0xff]  ;;  %v510_v33 = vld [vmem:[%s3120_s22 + $0x3b0] sm:$0xff]  ;;  %v413_v34 = vld [vmem:[%s3120_s22 + $0xa8] sm:$0xff] }
  0x7a   : > { %922 = vmatprep.subr.mxu1 %v519_v21  ;;  %708 = vmatpush1.msra.mxu0 %v422_v22  ;;  %v509_v35 = vld [vmem:[%s3120_s22 + $0x3a8] sm:$0xff]  ;;  %v411_v36 = vld [vmem:[%s3120_s22 + $0x98] sm:$0xff]  ;;  %v410_v38 = vld [vmem:[%s3120_s22 + $0x90] sm:$0xff]  ;;  %p2864_p9 = pnand %p2863_p10, %p2857_p1 }
  0x7b   : > { %923 = vmatpush1.msra.mxu1 %v518_v23  ;;  %709 = vmatprep.subr.mxu0 %v420_v24  ;;  %v507_v37 = vld [vmem:[%s3120_s22 + $0x398] sm:$0xff]  ;;  %v506_v39 = vld [vmem:[%s3120_s22 + $0x390] sm:$0xff]  ;;  %v408_v40 = vld [vmem:[%s3120_s22 + $0x80] sm:$0xff] }
  0x7c   : > { %924 = vmatprep.subr.mxu1 %v516_v25  ;;  %710 = vmatpush1.msra.mxu0 %v419_v26  ;;  %v504_v41 = vld [vmem:[%s3120_s22 + $0x380] sm:$0xff]  ;;  %v407_v42 = vld [vmem:[%s3120_s22 + $0x78] sm:$0xff]  ;;  %v405_v44 = vld [vmem:[%s3120_s22 + $0x68] sm:$0xff] }
  0x7d   : > { %925 = vmatpush1.msra.mxu1 %v515_v27  ;;  %711 = vmatprep.subr.mxu0 %v417_v28  ;;  %v503_v43 = vld [vmem:[%s3120_s22 + $0x378] sm:$0xff]  ;;  %v501_v45 = vld [vmem:[%s3120_s22 + $0x368] sm:$0xff]  ;;  %v404_v46 = vld [vmem:[%s3120_s22 + $0x60] sm:$0xff] }
  0x7e   : > { %926 = vmatprep.subr.mxu1 %v513_v29  ;;  %712 = vmatpush1.msra.mxu0 %v416_v30  ;;  %v500_v47 = vld [vmem:[%s3120_s22 + $0x360] sm:$0xff]  ;;  %v402_v48 = vld [vmem:[%s3120_s22 + $0x50] sm:$0xff]  ;;  %v401_v50 = vld [vmem:[%s3120_s22 + $0x48] sm:$0xff] }
  0x7f   : > { %927 = vmatpush1.msra.mxu1 %v512_v31  ;;  %713 = vmatprep.subr.mxu0 %v414_v32  ;;  %v498_v49 = vld [vmem:[%s3120_s22 + $0x350] sm:$0xff]  ;;  %v497_v51 = vld [vmem:[%s3120_s22 + $0x348] sm:$0xff]  ;;  %v399_v52 = vld [vmem:[%s3120_s22 + $0x38] sm:$0xff] }
  0x80   : > { %928 = vmatprep.subr.mxu1 %v510_v33  ;;  %714 = vmatpush1.msra.mxu0 %v413_v34  ;;  %v495_v53 = vld [vmem:[%s3120_s22 + $0x338] sm:$0xff]  ;;  %v398_v54 = vld [vmem:[%s3120_s22 + $0x30] sm:$0xff]  ;;  %v396_v56 = vld [vmem:[%s3120_s22 + $0x20] sm:$0xff] }
  0x81   : > { %929 = vmatpush1.msra.mxu1 %v509_v35  ;;  %715 = vmatprep.subr.mxu0 %v411_v36  ;;  %v494_v55 = vld [vmem:[%s3120_s22 + $0x330] sm:$0xff]  ;;  %v492_v57 = vld [vmem:[%s3120_s22 + $0x320] sm:$0xff]  ;;  %v395_v58 = vld [vmem:[%s3120_s22 + $0x18] sm:$0xff] }
  0x82   : > { %930 = vmatprep.subr.mxu1 %v507_v37  ;;  %716 = vmatpush1.msra.mxu0 %v410_v38  ;;  %v491_v59 = vld [vmem:[%s3120_s22 + $0x318] sm:$0xff]  ;;  %v393_v60 = vld [vmem:[%s3120_s22 + $0x8] sm:$0xff]  ;;  %v392_v62 = vld [vmem:[%s3120_s22] sm:$0xff] }
  0x83   : > { %931 = vmatpush1.msra.mxu1 %v506_v39  ;;  %717 = vmatprep.subr.mxu0 %v408_v40  ;;  %v489_v61 = vld [vmem:[%s3120_s22 + $0x308] sm:$0xff]  ;;  %v488_v63 = vld [vmem:[%s3120_s22 + $0x300] sm:$0xff]  ;;  %v486_v0 = vld [vmem:[%s3120_s22 + $0x2f0] sm:$0xff] }
  0x84   : > { %932 = vmatprep.subr.mxu1 %v504_v41  ;;  %718 = vmatpush1.msra.mxu0 %v407_v42  ;;  %v582_v1 = vld [vmem:[%s3120_s22 + $0x5f0] sm:$0xff]  ;;  %v485_v2 = vld [vmem:[%s3120_s22 + $0x2e8] sm:$0xff]  ;;  %v483_v4 = vld [vmem:[%s3120_s22 + $0x2d8] sm:$0xff] }
  0x85   : > { %933 = vmatpush1.msra.mxu1 %v503_v43  ;;  %719 = vmatprep.subr.mxu0 %v405_v44  ;;  %v581_v3 = vld [vmem:[%s3120_s22 + $0x5e8] sm:$0xff]  ;;  %v579_v5 = vld [vmem:[%s3120_s22 + $0x5d8] sm:$0xff]  ;;  %v482_v6 = vld [vmem:[%s3120_s22 + $0x2d0] sm:$0xff] }
  0x86   : > { %934 = vmatprep.subr.mxu1 %v501_v45  ;;  %720 = vmatpush1.msra.mxu0 %v404_v46  ;;  %v578_v7 = vld [vmem:[%s3120_s22 + $0x5d0] sm:$0xff]  ;;  %v480_v8 = vld [vmem:[%s3120_s22 + $0x2c0] sm:$0xff]  ;;  %v479_v10 = vld [vmem:[%s3120_s22 + $0x2b8] sm:$0xff] }
  0x87   : > { %935 = vmatpush1.msra.mxu1 %v500_v47  ;;  %721 = vmatprep.subr.mxu0 %v402_v48  ;;  %v576_v9 = vld [vmem:[%s3120_s22 + $0x5c0] sm:$0xff]  ;;  %v575_v11 = vld [vmem:[%s3120_s22 + $0x5b8] sm:$0xff]  ;;  %v477_v12 = vld [vmem:[%s3120_s22 + $0x2a8] sm:$0xff] }
  0x88   : > { %936 = vmatprep.subr.mxu1 %v498_v49  ;;  %722 = vmatpush1.msra.mxu0 %v401_v50  ;;  %v573_v13 = vld [vmem:[%s3120_s22 + $0x5a8] sm:$0xff]  ;;  %v476_v14 = vld [vmem:[%s3120_s22 + $0x2a0] sm:$0xff]  ;;  %v474_v16 = vld [vmem:[%s3120_s22 + $0x290] sm:$0xff] }
  0x89   : > { %937 = vmatpush1.msra.mxu1 %v497_v51  ;;  %723 = vmatprep.subr.mxu0 %v399_v52  ;;  %v572_v15 = vld [vmem:[%s3120_s22 + $0x5a0] sm:$0xff]  ;;  %v570_v17 = vld [vmem:[%s3120_s22 + $0x590] sm:$0xff]  ;;  %v473_v18 = vld [vmem:[%s3120_s22 + $0x288] sm:$0xff] }
  0x8a   : > { %938 = vmatprep.subr.mxu1 %v495_v53  ;;  %724 = vmatpush1.msra.mxu0 %v398_v54  ;;  %v569_v19 = vld [vmem:[%s3120_s22 + $0x588] sm:$0xff]  ;;  %v471_v20 = vld [vmem:[%s3120_s22 + $0x278] sm:$0xff]  ;;  %v470_v22 = vld [vmem:[%s3120_s22 + $0x270] sm:$0xff] }
  0x8b   : > { %939 = vmatpush1.msra.mxu1 %v494_v55  ;;  %725 = vmatprep.subr.mxu0 %v396_v56  ;;  %v567_v21 = vld [vmem:[%s3120_s22 + $0x578] sm:$0xff]  ;;  %v566_v23 = vld [vmem:[%s3120_s22 + $0x570] sm:$0xff]  ;;  %v468_v24 = vld [vmem:[%s3120_s22 + $0x260] sm:$0xff] }
  0x8c   : > { %940 = vmatprep.subr.mxu1 %v492_v57  ;;  %726 = vmatpush1.msra.mxu0 %v395_v58  ;;  %v564_v25 = vld [vmem:[%s3120_s22 + $0x560] sm:$0xff]  ;;  %v467_v26 = vld [vmem:[%s3120_s22 + $0x258] sm:$0xff]  ;;  %v465_v28 = vld [vmem:[%s3120_s22 + $0x248] sm:$0xff] }
  0x8d   : > { %941 = vmatpush1.msra.mxu1 %v491_v59  ;;  %727 = vmatprep.subr.mxu0 %v393_v60  ;;  %v563_v27 = vld [vmem:[%s3120_s22 + $0x558] sm:$0xff]  ;;  %v561_v29 = vld [vmem:[%s3120_s22 + $0x548] sm:$0xff]  ;;  %v464_v30 = vld [vmem:[%s3120_s22 + $0x240] sm:$0xff] }
  0x8e   : > { %942 = vmatprep.subr.mxu1 %v489_v61  ;;  %728 = vmatpush1.msra.mxu0 %v392_v62  ;;  %v560_v31 = vld [vmem:[%s3120_s22 + $0x540] sm:$0xff]  ;;  %v462_v32 = vld [vmem:[%s3120_s22 + $0x230] sm:$0xff]  ;;  %v461_v34 = vld [vmem:[%s3120_s22 + $0x228] sm:$0xff] }
  0x8f   : > { %943 = vmatpush1.msra.mxu1 %v488_v63  ;;  %729 = vmatprep.subr.mxu0 %v486_v0  ;;  %v558_v33 = vld [vmem:[%s3120_s22 + $0x530] sm:$0xff]  ;;  %v557_v35 = vld [vmem:[%s3120_s22 + $0x528] sm:$0xff]  ;;  %v459_v36 = vld [vmem:[%s3120_s22 + $0x218] sm:$0xff] }
  0x90   : > { %944 = vmatprep.subr.mxu1 %v582_v1  ;;  %730 = vmatpush2.msra.mxu0 %v485_v2  ;;  %v555_v37 = vld [vmem:[%s3120_s22 + $0x518] sm:$0xff]  ;;  %v458_v38 = vld [vmem:[%s3120_s22 + $0x210] sm:$0xff]  ;;  %v456_v40 = vld [vmem:[%s3120_s22 + $0x200] sm:$0xff] }
  0x91   : > { %945 = vmatpush2.msra.mxu1 %v581_v3  ;;  %731 = vmatprep.subr.mxu0 %v483_v4  ;;  %v554_v39 = vld [vmem:[%s3120_s22 + $0x510] sm:$0xff]  ;;  %v552_v41 = vld [vmem:[%s3120_s22 + $0x500] sm:$0xff]  ;;  %v455_v42 = vld [vmem:[%s3120_s22 + $0x1f8] sm:$0xff] }
  0x92   : > { %946 = vmatprep.subr.mxu1 %v579_v5  ;;  %732 = vmatpush2.msra.mxu0 %v482_v6  ;;  %v551_v43 = vld [vmem:[%s3120_s22 + $0x4f8] sm:$0xff]  ;;  %v453_v44 = vld [vmem:[%s3120_s22 + $0x1e8] sm:$0xff]  ;;  %v452_v46 = vld [vmem:[%s3120_s22 + $0x1e0] sm:$0xff] }
  0x93   : > { %947 = vmatpush2.msra.mxu1 %v578_v7  ;;  %733 = vmatprep.subr.mxu0 %v480_v8  ;;  %v549_v45 = vld [vmem:[%s3120_s22 + $0x4e8] sm:$0xff]  ;;  %v548_v47 = vld [vmem:[%s3120_s22 + $0x4e0] sm:$0xff]  ;;  %v450_v48 = vld [vmem:[%s3120_s22 + $0x1d0] sm:$0xff] }
  0x94   : > { %948 = vmatprep.subr.mxu1 %v576_v9  ;;  %734 = vmatpush2.msra.mxu0 %v479_v10  ;;  %v546_v49 = vld [vmem:[%s3120_s22 + $0x4d0] sm:$0xff]  ;;  %v449_v50 = vld [vmem:[%s3120_s22 + $0x1c8] sm:$0xff]  ;;  %v447_v52 = vld [vmem:[%s3120_s22 + $0x1b8] sm:$0xff] }
  0x95   : > { %949 = vmatpush2.msra.mxu1 %v575_v11  ;;  %735 = vmatprep.subr.mxu0 %v477_v12  ;;  %v545_v51 = vld [vmem:[%s3120_s22 + $0x4c8] sm:$0xff]  ;;  %v543_v53 = vld [vmem:[%s3120_s22 + $0x4b8] sm:$0xff]  ;;  %v446_v54 = vld [vmem:[%s3120_s22 + $0x1b0] sm:$0xff]  ;;  %v4579_v11 = vmov 0.0  }
  0x96   : > { %950 = vmatprep.subr.mxu1 %v573_v13  ;;  %736 = vmatpush2.msra.mxu0 %v476_v14  ;;  %v542_v55 = vld [vmem:[%s3120_s22 + $0x4b0] sm:$0xff]  ;;  %v444_v56 = vld [vmem:[%s3120_s22 + $0x1a0] sm:$0xff]  ;;  %v443_v58 = vld [vmem:[%s3120_s22 + $0x198] sm:$0xff] }
  0x97   : > { %951 = vmatpush2.msra.mxu1 %v572_v15  ;;  %737 = vmatprep.subr.mxu0 %v474_v16  ;;  %v540_v57 = vld [vmem:[%s3120_s22 + $0x4a0] sm:$0xff]  ;;  %v539_v59 = vld [vmem:[%s3120_s22 + $0x498] sm:$0xff]  ;;  %v441_v60 = vld [vmem:[%s3120_s22 + $0x188] sm:$0xff] }
  0x98   : > { %952 = vmatprep.subr.mxu1 %v570_v17  ;;  %738 = vmatpush2.msra.mxu0 %v473_v18  ;;  %v3251_v61 = vld [vmem:[#allocation2 + $0x8] sm:$0xff]  ;;  %v440_v62 = vld [vmem:[%s3120_s22 + $0x180] sm:$0xff]  ;;  %v537_v63 = vld [vmem:[%s3120_s22 + $0x488] sm:$0xff] }
  0x99   : > { %953 = vmatpush2.msra.mxu1 %v569_v19  ;;  %739 = vmatprep.subr.mxu0 %v471_v20  ;;  %v3255_v0 = vld [vmem:[#allocation2] sm:$0xff]  ;;  %v536_v1 = vld [vmem:[%s3120_s22 + $0x480] sm:$0xff]  ;;  %v245_v2 = vld [vmem:[#allocation2 + $0x18] sm:$0xff] }
  0x9a   : > { %954 = vmatprep.subr.mxu1 %v567_v21  ;;  %740 = vmatpush2.msra.mxu0 %v470_v22  ;;  %v630_v3 = vld [vmem:[%s3120_s22 + $0x770] sm:$0xff]  ;;  %v244_v4 = vld [vmem:[#allocation2 + $0x10] sm:$0xff]  ;;  %v629_v5 = vld [vmem:[%s3120_s22 + $0x768] sm:$0xff] }
  0x9b   : > { %955 = vmatpush2.msra.mxu1 %v566_v23  ;;  %741 = vmatprep.subr.mxu0 %v468_v24  ;;  %v3262_v6 = vld [vmem:[#allocation2 + $0x38] sm:$0xff]  ;;  %v439_v7 = vld [vmem:[%s3120_s22 + $0x178] sm:$0xff]  ;;  %v3265_v8 = vld [vmem:[#allocation2 + $0x30] sm:$0xff] }
  0x9c   : > { %956 = vmatprep.subr.mxu1 %v564_v25  ;;  %742 = vmatpush2.msra.mxu0 %v467_v26  ;;  %v251_v9 = vld [vmem:[#allocation2 + $0x48] sm:$0xff]  ;;  %v250_v12 = vld [vmem:[#allocation2 + $0x40] sm:$0xff]  ;;  %v624_v15 = vld [vmem:[%s3120_s22 + $0x740] sm:$0xff] }
  0x9d   : > { %957 = vmatpush2.msra.mxu1 %v563_v27  ;;  %743 = vmatprep.subr.mxu0 %v465_v28  ;;  %v627_v10 = vld [vmem:[%s3120_s22 + $0x758] sm:$0xff]  ;;  %v626_v13 = vld [vmem:[%s3120_s22 + $0x750] sm:$0xff]  ;;  %v436_v16 = vld [vmem:[%s3120_s22 + $0x160] sm:$0xff] }
  0x9e   : > { %958 = vmatprep.subr.mxu1 %v561_v29  ;;  %744 = vmatpush2.msra.mxu0 %v464_v30  ;;  %v3272_v14 = vld [vmem:[#allocation2 + $0x68] sm:$0xff]  ;;  %v3276_v17 = vld [vmem:[#allocation2 + $0x60] sm:$0xff]  ;;  %v257_v18 = vld [vmem:[#allocation2 + $0x78] sm:$0xff] }
  0x9f   : > { %959 = vmatpush2.msra.mxu1 %v560_v31  ;;  %745 = vmatprep.subr.mxu0 %v462_v32  ;;  %v623_v19 = vld [vmem:[%s3120_s22 + $0x738] sm:$0xff]  ;;  %v256_v20 = vld [vmem:[#allocation2 + $0x70] sm:$0xff]  ;;  %v621_v21 = vld [vmem:[%s3120_s22 + $0x728] sm:$0xff] }
  0xa0   : > { %960 = vmatprep.subr.mxu1 %v558_v33  ;;  %746 = vmatpush2.msra.mxu0 %v461_v34  ;;  %v433_v22 = vld [vmem:[%s3120_s22 + $0x148] sm:$0xff]  ;;  %v620_v24 = vld [vmem:[%s3120_s22 + $0x720] sm:$0xff]  ;;  %v263_v25 = vld [vmem:[#allocation2 + $0xa8] sm:$0xff] }
  0xa1   : > { %961 = vmatpush2.msra.mxu1 %v557_v35  ;;  %747 = vmatprep.subr.mxu0 %v459_v36  ;;  %v3284_v23 = vld [vmem:[#allocation2 + $0x98] sm:$0xff]  ;;  %v3288_v26 = vld [vmem:[#allocation2 + $0x90] sm:$0xff]  ;;  %v262_v27 = vld [vmem:[#allocation2 + $0xa0] sm:$0xff] }
  0xa2   : > { %962 = vmatprep.subr.mxu1 %v555_v37  ;;  %748 = vmatpush2.msra.mxu0 %v458_v38  ;;  %v618_v28 = vld [vmem:[%s3120_s22 + $0x710] sm:$0xff]  ;;  %v617_v30 = vld [vmem:[%s3120_s22 + $0x708] sm:$0xff]  ;;  %v3296_v31 = vld [vmem:[#allocation2 + $0xc8] sm:$0xff] }
  0xa3   : > { %963 = vmatpush2.msra.mxu1 %v554_v39  ;;  %749 = vmatprep.subr.mxu0 %v456_v40  ;;  %v430_v29 = vld [vmem:[%s3120_s22 + $0x130] sm:$0xff]  ;;  %v269_v33 = vld [vmem:[#allocation2 + $0xd8] sm:$0xff]  ;;  %v615_v34 = vld [vmem:[%s3120_s22 + $0x6f8] sm:$0xff] }
  0xa4   : > { %964 = vmatprep.subr.mxu1 %v552_v41  ;;  %750 = vmatpush2.msra.mxu0 %v455_v42  ;;  %v3298_v32 = vld [vmem:[#allocation2 + $0xc0] sm:$0xff]  ;;  %v427_v35 = vld [vmem:[%s3120_s22 + $0x118] sm:$0xff]  ;;  %v268_v36 = vld [vmem:[#allocation2 + $0xd0] sm:$0xff] }
  0xa5   : > { %965 = vmatpush2.msra.mxu1 %v551_v43  ;;  %751 = vmatprep.subr.mxu0 %v453_v44  ;;  %v614_v37 = vld [vmem:[%s3120_s22 + $0x6f0] sm:$0xff]  ;;  %v3306_v38 = vld [vmem:[#allocation2 + $0xf8] sm:$0xff]  ;;  %v612_v39 = vld [vmem:[%s3120_s22 + $0x6e0] sm:$0xff] }
  0xa6   : > { %966 = vmatprep.subr.mxu1 %v549_v45  ;;  %752 = vmatpush2.msra.mxu0 %v452_v46  ;;  %v424_v40 = vld [vmem:[%s3120_s22 + $0x100] sm:$0xff]  ;;  %v275_v42 = vld [vmem:[#allocation2 + $0x108] sm:$0xff]  ;;  %v274_v44 = vld [vmem:[#allocation2 + $0x100] sm:$0xff] }
  0xa7   : > { %967 = vmatpush2.msra.mxu1 %v548_v47  ;;  %753 = vmatprep.subr.mxu0 %v450_v48  ;;  %v3310_v41 = vld [vmem:[#allocation2 + $0xf0] sm:$0xff]  ;;  %v611_v43 = vld [vmem:[%s3120_s22 + $0x6d8] sm:$0xff]  ;;  %v609_v45 = vld [vmem:[%s3120_s22 + $0x6c8] sm:$0xff] }
  0xa8   : > { %968 = vmatprep.subr.mxu1 %v546_v49  ;;  %754 = vmatpush2.msra.mxu0 %v449_v50  ;;  %v421_v46 = vld [vmem:[%s3120_s22 + $0xe8] sm:$0xff]  ;;  %v3318_v47 = vld [vmem:[#allocation2 + $0x128] sm:$0xff]  ;;  %v608_v48 = vld [vmem:[%s3120_s22 + $0x6c0] sm:$0xff] }
  0xa9   : > { %969 = vmatpush2.msra.mxu1 %v545_v51  ;;  %755 = vmatprep.subr.mxu0 %v447_v52  ;;  %v281_v49 = vld [vmem:[#allocation2 + $0x138] sm:$0xff]  ;;  %v3322_v50 = vld [vmem:[#allocation2 + $0x120] sm:$0xff]  ;;  %v280_v51 = vld [vmem:[#allocation2 + $0x130] sm:$0xff] }
  0xaa   : > { %970 = vmatprep.subr.mxu1 %v543_v53  ;;  %756 = vmatpush2.msra.mxu0 %v446_v54  ;;  %v606_v52 = vld [vmem:[%s3120_s22 + $0x6b0] sm:$0xff]  ;;  %v605_v54 = vld [vmem:[%s3120_s22 + $0x6a8] sm:$0xff] }
  0xab   : > { %971 = vmatpush2.msra.mxu1 %v542_v55  ;;  %757 = vmatprep.subr.mxu0 %v444_v56  ;;  %v418_v53 = vld [vmem:[%s3120_s22 + $0xd0] sm:$0xff]  ;;  %v3330_v55 = vld [vmem:[#allocation2 + $0x158] sm:$0xff]  ;;  %v3332_v56 = vld [vmem:[#allocation2 + $0x150] sm:$0xff] }
  0xac   : > { %972 = vmatprep.subr.mxu1 %v540_v57  ;;  %758 = vmatpush2.msra.mxu0 %v443_v58  ;;  %v287_v57 = vld [vmem:[#allocation2 + $0x168] sm:$0xff] }
  0xad   : > { %973 = vmatpush2.msra.mxu1 %v539_v59  ;;  %759 = vmatprep.subr.mxu0 %v441_v60  ;;  %v415_v58 = vld [vmem:[%s3120_s22 + $0xb8] sm:$0xff]  ;;  %v286_v60 = vld [vmem:[#allocation2 + $0x160] sm:$0xff] }
  0xae   : > { %761 = vmatprep.mubr.f32.mxu0 %v3251_v61  ;;  %760 = vmatpush2.msra.mxu0 %v440_v62  ;;  %v603_v59 = vld [vmem:[%s3120_s22 + $0x698] sm:$0xff]  ;;  %v602_v62 = vld [vmem:[%s3120_s22 + $0x690] sm:$0xff] }
  0xaf   : > { %974 = vmatprep.subr.mxu1 %v537_v63  ;;  %762 = vmatmul.mubr.f32.vlgmr.msra.gmra.mxu0 %v3255_v0  ;;  %v3340_v63 = vld [vmem:[#allocation2 + $0x188] sm:$0xff] }
  0xb0   : > { %975 = vmatpush2.msra.mxu1 %v536_v1  ;;  %976 = vmatprep.mubr.f32.mxu1 %v245_v2  ;;  %v3342_v1 = vld [vmem:[#allocation2 + $0x180] sm:$0xff]  ;;  %v293_v2 = vld [vmem:[#allocation2 + $0x198] sm:$0xff] }
  0xb1   : > { %1127 = vmatprep.subr.mxu0 %v630_v3  ;;  %977 = vmatmul.mubr.f32.vlgmr.msra.gmra.mxu1 %v244_v4  ;;  %v600_v3 = vld [vmem:[%s3120_s22 + $0x680] sm:$0xff] }
  0xb2   : > { %1128 = vmatpush1.msra.mxu0 %v629_v5  ;;  %1342 = vmatprep.subr.mxu1 %v4579_v11  ;;  %v412_v4 = vld [vmem:[%s3120_s22 + $0xa0] sm:$0xff] }
  0xb3   : > { %767 = vmatprep.mubr.f32.mxu0 %v3262_v6  ;;  %1343 = vmatpush1.msra.mxu1 %v439_v7  ;;  %v292_v5 = vld [vmem:[#allocation2 + $0x190] sm:$0xff]  ;;  %v599_v7 = vld [vmem:[%s3120_s22 + $0x678] sm:$0xff] }
  0xb4   : > { %768 = vmatmul.mubr.f32.gmra.mxu0 %v3265_v8  ;;  %982 = vmatprep.mubr.f32.mxu1 %v251_v9  ;;  %v3350_v9 = vld [vmem:[#allocation2 + $0x1b8] sm:$0xff] }
  0xb5   : > { %1129 = vmatprep.subr.mxu0 %v627_v10  ;;  %983 = vmatmul.mubr.f32.gmra.mxu1 %v250_v12  ;;  %v597_v10 = vld [vmem:[%s3120_s22 + $0x668] sm:$0xff] }
  0xb6   : > { %1130 = vmatpush1.msra.mxu0 %v626_v13  ;;  %1344 = vmatprep.subr.mxu1 %v4579_v11  ;;  %v409_v12 = vld [vmem:[%s3120_s22 + $0x88] sm:$0xff]  ;;  %v3354_v13 = vld [vmem:[#allocation2 + $0x1b0] sm:$0xff] }
  0xb7   : > { %773 = vmatprep.mubr.f32.mxu0 %v3272_v14  ;;  %1131 = vmatprep.subr.mxu0 %v624_v15  ;;  %v299_v15 = vld [vmem:[#allocation2 + $0x1c8] sm:$0xff] }
  0xb8   : > { %1345 = vmatpush1.msra.mxu1 %v436_v16  ;;  %774 = vmatmul.mubr.f32.gmra.mxu0 %v3276_v17  ;;  %v596_v16 = vld [vmem:[%s3120_s22 + $0x660] sm:$0xff] }
  0xb9   : > { %988 = vmatprep.mubr.f32.mxu1 %v257_v18  ;;  %1132 = vmatpush1.msra.mxu0 %v623_v19  ;;  %v298_v18 = vld [vmem:[#allocation2 + $0x1c0] sm:$0xff] }
  0xba   : > { %989 = vmatmul.mubr.f32.gmra.mxu1 %v256_v20  ;;  %1346 = vmatprep.subr.mxu1 %v4579_v11  ;;  %v594_v19 = vld [vmem:[%s3120_s22 + $0x650] sm:$0xff] }
  0xbb   : > { %1133 = vmatprep.subr.mxu0 %v621_v21  ;;  %1347 = vmatpush1.msra.mxu1 %v433_v22  ;;  %v406_v20 = vld [vmem:[%s3120_s22 + $0x70] sm:$0xff]  ;;  %v3362_v21 = vld [vmem:[#allocation2 + $0x1e8] sm:$0xff]  ;;  %v593_v22 = vld [vmem:[%s3120_s22 + $0x648] sm:$0xff] }
  0xbc   : > { %779 = vmatprep.mubr.f32.mxu0 %v3284_v23  ;;  %1134 = vmatpush1.msra.mxu0 %v620_v24  ;;  %v305_v24 = vld [vmem:[#allocation2 + $0x1f8] sm:$0xff] }
  0xbd   : > { %994 = vmatprep.mubr.f32.mxu1 %v263_v25  ;;  %780 = vmatmul.mubr.f32.gmra.mxu0 %v3288_v26  ;;  %v3366_v25 = vld [vmem:[#allocation2 + $0x1e0] sm:$0xff] }
  0xbe   : > { %1348 = vmatprep.subr.mxu1 %v4579_v11  ;;  %995 = vmatmul.mubr.f32.gmra.mxu1 %v262_v27  ;;  %v304_v27 = vld [vmem:[#allocation2 + $0x1f0] sm:$0xff] }
  0xbf   : > { %1135 = vmatprep.subr.mxu0 %v618_v28  ;;  %1349 = vmatpush1.msra.mxu1 %v430_v29  ;;  %v591_v28 = vld [vmem:[%s3120_s22 + $0x638] sm:$0xff] }
  0xc0   : > { %1136 = vmatpush1.msra.mxu0 %v617_v30  ;;  %785 = vmatprep.mubr.f32.mxu0 %v3296_v31  ;;  %v403_v29 = vld [vmem:[%s3120_s22 + $0x58] sm:$0xff]  ;;  %v590_v30 = vld [vmem:[%s3120_s22 + $0x630] sm:$0xff] }
  0xc1   : > { %1350 = vmatprep.subr.mxu1 %v4579_v11  ;;  %786 = vmatmul.mubr.f32.gmra.mxu0 %v3298_v32 }
  0xc2   : > { %1000 = vmatprep.mubr.f32.mxu1 %v269_v33  ;;  %1137 = vmatprep.subr.mxu0 %v615_v34  ;;  %v3374_v33 = vld [vmem:[#allocation2 + $0x218] sm:$0xff]  ;;  %v3376_v34 = vld [vmem:[#allocation2 + $0x210] sm:$0xff] }
  0xc3   : > { %1351 = vmatpush1.msra.mxu1 %v427_v35  ;;  %1138 = vmatpush1.msra.mxu0 %v614_v37  ;;  %v311_v35 = vld [vmem:[#allocation2 + $0x228] sm:$0xff]  ;;  %v400_v37 = vld [vmem:[%s3120_s22 + $0x40] sm:$0xff] }
  0xc4   : > { %1001 = vmatmul.mubr.f32.gmra.mxu1 %v268_v36  ;;  %1352 = vmatprep.subr.mxu1 %v4579_v11  ;;  %v588_v36 = vld [vmem:[%s3120_s22 + $0x620] sm:$0xff] }
  0xc5   : > { %791 = vmatprep.mubr.f32.mxu0 %v3306_v38  ;;  %1139 = vmatprep.subr.mxu0 %v612_v39  ;;  %v310_v39 = vld [vmem:[#allocation2 + $0x220] sm:$0xff] }
  0xc6   : > { %1353 = vmatpush1.msra.mxu1 %v424_v40  ;;  %792 = vmatmul.mubr.f32.gmra.mxu0 %v3310_v41  ;;  %v587_v40 = vld [vmem:[%s3120_s22 + $0x618] sm:$0xff] }
  0xc7   : > { %1006 = vmatprep.mubr.f32.mxu1 %v275_v42  ;;  %1140 = vmatpush1.msra.mxu0 %v611_v43  ;;  %v3384_v42 = vld [vmem:[#allocation2 + $0x248] sm:$0xff]  ;;  %v585_v43 = vld [vmem:[%s3120_s22 + $0x608] sm:$0xff] }
  0xc8   : > { %1007 = vmatmul.mubr.f32.gmra.mxu1 %v274_v44  ;;  %1354 = vmatprep.subr.mxu1 %v4579_v11  ;;  %v397_v44 = vld [vmem:[%s3120_s22 + $0x28] sm:$0xff] }
  0xc9   : > { %1141 = vmatprep.subr.mxu0 %v609_v45  ;;  %1355 = vmatpush1.msra.mxu1 %v421_v46  ;;  %v3388_v45 = vld [vmem:[#allocation2 + $0x240] sm:$0xff]  ;;  %v317_v46 = vld [vmem:[#allocation2 + $0x258] sm:$0xff] }
  0xca   : > { %797 = vmatprep.mubr.f32.mxu0 %v3318_v47  ;;  %1142 = vmatpush1.msra.mxu0 %v608_v48  ;;  %v584_v48 = vld [vmem:[%s3120_s22 + $0x600] sm:$0xff] }
  0xcb   : > { %1012 = vmatprep.mubr.f32.mxu1 %v281_v49  ;;  %798 = vmatmul.mubr.f32.gmra.mxu0 %v3322_v50  ;;  %v316_v49 = vld [vmem:[#allocation2 + $0x250] sm:$0xff] }
  0xcc   : > { %1356 = vmatprep.subr.mxu1 %v4579_v11  ;;  %1013 = vmatmul.mubr.f32.gmra.mxu1 %v280_v51  ;;  %v678_v51 = vld [vmem:[%s3120_s22 + $0x8f0] sm:$0xff] }
  0xcd   : > { %1143 = vmatprep.subr.mxu0 %v606_v52  ;;  %1357 = vmatpush1.msra.mxu1 %v418_v53  ;;  %v394_v52 = vld [vmem:[%s3120_s22 + $0x10] sm:$0xff]  ;;  %v3396_v53 = vld [vmem:[#allocation2 + $0x278] sm:$0xff] }
  0xce   : > { %1144 = vmatpush1.msra.mxu0 %v605_v54  ;;  %803 = vmatprep.mubr.f32.mxu0 %v3330_v55  ;;  %v677_v54 = vld [vmem:[%s3120_s22 + $0x8e8] sm:$0xff] }
  0xcf   : > { %1358 = vmatprep.subr.mxu1 %v4579_v11  ;;  %804 = vmatmul.mubr.f32.gmra.mxu0 %v3332_v56 }
  0xd0   : > { %1018 = vmatprep.mubr.f32.mxu1 %v287_v57  ;;  %1359 = vmatpush1.msra.mxu1 %v415_v58  ;;  %v323_v57 = vld [vmem:[#allocation2 + $0x288] sm:$0xff]  ;;  %v3400_v58 = vld [vmem:[#allocation2 + $0x270] sm:$0xff] }
  0xd1   : > { %1145 = vmatprep.subr.mxu0 %v603_v59  ;;  %1019 = vmatmul.mubr.f32.gmra.mxu1 %v286_v60  ;;  %v322_v59 = vld [vmem:[#allocation2 + $0x280] sm:$0xff]  ;;  %v675_v60 = vld [vmem:[%s3120_s22 + $0x8d8] sm:$0xff] }
  0xd2   : > { %1146 = vmatpush1.msra.mxu0 %v602_v62  ;;  %809 = vmatprep.mubr.f32.mxu0 %v3340_v63  ;;  %v487_v62 = vld [vmem:[%s3120_s22 + $0x2f8] sm:$0xff] }
  0xd3   : > { %1360 = vmatprep.subr.mxu1 %v4579_v11  ;;  %810 = vmatmul.mubr.f32.gmra.mxu0 %v3342_v1 }
  0xd4   : > { %1024 = vmatprep.mubr.f32.mxu1 %v293_v2  ;;  %1147 = vmatprep.subr.mxu0 %v600_v3  ;;  %v3405_v2 = vld [vmem:[#allocation2 + $0x2a8] sm:$0xff]  ;;  %v674_v3 = vld [vmem:[%s3120_s22 + $0x8d0] sm:$0xff] }
  0xd5   : > { %1361 = vmatpush1.msra.mxu1 %v412_v4  ;;  %1148 = vmatpush1.msra.mxu0 %v599_v7  ;;  %v329_v4 = vld [vmem:[#allocation2 + $0x2b8] sm:$0xff]  ;;  %v328_v7 = vld [vmem:[#allocation2 + $0x2b0] sm:$0xff] }
  0xd6   : > { %1025 = vmatmul.mubr.f32.gmra.mxu1 %v292_v5  ;;  %1362 = vmatprep.subr.mxu1 %v4579_v11  ;;  %v3410_v5 = vld [vmem:[#allocation2 + $0x2a0] sm:$0xff] }
  0xd7   : > { %815 = vmatprep.mubr.f32.mxu0 %v3350_v9  ;;  %1149 = vmatprep.subr.mxu0 %v597_v10  ;;  %v672_v10 = vld [vmem:[%s3120_s22 + $0x8c0] sm:$0xff] }
  0xd8   : > { %1363 = vmatpush1.msra.mxu1 %v409_v12  ;;  %816 = vmatmul.mubr.f32.gmra.mxu0 %v3354_v13  ;;  %v484_v12 = vld [vmem:[%s3120_s22 + $0x2e0] sm:$0xff] }
  0xd9   : > { %1030 = vmatprep.mubr.f32.mxu1 %v299_v15  ;;  %1150 = vmatpush1.msra.mxu0 %v596_v16  ;;  %v671_v15 = vld [vmem:[%s3120_s22 + $0x8b8] sm:$0xff]  ;;  %v3418_v16 = vld [vmem:[#allocation2 + $0x2d8] sm:$0xff] }
  0xda   : > { %1031 = vmatmul.mubr.f32.gmra.mxu1 %v298_v18  ;;  %1364 = vmatprep.subr.mxu1 %v4579_v11  ;;  %v3420_v18 = vld [vmem:[#allocation2 + $0x2d0] sm:$0xff] }
  0xdb   : > { %1151 = vmatprep.subr.mxu0 %v594_v19  ;;  %1365 = vmatpush1.msra.mxu1 %v406_v20  ;;  %v335_v19 = vld [vmem:[#allocation2 + $0x2e8] sm:$0xff]  ;;  %v669_v20 = vld [vmem:[%s3120_s22 + $0x8a8] sm:$0xff] }
  0xdc   : > { %821 = vmatprep.mubr.f32.mxu0 %v3362_v21  ;;  %1152 = vmatpush1.msra.mxu0 %v593_v22  ;;  %v481_v22 = vld [vmem:[%s3120_s22 + $0x2c8] sm:$0xff] }
  0xdd   : > { %1036 = vmatprep.mubr.f32.mxu1 %v305_v24  ;;  %822 = vmatmul.mubr.f32.gmra.mxu0 %v3366_v25  ;;  %v334_v24 = vld [vmem:[#allocation2 + $0x2e0] sm:$0xff] }
  0xde   : > { %1366 = vmatprep.subr.mxu1 %v4579_v11  ;;  %1037 = vmatmul.mubr.f32.gmra.mxu1 %v304_v27  ;;  %v668_v27 = vld [vmem:[%s3120_s22 + $0x8a0] sm:$0xff] }
  0xdf   : > { %1153 = vmatprep.subr.mxu0 %v591_v28  ;;  %1367 = vmatpush1.msra.mxu1 %v403_v29  ;;  %v3428_v28 = vld [vmem:[#allocation2 + $0x308] sm:$0xff]  ;;  %v666_v29 = vld [vmem:[%s3120_s22 + $0x890] sm:$0xff] }
  0xe0   : > { %1154 = vmatpush1.msra.mxu0 %v590_v30  ;;  %827 = vmatprep.mubr.f32.mxu0 %v3374_v33  ;;  %v478_v30 = vld [vmem:[%s3120_s22 + $0x2b0] sm:$0xff] }
  0xe1   : > { %1368 = vmatprep.subr.mxu1 %v4579_v11  ;;  %828 = vmatmul.mubr.f32.gmra.mxu0 %v3376_v34 }
  0xe2   : > { %1042 = vmatprep.mubr.f32.mxu1 %v311_v35  ;;  %1155 = vmatprep.subr.mxu0 %v588_v36  ;;  %v3432_v35 = vld [vmem:[#allocation2 + $0x300] sm:$0xff]  ;;  %v341_v36 = vld [vmem:[#allocation2 + $0x318] sm:$0xff] }
  0xe3   : > { %1369 = vmatpush1.msra.mxu1 %v400_v37  ;;  %1156 = vmatpush1.msra.mxu0 %v587_v40  ;;  %v665_v37 = vld [vmem:[%s3120_s22 + $0x888] sm:$0xff]  ;;  %v663_v40 = vld [vmem:[%s3120_s22 + $0x878] sm:$0xff] }
  0xe4   : > { %1043 = vmatmul.mubr.f32.gmra.mxu1 %v310_v39  ;;  %1370 = vmatprep.subr.mxu1 %v4579_v11  ;;  %v340_v39 = vld [vmem:[#allocation2 + $0x310] sm:$0xff] }
  0xe5   : > { %833 = vmatprep.mubr.f32.mxu0 %v3384_v42  ;;  %1157 = vmatprep.subr.mxu0 %v585_v43  ;;  %v475_v43 = vld [vmem:[%s3120_s22 + $0x298] sm:$0xff] }
  0xe6   : > { %1371 = vmatpush1.msra.mxu1 %v397_v44  ;;  %834 = vmatmul.mubr.f32.gmra.mxu0 %v3388_v45  ;;  %v3440_v44 = vld [vmem:[#allocation2 + $0x338] sm:$0xff] }
  0xe7   : > { %1048 = vmatprep.mubr.f32.mxu1 %v317_v46  ;;  %1158 = vmatpush1.msra.mxu0 %v584_v48  ;;  %v662_v46 = vld [vmem:[%s3120_s22 + $0x870] sm:$0xff]  ;;  %v347_v48 = vld [vmem:[#allocation2 + $0x348] sm:$0xff] }
  0xe8   : > { %1049 = vmatmul.mubr.f32.gmra.mxu1 %v316_v49  ;;  %1372 = vmatprep.subr.mxu1 %v4579_v11  ;;  %v3444_v49 = vld [vmem:[#allocation2 + $0x330] sm:$0xff] }
  0xe9   : > { %1159 = vmatprep.subr.mxu0 %v678_v51  ;;  %1373 = vmatpush1.msra.mxu1 %v394_v52  ;;  %v346_v51 = vld [vmem:[#allocation2 + $0x340] sm:$0xff]  ;;  %v660_v52 = vld [vmem:[%s3120_s22 + $0x860] sm:$0xff] }
  0xea   : > { %839 = vmatprep.mubr.f32.mxu0 %v3396_v53  ;;  %1160 = vmatpush2.msra.mxu0 %v677_v54  ;;  %v472_v54 = vld [vmem:[%s3120_s22 + $0x280] sm:$0xff] }
  0xeb   : > { %1054 = vmatprep.mubr.f32.mxu1 %v323_v57  ;;  %840 = vmatmul.mubr.f32.gmra.mxu0 %v3400_v58  ;;  %v659_v57 = vld [vmem:[%s3120_s22 + $0x858] sm:$0xff] }
  0xec   : > { %1374 = vmatprep.subr.mxu1 %v4579_v11  ;;  %1055 = vmatmul.mubr.f32.gmra.mxu1 %v322_v59  ;;  %v3452_v59 = vld [vmem:[#allocation2 + $0x368] sm:$0xff] }
  0xed   : > { %1161 = vmatprep.subr.mxu0 %v675_v60  ;;  %1375 = vmatpush2.msra.mxu1 %v487_v62  ;;  %v3454_v60 = vld [vmem:[#allocation2 + $0x360] sm:$0xff]  ;;  %v353_v62 = vld [vmem:[#allocation2 + $0x378] sm:$0xff] }
  0xee   : > { %845 = vmatprep.mubr.f32.mxu0 %v3405_v2  ;;  %1162 = vmatpush2.msra.mxu0 %v674_v3  ;;  %v657_v3 = vld [vmem:[%s3120_s22 + $0x848] sm:$0xff] }
  0xef   : > { %1060 = vmatprep.mubr.f32.mxu1 %v329_v4  ;;  %846 = vmatmul.mubr.f32.gmra.mxu0 %v3410_v5  ;;  %v469_v4 = vld [vmem:[%s3120_s22 + $0x268] sm:$0xff] }
  0xf0   : > { %1376 = vmatprep.subr.mxu1 %v4579_v11  ;;  %1061 = vmatmul.mubr.f32.gmra.mxu1 %v328_v7  ;;  %v352_v7 = vld [vmem:[#allocation2 + $0x370] sm:$0xff] }
  0xf1   : > { %1163 = vmatprep.subr.mxu0 %v672_v10  ;;  %1377 = vmatpush2.msra.mxu1 %v484_v12  ;;  %v656_v10 = vld [vmem:[%s3120_s22 + $0x840] sm:$0xff]  ;;  %v3462_v12 = vld [vmem:[#allocation2 + $0x398] sm:$0xff] }
  0xf2   : > { %1164 = vmatpush2.msra.mxu0 %v671_v15  ;;  %851 = vmatprep.mubr.f32.mxu0 %v3418_v16  ;;  %v654_v15 = vld [vmem:[%s3120_s22 + $0x830] sm:$0xff] }
  0xf3   : > { %1378 = vmatprep.subr.mxu1 %v4579_v11  ;;  %852 = vmatmul.mubr.f32.gmra.mxu0 %v3420_v18 }
  0xf4   : > { %1066 = vmatprep.mubr.f32.mxu1 %v335_v19  ;;  %1165 = vmatprep.subr.mxu0 %v669_v20  ;;  %v466_v19 = vld [vmem:[%s3120_s22 + $0x250] sm:$0xff]  ;;  %v3466_v20 = vld [vmem:[#allocation2 + $0x390] sm:$0xff] }
  0xf5   : > { %1379 = vmatpush2.msra.mxu1 %v481_v22  ;;  %1166 = vmatpush2.msra.mxu0 %v668_v27  ;;  %v359_v22 = vld [vmem:[#allocation2 + $0x3a8] sm:$0xff]  ;;  %v358_v27 = vld [vmem:[#allocation2 + $0x3a0] sm:$0xff] }
  0xf6   : > { %1067 = vmatmul.mubr.f32.gmra.mxu1 %v334_v24  ;;  %1380 = vmatprep.subr.mxu1 %v4579_v11  ;;  %v653_v24 = vld [vmem:[%s3120_s22 + $0x828] sm:$0xff] }
  0xf7   : > { %857 = vmatprep.mubr.f32.mxu0 %v3428_v28  ;;  %1167 = vmatprep.subr.mxu0 %v666_v29  ;;  %v3471_v29 = vld [vmem:[#allocation2 + $0x3c8] sm:$0xff] }
  0xf8   : > { %1381 = vmatpush2.msra.mxu1 %v478_v30  ;;  %858 = vmatmul.mubr.f32.gmra.mxu0 %v3432_v35  ;;  %v463_v30 = vld [vmem:[%s3120_s22 + $0x238] sm:$0xff] }
  0xf9   : > { %1072 = vmatprep.mubr.f32.mxu1 %v341_v36  ;;  %1168 = vmatpush2.msra.mxu0 %v665_v37  ;;  %v651_v36 = vld [vmem:[%s3120_s22 + $0x818] sm:$0xff]  ;;  %v3476_v37 = vld [vmem:[#allocation2 + $0x3c0] sm:$0xff] }
  0xfa   : > { %1073 = vmatmul.mubr.f32.gmra.mxu1 %v340_v39  ;;  %1382 = vmatprep.subr.mxu1 %v4579_v11  ;;  %v365_v39 = vld [vmem:[#allocation2 + $0x3d8] sm:$0xff] }
  0xfb   : > { %1169 = vmatprep.subr.mxu0 %v663_v40  ;;  %1383 = vmatpush2.msra.mxu1 %v475_v43  ;;  %v650_v40 = vld [vmem:[%s3120_s22 + $0x810] sm:$0xff]  ;;  %v364_v43 = vld [vmem:[#allocation2 + $0x3d0] sm:$0xff] }
  0xfc   : > { %863 = vmatprep.mubr.f32.mxu0 %v3440_v44  ;;  %1170 = vmatpush2.msra.mxu0 %v662_v46  ;;  %v648_v46 = vld [vmem:[%s3120_s22 + $0x800] sm:$0xff] }
  0xfd   : > { %1078 = vmatprep.mubr.f32.mxu1 %v347_v48  ;;  %864 = vmatmul.mubr.f32.gmra.mxu0 %v3444_v49  ;;  %v460_v48 = vld [vmem:[%s3120_s22 + $0x220] sm:$0xff] }
  0xfe   : > { %1384 = vmatprep.subr.mxu1 %v4579_v11  ;;  %1079 = vmatmul.mubr.f32.gmra.mxu1 %v346_v51  ;;  %v3484_v51 = vld [vmem:[#allocation2 + $0x3f8] sm:$0xff] }
  0xff   : > { %1171 = vmatprep.subr.mxu0 %v660_v52  ;;  %1385 = vmatpush2.msra.mxu1 %v472_v54  ;;  %v647_v52 = vld [vmem:[%s3120_s22 + $0x7f8] sm:$0xff] }
 0x100   : > { %1172 = vmatpush2.msra.mxu0 %v659_v57  ;;  %869 = vmatprep.mubr.f32.mxu0 %v3452_v59  ;;  %v371_v54 = vld [vmem:[#allocation2 + $0x408] sm:$0xff]  ;;  %v3488_v57 = vld [vmem:[#allocation2 + $0x3f0] sm:$0xff] }
 0x101   : > { %1386 = vmatprep.subr.mxu1 %v4579_v11  ;;  %870 = vmatmul.mubr.f32.gmra.mxu0 %v3454_v60 }
 0x102   : > { %1084 = vmatprep.mubr.f32.mxu1 %v353_v62  ;;  %1173 = vmatprep.subr.mxu0 %v657_v3  ;;  %v370_v62 = vld [vmem:[#allocation2 + $0x400] sm:$0xff]  ;;  %v645_v3 = vld [vmem:[%s3120_s22 + $0x7e8] sm:$0xff] }
 0x103   : > { %1387 = vmatpush2.msra.mxu1 %v469_v4  ;;  %1174 = vmatpush2.msra.mxu0 %v656_v10  ;;  %v457_v4 = vld [vmem:[%s3120_s22 + $0x208] sm:$0xff]  ;;  %v3496_v10 = vld [vmem:[#allocation2 + $0x428] sm:$0xff] }
 0x104   : > { %1085 = vmatmul.mubr.f32.gmra.mxu1 %v352_v7  ;;  %1388 = vmatprep.subr.mxu1 %v4579_v11  ;;  %v644_v7 = vld [vmem:[%s3120_s22 + $0x7e0] sm:$0xff] }
 0x105   : > { %875 = vmatprep.mubr.f32.mxu0 %v3462_v12  ;;  %1175 = vmatprep.subr.mxu0 %v654_v15  ;;  %v3498_v15 = vld [vmem:[#allocation2 + $0x420] sm:$0xff] }
 0x106   : > { %1389 = vmatpush2.msra.mxu1 %v466_v19  ;;  %876 = vmatmul.mubr.f32.gmra.mxu0 %v3466_v20  ;;  %v377_v19 = vld [vmem:[#allocation2 + $0x438] sm:$0xff] }
 0x107   : > { %1090 = vmatprep.mubr.f32.mxu1 %v359_v22  ;;  %1176 = vmatpush2.msra.mxu0 %v653_v24  ;;  %v642_v22 = vld [vmem:[%s3120_s22 + $0x7d0] sm:$0xff] }
 0x108   : > { %1091 = vmatmul.mubr.f32.gmra.mxu1 %v358_v27  ;;  %1390 = vmatprep.subr.mxu1 %v4579_v11  ;;  %v454_v24 = vld [vmem:[%s3120_s22 + $0x1f0] sm:$0xff]  ;;  %v376_v27 = vld [vmem:[#allocation2 + $0x430] sm:$0xff] }
 0x109   : > { %881 = vmatprep.mubr.f32.mxu0 %v3471_v29  ;;  %1391 = vmatpush2.msra.mxu1 %v463_v30  ;;  %v641_v30 = vld [vmem:[%s3120_s22 + $0x7c8] sm:$0xff] }
 0x10a   : > { %1177 = vmatprep.subr.mxu0 %v651_v36  ;;  %882 = vmatmul.mubr.f32.gmra.mxu0 %v3476_v37  ;;  %v3506_v36 = vld [vmem:[#allocation2 + $0x458] sm:$0xff] }
 0x10b   : > { %1096 = vmatprep.mubr.f32.mxu1 %v365_v39  ;;  %1178 = vmatpush2.msra.mxu0 %v650_v40  ;;  %v639_v39 = vld [vmem:[%s3120_s22 + $0x7b8] sm:$0xff] }
 0x10c   : > { %1097 = vmatmul.mubr.f32.gmra.mxu1 %v364_v43  ;;  %1392 = vmatprep.subr.mxu1 %v4579_v11  ;;  %v451_v40 = vld [vmem:[%s3120_s22 + $0x1d8] sm:$0xff]  ;;  %v3510_v43 = vld [vmem:[#allocation2 + $0x450] sm:$0xff] }
 0x10d   : > { %1179 = vmatprep.subr.mxu0 %v648_v46  ;;  %1393 = vmatpush2.msra.mxu1 %v460_v48  ;;  %v383_v46 = vld [vmem:[#allocation2 + $0x468] sm:$0xff]  ;;  %v638_v48 = vld [vmem:[%s3120_s22 + $0x7b0] sm:$0xff] }
 0x10e   : > { %887 = vmatprep.mubr.f32.mxu0 %v3484_v51  ;;  %1180 = vmatpush2.msra.mxu0 %v647_v52  ;;  %v382_v52 = vld [vmem:[#allocation2 + $0x460] sm:$0xff] }
 0x10f   : > { %1102 = vmatprep.mubr.f32.mxu1 %v371_v54  ;;  %888 = vmatmul.mubr.f32.gmra.mxu0 %v3488_v57  ;;  %v636_v54 = vld [vmem:[%s3120_s22 + $0x7a0] sm:$0xff] }
 0x110   : > { %1394 = vmatprep.subr.mxu1 %v4579_v11  ;;  %1103 = vmatmul.mubr.f32.gmra.mxu1 %v370_v62  ;;  %v448_v62 = vld [vmem:[%s3120_s22 + $0x1c0] sm:$0xff] }
 0x111   : > { %1181 = vmatprep.subr.mxu0 %v645_v3  ;;  %1395 = vmatpush2.msra.mxu1 %v457_v4  ;;  %v3518_v3 = vld [vmem:[#allocation2 + $0x488] sm:$0xf] }
 0x112   : > { %1182 = vmatpush2.msra.mxu0 %v644_v7  ;;  %893 = vmatprep.mubr.f32.mxu0 %v3496_v10  ;;  %v635_v4 = vld [vmem:[%s3120_s22 + $0x798] sm:$0xff]  ;;  %v389_v7 = vld [vmem:[#allocation2 + $0x498] sm:$0xf] }
 0x113   : > { %1396 = vmatprep.subr.mxu1 %v4579_v11  ;;  %894 = vmatmul.mubr.f32.gmra.mxu0 %v3498_v15 }
 0x114   : > { %1108 = vmatprep.mubr.f32.mxu1 %v377_v19  ;;  %1183 = vmatprep.subr.mxu0 %v642_v22  ;;  %v3522_v19 = vld [vmem:[#allocation2 + $0x480] sm:$0xf]  ;;  %v388_v22 = vld [vmem:[#allocation2 + $0x490] sm:$0xf] }
 0x115   : > { %1397 = vmatpush2.msra.mxu1 %v454_v24  ;;  %1184 = vmatpush2.msra.mxu0 %v641_v30  ;;  %v633_v24 = vld [vmem:[%s3120_s22 + $0x788] sm:$0xff]  ;;  %v632_v30 = vld [vmem:[%s3120_s22 + $0x780] sm:$0xff] }
 0x116   : > { %1109 = vmatmul.mubr.f32.gmra.mxu1 %v376_v27  ;;  %1398 = vmatprep.subr.mxu1 %v4579_v11  ;;  %v445_v27 = vld [vmem:[%s3120_s22 + $0x1a8] sm:$0xff] }
 0x117   : > { %899 = vmatprep.mubr.f32.mxu0 %v3506_v36  ;;  %1185 = vmatprep.subr.mxu0 %v639_v39  ;;  %v3530_v39 = vld [vmem:[#allocation2 + $0x28] sm:$0xff] }
 0x118   : > { %1399 = vmatpush2.msra.mxu1 %v451_v40  ;;  %900 = vmatmul.mubr.f32.gmra.mxu0 %v3510_v43  ;;  %v3532_v40 = vld [vmem:[#allocation2 + $0x20] sm:$0xff] }
 0x119   : > { %1114 = vmatprep.mubr.f32.mxu1 %v383_v46  ;;  %1186 = vmatpush2.msra.mxu0 %v638_v48  ;;  %v442_v46 = vld [vmem:[%s3120_s22 + $0x190] sm:$0xff]  ;;  %v535_v48 = vld [vmem:[%s3120_s22 + $0x478] sm:$0xff] }
 0x11a   : > { %1115 = vmatmul.mubr.f32.gmra.mxu1 %v382_v52  ;;  %1400 = vmatprep.subr.mxu1 %v4579_v11  ;;  %v3539_v52 = vld [vmem:[#allocation2 + $0x58] sm:$0xff] }
 0x11b   : > { %1187 = vmatprep.subr.mxu0 %v636_v54  ;;  %1401 = vmatpush2.msra.mxu1 %v448_v62  ;;  %v631_v54 = vld [vmem:[%s3120_s22 + $0x778] sm:$0xff]  ;;  %v3544_v62 = vld [vmem:[#allocation2 + $0x50] sm:$0xff] }
 0x11c   : > { %905 = vmatprep.mubr.f32.mxu0 %v3518_v3  ;;  %1188 = vmatpush2.msra.mxu0 %v635_v4  ;;  %v532_v4 = vld [vmem:[%s3120_s22 + $0x460] sm:$0xff] }
 0x11d   : > { %1120 = vmatprep.mubr.f32.mxu1 %v389_v7  ;;  %906 = vmatmul.mubr.f32.gmra.mxu0 %v3522_v19  ;;  %v3551_v7 = vld [vmem:[#allocation2 + $0x88] sm:$0xff] }
 0x11e   : > { %1402 = vmatprep.subr.mxu1 %v4579_v11  ;;  %1121 = vmatmul.mubr.f32.gmra.mxu1 %v388_v22  ;;  %v529_v22 = vld [vmem:[%s3120_s22 + $0x448] sm:$0xff] }
 0x11f   : > { %1189 = vmatprep.subr.mxu0 %v633_v24  ;;  %1403 = vmatpush2.msra.mxu1 %v445_v27  ;;  %v3566_v24 = vld [vmem:[#allocation2 + $0xb8] sm:$0xff]  ;;  %v3572_v27 = vld [vmem:[#allocation2 + $0xb0] sm:$0xff] }
 0x120   : > { %1190 = vmatpush2.msra.mxu0 %v632_v30  ;;  %1191 = vmatprep.mubr.f32.mxu0 %v3530_v39  ;;  %v523_v30 = vld [vmem:[%s3120_s22 + $0x418] sm:$0xff] }
 0x121   : > { %1404 = vmatprep.subr.mxu1 %v4579_v11  ;;  %1192 = vmatmul.mubr.f32.vlgmr.msra.gmra.mxu0 %v3532_v40 }
 0x122   : > { %1405 = vmatpush2.msra.mxu1 %v442_v46  ;;  %1406 = vmatprep.mubr.f32.mxu1 %v3251_v61  ;;  %v628_v61 = vld [vmem:[%s3120_s22 + $0x760] sm:$0xff]  ;;  %v3584_v46 = vld [vmem:[#allocation2 + $0xe0] sm:$0xff] }
 0x123   : > { %1532 = vmatprep.subr.mxu0 %v4579_v11  ;;  %1407 = vmatmul.mubr.f32.vlgmr.msra.gmra.mxu1 %v3255_v0  ;;  %v3557_v0 = vld [vmem:[#allocation2 + $0x80] sm:$0xff] }
 0x124   : > { %1533 = vmatpush1.msra.mxu0 %v535_v48  ;;  %1722 = vmatprep.subr.mxu1 %v4579_v11  ;;  %v619_v48 = vld [vmem:[%s3120_s22 + $0x718] sm:$0xff] }
 0x125   : > { %1197 = vmatprep.mubr.f32.mxu0 %v3539_v52  ;;  %1723 = vmatpush1.msra.mxu1 %v631_v54  ;;  %v3592_v54 = vld [vmem:[#allocation2 + $0x118] sm:$0xff] }
 0x126   : > { %1198 = vmatmul.mubr.f32.gmra.mxu0 %v3544_v62  ;;  %1411 = vmatprep.mubr.f32.mxu1 %v3262_v6  ;;  %v625_v6 = vld [vmem:[%s3120_s22 + $0x748] sm:$0xff] }
 0x127   : > { %1534 = vmatprep.subr.mxu0 %v4579_v11  ;;  %1412 = vmatmul.mubr.f32.gmra.mxu1 %v3265_v8  ;;  %v526_v8 = vld [vmem:[%s3120_s22 + $0x430] sm:$0xff] }
 0x128   : > { %1535 = vmatpush1.msra.mxu0 %v532_v4  ;;  %1724 = vmatprep.subr.mxu1 %v4579_v11  ;;  %v3597_v4 = vld [vmem:[#allocation2 + $0x110] sm:$0xff] }
 0x129   : > { %1203 = vmatprep.mubr.f32.mxu0 %v3551_v7  ;;  %1536 = vmatprep.subr.mxu0 %v4579_v11 }
 0x12a   : > { %1725 = vmatpush1.msra.mxu1 %v628_v61  ;;  %1204 = vmatmul.mubr.f32.gmra.mxu0 %v3557_v0  ;;  %v517_v61 = vld [vmem:[%s3120_s22 + $0x3e8] sm:$0xff] }
 0x12b   : > { %1416 = vmatprep.mubr.f32.mxu1 %v3272_v14  ;;  %1537 = vmatpush1.msra.mxu0 %v529_v22  ;;  %v622_v14 = vld [vmem:[%s3120_s22 + $0x730] sm:$0xff]  ;;  %v3606_v22 = vld [vmem:[#allocation2 + $0x148] sm:$0xff] }
 0x12c   : > { %1417 = vmatmul.mubr.f32.gmra.mxu1 %v3276_v17  ;;  %1726 = vmatprep.subr.mxu1 %v4579_v11  ;;  %v3580_v17 = vld [vmem:[#allocation2 + $0xe8] sm:$0xff] }
 0x12d   : > { %1538 = vmatprep.subr.mxu0 %v4579_v11  ;;  %1727 = vmatpush1.msra.mxu1 %v625_v6  ;;  %v3612_v6 = vld [vmem:[#allocation2 + $0x140] sm:$0xff] }
 0x12e   : > { %1209 = vmatprep.mubr.f32.mxu0 %v3566_v24  ;;  %1539 = vmatpush1.msra.mxu0 %v526_v8  ;;  %v511_v8 = vld [vmem:[%s3120_s22 + $0x3b8] sm:$0xff] }
 0x12f   : > { %1421 = vmatprep.mubr.f32.mxu1 %v3284_v23  ;;  %1210 = vmatmul.mubr.f32.gmra.mxu0 %v3572_v27  ;;  %v520_v23 = vld [vmem:[%s3120_s22 + $0x400] sm:$0xff] }
 0x130   : > { %1728 = vmatprep.subr.mxu1 %v4579_v11  ;;  %1422 = vmatmul.mubr.f32.gmra.mxu1 %v3288_v26  ;;  %v616_v26 = vld [vmem:[%s3120_s22 + $0x700] sm:$0xff] }
 0x131   : > { %1540 = vmatprep.subr.mxu0 %v4579_v11  ;;  %1729 = vmatpush1.msra.mxu1 %v622_v14  ;;  %v3624_v14 = vld [vmem:[#allocation2 + $0x170] sm:$0xff] }
 0x132   : > { %1541 = vmatpush1.msra.mxu0 %v523_v30  ;;  %1215 = vmatprep.mubr.f32.mxu0 %v3580_v17  ;;  %v607_v30 = vld [vmem:[%s3120_s22 + $0x6b8] sm:$0xff] }
 0x133   : > { %1730 = vmatprep.subr.mxu1 %v4579_v11  ;;  %1216 = vmatmul.mubr.f32.gmra.mxu0 %v3584_v46 }
 0x134   : > { %1426 = vmatprep.mubr.f32.mxu1 %v3296_v31  ;;  %1542 = vmatprep.subr.mxu0 %v4579_v11  ;;  %v613_v31 = vld [vmem:[%s3120_s22 + $0x6e8] sm:$0xff] }
 0x135   : > { %1731 = vmatpush1.msra.mxu1 %v619_v48  ;;  %1543 = vmatpush1.msra.mxu0 %v520_v23  ;;  %v3635_v48 = vld [vmem:[#allocation2 + $0x1a0] sm:$0xff]  ;;  %v604_v23 = vld [vmem:[%s3120_s22 + $0x6a0] sm:$0xff] }
 0x136   : > { %1427 = vmatmul.mubr.f32.gmra.mxu1 %v3298_v32  ;;  %1732 = vmatprep.subr.mxu1 %v4579_v11  ;;  %v514_v32 = vld [vmem:[%s3120_s22 + $0x3d0] sm:$0xff] }
 0x137   : > { %1221 = vmatprep.mubr.f32.mxu0 %v3592_v54  ;;  %1544 = vmatprep.subr.mxu0 %v4579_v11 }
 0x138   : > { %1733 = vmatpush1.msra.mxu1 %v616_v26  ;;  %1222 = vmatmul.mubr.f32.gmra.mxu0 %v3597_v4  ;;  %v505_v26 = vld [vmem:[%s3120_s22 + $0x388] sm:$0xff] }
 0x139   : > { %1431 = vmatprep.mubr.f32.mxu1 %v3306_v38  ;;  %1545 = vmatpush1.msra.mxu0 %v517_v61  ;;  %v610_v38 = vld [vmem:[%s3120_s22 + $0x6d0] sm:$0xff]  ;;  %v3649_v61 = vld [vmem:[#allocation2 + $0x1d0] sm:$0xff] }
 0x13a   : > { %1432 = vmatmul.mubr.f32.gmra.mxu1 %v3310_v41  ;;  %1734 = vmatprep.subr.mxu1 %v4579_v11  ;;  %v3620_v41 = vld [vmem:[#allocation2 + $0x178] sm:$0xff] }
 0x13b   : > { %1546 = vmatprep.subr.mxu0 %v4579_v11  ;;  %1735 = vmatpush1.msra.mxu1 %v613_v31  ;;  %v502_v31 = vld [vmem:[%s3120_s22 + $0x370] sm:$0xff] }
 0x13c   : > { %1227 = vmatprep.mubr.f32.mxu0 %v3606_v22  ;;  %1547 = vmatpush1.msra.mxu0 %v514_v32  ;;  %v3658_v32 = vld [vmem:[#allocation2 + $0x208] sm:$0xff] }
 0x13d   : > { %1436 = vmatprep.mubr.f32.mxu1 %v3318_v47  ;;  %1228 = vmatmul.mubr.f32.gmra.mxu0 %v3612_v6  ;;  %v508_v47 = vld [vmem:[%s3120_s22 + $0x3a0] sm:$0xff] }
 0x13e   : > { %1736 = vmatprep.subr.mxu1 %v4579_v11  ;;  %1437 = vmatmul.mubr.f32.gmra.mxu1 %v3322_v50  ;;  %v3632_v50 = vld [vmem:[#allocation2 + $0x1a8] sm:$0xff] }
 0x13f   : > { %1548 = vmatprep.subr.mxu0 %v4579_v11  ;;  %1737 = vmatpush1.msra.mxu1 %v610_v38  ;;  %v3664_v38 = vld [vmem:[#allocation2 + $0x200] sm:$0xff] }
 0x140   : > { %1549 = vmatpush1.msra.mxu0 %v511_v8  ;;  %1233 = vmatprep.mubr.f32.mxu0 %v3620_v41  ;;  %v496_v8 = vld [vmem:[%s3120_s22 + $0x340] sm:$0xff] }
 0x141   : > { %1738 = vmatprep.subr.mxu1 %v4579_v11  ;;  %1234 = vmatmul.mubr.f32.gmra.mxu0 %v3624_v14 }
 0x142   : > { %1441 = vmatprep.mubr.f32.mxu1 %v3330_v55  ;;  %1739 = vmatpush1.msra.mxu1 %v607_v30  ;;  %v3644_v55 = vld [vmem:[#allocation2 + $0x1d8] sm:$0xff]  ;;  %v3676_v30 = vld [vmem:[#allocation2 + $0x230] sm:$0xff] }
 0x143   : > { %1550 = vmatprep.subr.mxu0 %v4579_v11  ;;  %1442 = vmatmul.mubr.f32.gmra.mxu1 %v3332_v56  ;;  %v601_v56 = vld [vmem:[%s3120_s22 + $0x688] sm:$0xff] }
 0x144   : > { %1551 = vmatpush1.msra.mxu0 %v508_v47  ;;  %1239 = vmatprep.mubr.f32.mxu0 %v3632_v50  ;;  %v592_v47 = vld [vmem:[%s3120_s22 + $0x640] sm:$0xff] }
 0x145   : > { %1740 = vmatprep.subr.mxu1 %v4579_v11  ;;  %1240 = vmatmul.mubr.f32.gmra.mxu0 %v3635_v48 }
 0x146   : > { %1446 = vmatprep.mubr.f32.mxu1 %v3340_v63  ;;  %1552 = vmatprep.subr.mxu0 %v4579_v11  ;;  %v598_v63 = vld [vmem:[%s3120_s22 + $0x670] sm:$0xff] }
 0x147   : > { %1741 = vmatpush1.msra.mxu1 %v604_v23  ;;  %1553 = vmatpush1.msra.mxu0 %v505_v26  ;;  %v3684_v23 = vld [vmem:[#allocation2 + $0x268] sm:$0xff]  ;;  %v3689_v26 = vld [vmem:[#allocation2 + $0x260] sm:$0xff] }
 0x148   : > { %1447 = vmatmul.mubr.f32.gmra.mxu1 %v3342_v1  ;;  %1742 = vmatprep.subr.mxu1 %v4579_v11  ;;  %v499_v1 = vld [vmem:[%s3120_s22 + $0x358] sm:$0xff] }
 0x149   : > { %1245 = vmatprep.mubr.f32.mxu0 %v3644_v55  ;;  %1554 = vmatprep.subr.mxu0 %v4579_v11 }
 0x14a   : > { %1743 = vmatpush1.msra.mxu1 %v601_v56  ;;  %1246 = vmatmul.mubr.f32.gmra.mxu0 %v3649_v61  ;;  %v490_v56 = vld [vmem:[%s3120_s22 + $0x310] sm:$0xff] }
 0x14b   : > { %1451 = vmatprep.mubr.f32.mxu1 %v3350_v9  ;;  %1555 = vmatpush1.msra.mxu0 %v502_v31  ;;  %v595_v9 = vld [vmem:[%s3120_s22 + $0x658] sm:$0xff]  ;;  %v3698_v31 = vld [vmem:[#allocation2 + $0x298] sm:$0xff] }
 0x14c   : > { %1452 = vmatmul.mubr.f32.gmra.mxu1 %v3354_v13  ;;  %1744 = vmatprep.subr.mxu1 %v4579_v11  ;;  %v3672_v13 = vld [vmem:[#allocation2 + $0x238] sm:$0xff] }
 0x14d   : > { %1556 = vmatprep.subr.mxu0 %v4579_v11  ;;  %1745 = vmatpush1.msra.mxu1 %v598_v63  ;;  %v3704_v63 = vld [vmem:[#allocation2 + $0x290] sm:$0xff] }
 0x14e   : > { %1251 = vmatprep.mubr.f32.mxu0 %v3658_v32  ;;  %1557 = vmatpush1.msra.mxu0 %v499_v1  ;;  %v3709_v1 = vld [vmem:[#allocation2 + $0x2c8] sm:$0xff] }
 0x14f   : > { %1456 = vmatprep.mubr.f32.mxu1 %v3362_v21  ;;  %1252 = vmatmul.mubr.f32.gmra.mxu0 %v3664_v38  ;;  %v493_v21 = vld [vmem:[%s3120_s22 + $0x328] sm:$0xff] }
 0x150   : > { %1746 = vmatprep.subr.mxu1 %v4579_v11  ;;  %1457 = vmatmul.mubr.f32.gmra.mxu1 %v3366_v25  ;;  %v589_v25 = vld [vmem:[%s3120_s22 + $0x628] sm:$0xff] }
 0x151   : > { %1558 = vmatprep.subr.mxu0 %v4579_v11  ;;  %1747 = vmatpush1.msra.mxu1 %v595_v9  ;;  %v3716_v9 = vld [vmem:[#allocation2 + $0x2c0] sm:$0xff] }
 0x152   : > { %1559 = vmatpush1.msra.mxu0 %v496_v8  ;;  %1257 = vmatprep.mubr.f32.mxu0 %v3672_v13  ;;  %v577_v8 = vld [vmem:[%s3120_s22 + $0x5c8] sm:$0xff] }
 0x153   : > { %1748 = vmatprep.subr.mxu1 %v4579_v11  ;;  %1258 = vmatmul.mubr.f32.gmra.mxu0 %v3676_v30 }
 0x154   : > { %1461 = vmatprep.mubr.f32.mxu1 %v3374_v33  ;;  %1560 = vmatprep.subr.mxu0 %v4579_v11  ;;  %v586_v33 = vld [vmem:[%s3120_s22 + $0x610] sm:$0xff] }
 0x155   : > { %1749 = vmatpush1.msra.mxu1 %v592_v47  ;;  %1561 = vmatpush1.msra.mxu0 %v493_v21  ;;  %v682_v47 = vlaneseq  ;;  %v3728_v21 = vld [vmem:[#allocation2 + $0x2f0] sm:$0xff] }
 0x156   : > { %1462 = vmatmul.mubr.f32.gmra.mxu1 %v3376_v34  ;;  %1750 = vmatprep.subr.mxu1 %v4579_v11  ;;  %v583_v34 = vld [vmem:[%s3120_s22 + $0x5f8] sm:$0xff] }
 0x157   : > { %1263 = vmatprep.mubr.f32.mxu0 %v3684_v23  ;;  %1562 = vmatprep.subr.mxu0 %v4579_v11 }
 0x158   : > { %1751 = vmatpush1.msra.mxu1 %v589_v25  ;;  %1264 = vmatmul.mubr.f32.gmra.mxu0 %v3689_v26  ;;  %v574_v25 = vld [vmem:[%s3120_s22 + $0x5b0] sm:$0xff] }
 0x159   : > { %1466 = vmatprep.mubr.f32.mxu1 %v3384_v42  ;;  %1563 = vmatpush1.msra.mxu0 %v490_v56  ;;  %v679_v42 = vld [vmem:[%s3120_s22 + $0x8f8] sm:$0xff]  ;;  %v3735_v56 = vshrl.u32 %v682_v47, 7  ;;  %v568_v47 = vld [vmem:[%s3120_s22 + $0x580] sm:$0xff] }
 0x15a   : > { %1467 = vmatmul.mubr.f32.gmra.mxu1 %v3388_v45  ;;  %1752 = vmatprep.subr.mxu1 %v4579_v11  ;;  %v580_v45 = vld [vmem:[%s3120_s22 + $0x5e0] sm:$0xff] }
 0x15b   : > { %1564 = vmatprep.subr.mxu0 %v4579_v11  ;;  %1753 = vmatpush1.msra.mxu1 %v586_v33  ;;  %4598 = vst [vmem:[#allocation13_spill] sm:$0xff] %v3735_v56  ;;  %v670_v33 = vld [vmem:[%s3120_s22 + $0x8b0] sm:$0xff] }
 0x15c   : > { %1269 = vmatprep.mubr.f32.mxu0 %v3698_v31  ;;  %1565 = vmatpush2.msra.mxu0 %v583_v34  ;;  %v3744_v34 = vld [vmem:[#allocation2 + $0x320] sm:$0xff] }
 0x15d   : > { %1471 = vmatprep.mubr.f32.mxu1 %v3396_v53  ;;  %1270 = vmatmul.mubr.f32.gmra.mxu0 %v3704_v63  ;;  %v676_v53 = vld [vmem:[%s3120_s22 + $0x8e0] sm:$0xff] }
 0x15e   : > { %1754 = vmatprep.subr.mxu1 %v4579_v11  ;;  %1472 = vmatmul.mubr.f32.gmra.mxu1 %v3400_v58  ;;  %v3724_v58 = vld [vmem:[#allocation2 + $0x2f8] sm:$0xff] }
 0x15f   : > { %1566 = vmatprep.subr.mxu0 %v4579_v11  ;;  %1755 = vmatpush2.msra.mxu1 %v679_v42  ;;  %v571_v42 = vld [vmem:[%s3120_s22 + $0x598] sm:$0xff] }
 0x160   : > { %1275 = vmatprep.mubr.f32.mxu0 %v3709_v1  ;;  %1567 = vmatpush2.msra.mxu0 %v580_v45  ;;  %v680_v45 = vld [vmem:[%s3751_s28] sm:$0x7] }
 0x161   : > { %1476 = vmatprep.mubr.f32.mxu1 %v3405_v2  ;;  %1276 = vmatmul.mubr.f32.gmra.mxu0 %v3716_v9  ;;  %v673_v2 = vld [vmem:[%s3120_s22 + $0x8c8] sm:$0xff] }
 0x162   : > { %1756 = vmatprep.subr.mxu1 %v4579_v11  ;;  %1477 = vmatmul.mubr.f32.gmra.mxu1 %v3410_v5  ;;  %v3739_v5 = vld [vmem:[#allocation2 + $0x328] sm:$0xff] }
 0x163   : > { %1568 = vmatprep.subr.mxu0 %v4579_v11  ;;  %1757 = vmatpush2.msra.mxu1 %v676_v53  ;;  %v3757_v53 = vld [vmem:[#allocation2 + $0x358] sm:$0xff] }
 0x164   : > { %1569 = vmatpush2.msra.mxu0 %v577_v8  ;;  %1281 = vmatprep.mubr.f32.mxu0 %v3724_v58  ;;  %4599 = vst [vmem:[#allocation14_spill] sm:$0xff] %v3757_v53  ;;  %v688_v8 = vsub.s32 1, %v3735_v56 }
 0x165   : > { %1758 = vmatprep.subr.mxu1 %v4579_v11  ;;  %1282 = vmatmul.mubr.f32.gmra.mxu0 %v3728_v21 }
 0x166   : > { %1481 = vmatprep.mubr.f32.mxu1 %v3418_v16  ;;  %1570 = vmatprep.subr.mxu0 %v4579_v11  ;;  %v684_v16 = vsub.s32 0, %v3735_v56  ;;  %v562_v56 = vld [vmem:[%s3120_s22 + $0x550] sm:$0xff] }
 0x167   : > { %1759 = vmatpush2.msra.mxu1 %v673_v2  ;;  %1571 = vmatpush2.msra.mxu0 %v574_v25  ;;  %v3764_v2 = vld [vmem:[#allocation2 + $0x350] sm:$0xff] }
 0x168   : > { %1482 = vmatmul.mubr.f32.gmra.mxu1 %v3420_v18  ;;  %1760 = vmatprep.subr.mxu1 %v4579_v11  ;;  %v667_v18 = vld [vmem:[%s3120_s22 + $0x898] sm:$0xff]  ;;  %4600 = vst [vmem:[#allocation15_spill] sm:$0xff] %v3764_v2  ;;  %v3766_v25 = vrot.slane %v680_v45, %v684_v16 }
 0x169   : > { %1287 = vmatprep.mubr.f32.mxu0 %v3739_v5  ;;  %1572 = vmatprep.subr.mxu0 %v4579_v11 }
 0x16a   : > { %1761 = vmatpush2.msra.mxu1 %v670_v33  ;;  %1288 = vmatmul.mubr.f32.gmra.mxu0 %v3744_v34  ;;  %v565_v33 = vld [vmem:[%s3120_s22 + $0x568] sm:$0xff] }
 0x16b   : > { %1486 = vmatprep.mubr.f32.mxu1 %v3428_v28  ;;  %1573 = vmatpush2.msra.mxu0 %v571_v42  ;;  %v664_v28 = vld [vmem:[%s3120_s22 + $0x880] sm:$0xff]  ;;  %v3772_v42 = vrot.slane %v680_v45, %v688_v8  ;;  %v661_v45 = vld [vmem:[%s3120_s22 + $0x868] sm:$0xff] }
 0x16c   : > { %1487 = vmatmul.mubr.f32.gmra.mxu1 %v3432_v35  ;;  %1762 = vmatprep.subr.mxu1 %v4579_v11  ;;  %v3776_v35 = vld [vmem:[#allocation2 + $0x388] sm:$0xff] }
 0x16d   : > { %1574 = vmatprep.subr.mxu0 %v4579_v11  ;;  %1763 = vmatpush2.msra.mxu1 %v667_v18  ;;  %4601 = vst [vmem:[#allocation16_spill] sm:$0xff] %v3776_v35  ;;  %v3780_v18 = vld [vmem:[#allocation2 + $0x380] sm:$0xff] }
 0x16e   : > { %1293 = vmatprep.mubr.f32.mxu0 %v3757_v53  ;;  %1575 = vmatpush2.msra.mxu0 %v568_v47  ;;  %4602 = vst [vmem:[#allocation17_spill] sm:$0xff] %v3780_v18 }
 0x16f   : > { %1491 = vmatprep.mubr.f32.mxu1 %v3440_v44  ;;  %1294 = vmatmul.mubr.f32.gmra.mxu0 %v3764_v2  ;;  %v763_v16 = vpop.f32.mrf.mxu0 }
 0x170   : > { %1764 = vmatprep.subr.mxu1 %v4579_v11  ;;  %1492 = vmatmul.mubr.f32.gmra.mxu1 %v3444_v49  ;;  %v764_v44 = vadd.f32 %v763_v16, %v3766_v25 }
 0x171   : > { %1576 = vmatprep.subr.mxu0 %v4579_v11  ;;  %1765 = vmatpush2.msra.mxu1 %v664_v28  ;;  %v978_v8 = vpop.f32.mrf.mxu1  ;;  %v765_v47 = vpop.f32.mrf.mxu0  ;;  %v3792_v28 = vld [vmem:[#allocation2 + $0x3b8] sm:$0xff] }
 0x172   : > { %1577 = vmatpush2.msra.mxu0 %v565_v33  ;;  %1299 = vmatprep.mubr.f32.mxu0 %v3776_v35  ;;  %v3787_v2 = vadd.f32 %v978_v8, %v764_v44  ;;  %v766_v49 = vadd.f32 %v765_v47, %v3772_v42  ;;  %v658_v35 = vld [vmem:[%s3120_s22 + $0x850] sm:$0xff]  ;;  %v3800_v8 = vld [vmem:[#allocation2 + $0x3b0] sm:$0xff] }
 0x173   : > { %1766 = vmatprep.subr.mxu1 %v4579_v11  ;;  %1300 = vmatmul.mubr.f32.gmra.mxu0 %v3780_v18  ;;  %v980_v33 = vpop.f32.mrf.mxu1 }
 0x174   : > { %4603 = vst [vmem:[#allocation18_spill] sm:$0xff] %v3787_v2  ;;  %1496 = vmatprep.mubr.f32.mxu1 %v3452_v59  ;;  %v769_v16 = vpop.f32.mrf.mxu0  ;;  %1578 = vmatprep.subr.mxu0 %v4579_v11  ;;  %v3796_v53 = vadd.f32 %v980_v33, %v766_v49  ;;  %v559_v2 = vld [vmem:[%s3120_s22 + $0x538] sm:$0xff] }
 0x175   : > { %1767 = vmatpush2.msra.mxu1 %v661_v45  ;;  %v770_v44 = vadd.f32 %v769_v16, %v3766_v25  ;;  %1579 = vmatpush2.msra.mxu0 %v562_v56  ;;  %v984_v59 = vpop.f32.mrf.mxu1  ;;  %v655_v49 = vld [vmem:[%s3120_s22 + $0x838] sm:$0xff] }
 0x176   : > { %1497 = vmatmul.mubr.f32.gmra.mxu1 %v3454_v60  ;;  %v771_v47 = vpop.f32.mrf.mxu0  ;;  %1768 = vmatprep.subr.mxu1 %v4579_v11  ;;  %v3809_v60 = vld [vmem:[#allocation2 + $0x3e8] sm:$0xff] }
 0x177   : > { %1305 = vmatprep.mubr.f32.mxu0 %v3792_v28  ;;  %v3805_v18 = vadd.f32 %v984_v59, %v770_v44  ;;  %v772_v45 = vadd.f32 %v771_v47, %v3772_v42  ;;  %1580 = vmatprep.subr.mxu0 %v4579_v11  ;;  %v986_v56 = vpop.f32.mrf.mxu1  ;;  %v3817_v44 = vld [vmem:[#allocation2 + $0x3e0] sm:$0xff]  ;;  %v556_v47 = vld [vmem:[%s3120_s22 + $0x520] sm:$0xff] }
 0x178   : > { %1769 = vmatpush2.msra.mxu1 %v658_v35  ;;  %1306 = vmatmul.mubr.f32.gmra.mxu0 %v3800_v8  ;;  %v775_v16 = vpop.f32.mrf.mxu0 }
 0x179   : > { %4604 = vst [vmem:[#allocation19_spill] sm:$0xff] %v3805_v18  ;;  %1501 = vmatprep.mubr.f32.mxu1 %v3462_v12  ;;  %v3814_v33 = vadd.f32 %v986_v56, %v772_v45  ;;  %1581 = vmatpush2.msra.mxu0 %v559_v2  ;;  %v776_v59 = vadd.f32 %v775_v16, %v3766_v25  ;;  %v652_v56 = vld [vmem:[%s3120_s22 + $0x820] sm:$0xff]  ;;  %v3830_v16 = vld [vmem:[#allocation2 + $0x418] sm:$0xff] }
 0x17a   : > { %1502 = vmatmul.mubr.f32.gmra.mxu1 %v3466_v20  ;;  %v990_v35 = vpop.f32.mrf.mxu1  ;;  %1770 = vmatprep.subr.mxu1 %v4579_v11  ;;  %v777_v12 = vpop.f32.mrf.mxu0 }
 0x17b   : > { %4605 = vst [vmem:[#allocation20_spill] sm:$0xff] %v3814_v33  ;;  %1311 = vmatprep.mubr.f32.mxu0 %v3809_v60  ;;  %1771 = vmatpush2.msra.mxu1 %v655_v49  ;;  %v3824_v45 = vadd.f32 %v990_v35, %v776_v59  ;;  %v778_v2 = vadd.f32 %v777_v12, %v3772_v42  ;;  %v553_v49 = vld [vmem:[%s3120_s22 + $0x508] sm:$0xff]  ;;  %v3838_v35 = vld [vmem:[#allocation2 + $0x410] sm:$0xff] }
 0x17c   : > { %1582 = vmatprep.subr.mxu0 %v4579_v11  ;;  %v992_v20 = vpop.f32.mrf.mxu1  ;;  %1312 = vmatmul.mubr.f32.gmra.mxu0 %v3817_v44  ;;  %4608 = vst [vmem:[#allocation23_spill] sm:$0xff] %v3838_v35 }
 0x17d   : > { %4606 = vst [vmem:[#allocation21_spill] sm:$0xff] %v3824_v45  ;;  %1506 = vmatprep.mubr.f32.mxu1 %v3471_v29  ;;  %1583 = vmatpush2.msra.mxu0 %v556_v47  ;;  %v3834_v33 = vadd.f32 %v992_v20, %v778_v2  ;;  %v781_v59 = vpop.f32.mrf.mxu0  ;;  %v550_v2 = vld [vmem:[%s3120_s22 + $0x4f0] sm:$0xff]  ;;  %v4610_v45 = vmov 0.0  }
 0x17e   : > { %1507 = vmatmul.mubr.f32.gmra.mxu1 %v3476_v37  ;;  %1772 = vmatprep.subr.mxu1 %v4579_v11  ;;  %v782_v29 = vadd.f32 %v781_v59, %v3766_v25  ;;  %v996_v12 = vpop.f32.mrf.mxu1  ;;  %v649_v37 = vld [vmem:[%s3120_s22 + $0x808] sm:$0xff] }
 0x17f   : > { %4607 = vst [vmem:[#allocation22_spill] sm:$0xff] %v3834_v33  ;;  %1584 = vmatprep.subr.mxu0 %v4579_v11  ;;  %1773 = vmatpush2.msra.mxu1 %v652_v56  ;;  %v783_v47 = vpop.f32.mrf.mxu0  ;;  %v3850_v56 = vld [vmem:[#allocation2 + $0x448] sm:$0xff] }
 0x180   : > { %1317 = vmatprep.mubr.f32.mxu0 %v3830_v16  ;;  %1585 = vmatpush2.msra.mxu0 %v553_v49  ;;  %v3845_v20 = vadd.f32 %v996_v12, %v782_v29  ;;  %v784_v33 = vadd.f32 %v783_v47, %v3772_v42  ;;  %v998_v11 = vpop.f32.mrf.mxu1  ;;  %v646_v12 = vld [vmem:[%s3120_s22 + $0x7f0] sm:$0xff] }
 0x181   : > { %1511 = vmatprep.mubr.f32.mxu1 %v3484_v51  ;;  %1318 = vmatmul.mubr.f32.gmra.mxu0 %v3838_v35  ;;  %v787_v59 = vpop.f32.mrf.mxu0  ;;  %v3854_v51 = vld [vmem:[#allocation2 + $0x440] sm:$0xff]  ;;  %v547_v35 = vld [vmem:[%s3120_s22 + $0x4d8] sm:$0xff] }
 0x182   : > { %4609 = vst [vmem:[#allocation24_spill] sm:$0xff] %v3845_v20  ;;  %1774 = vmatprep.subr.mxu1 %v4610_v45  ;;  %1512 = vmatmul.mubr.f32.gmra.mxu1 %v3488_v57  ;;  %v3856_v49 = vadd.f32 %v998_v11, %v784_v33  ;;  %v788_v29 = vadd.f32 %v787_v59, %v3766_v25  ;;  %v3868_v11 = vld [vmem:[#allocation2 + $0x478] sm:$0xff] }
 0x183   : > { %1586 = vmatprep.subr.mxu0 %v4610_v45  ;;  %1775 = vmatpush2.msra.mxu1 %v649_v37  ;;  %v789_v20 = vpop.f32.mrf.mxu0  ;;  %v643_v37 = vld [vmem:[%s3120_s22 + $0x7d8] sm:$0xff] }
 0x184   : > { %1587 = vmatpush2.msra.mxu0 %v550_v2  ;;  %v1002_v47 = vpop.f32.mrf.mxu1  ;;  %1323 = vmatprep.mubr.f32.mxu0 %v3850_v56  ;;  %v790_v18 = vadd.f32 %v789_v20, %v3772_v42  ;;  %v3875_v20 = vld [vmem:[#allocation2 + $0x470] sm:$0xff] }
 0x185   : > { %1776 = vmatprep.subr.mxu1 %v4610_v45  ;;  %v3863_v57 = vadd.f32 %v1002_v47, %v788_v29  ;;  %1324 = vmatmul.mubr.f32.gmra.mxu0 %v3854_v51 }
 0x186   : > { %1516 = vmatprep.mubr.f32.mxu1 %v3496_v10  ;;  %v1004_v33 = vpop.f32.mrf.mxu1  ;;  %1588 = vmatprep.subr.mxu0 %v4610_v45  ;;  %v793_v59 = vpop.f32.mrf.mxu0  ;;  %v544_v10 = vld [vmem:[%s3120_s22 + $0x4c0] sm:$0xff] }
 0x187   : > { %4611 = vst [vmem:[#allocation25_spill] sm:$0xff] %v3863_v57  ;;  %1777 = vmatpush2.msra.mxu1 %v646_v12  ;;  %v3872_v2 = vadd.f32 %v1004_v33, %v790_v18  ;;  %1589 = vmatpush2.msra.mxu0 %v547_v35  ;;  %v794_v29 = vadd.f32 %v793_v59, %v3766_v25  ;;  %v640_v33 = vld [vmem:[%s3120_s22 + $0x7c0] sm:$0xff]  ;;  %v3888_v59 = vld [vmem:[#allocation2 + $0x4a8] sm:$0xf] }
 0x188   : > { %1517 = vmatmul.mubr.f32.gmra.mxu1 %v3498_v15  ;;  %v1008_v47 = vpop.f32.mrf.mxu1  ;;  %1778 = vmatprep.subr.mxu1 %v4610_v45  ;;  %v795_v12 = vpop.f32.mrf.mxu0 }
 0x189   : > { %4612 = vst [vmem:[#allocation26_spill] sm:$0xff] %v3872_v2  ;;  %1329 = vmatprep.mubr.f32.mxu0 %v3868_v11  ;;  %1590 = vmatprep.subr.mxu0 %v4610_v45  ;;  %v3882_v18 = vadd.f32 %v1008_v47, %v794_v29  ;;  %v796_v15 = vadd.f32 %v795_v12, %v3772_v42  ;;  %v541_v2 = vld [vmem:[%s3120_s22 + $0x4a8] sm:$0xff]  ;;  %v3896_v29 = vld [vmem:[#allocation2 + $0x4a0] sm:$0xf] }
 0x18a   : > { %1779 = vmatpush2.msra.mxu1 %v643_v37  ;;  %v1010_v35 = vpop.f32.mrf.mxu1  ;;  %1330 = vmatmul.mubr.f32.gmra.mxu0 %v3875_v20  ;;  %4615 = vst [vmem:[#allocation29_spill] sm:$0xff] %v3896_v29  ;;  %v538_v12 = vld [vmem:[%s3120_s22 + $0x490] sm:$0xff] }
 0x18b   : > { %4613 = vst [vmem:[#allocation27_spill] sm:$0xff] %v3882_v18  ;;  %1521 = vmatprep.mubr.f32.mxu1 %v3506_v36  ;;  %1591 = vmatpush2.msra.mxu0 %v544_v10  ;;  %v3892_v57 = vadd.f32 %v1010_v35, %v796_v15  ;;  %v799_v37 = vpop.f32.mrf.mxu0 }
 0x18c   : > { %1522 = vmatmul.mubr.f32.gmra.mxu1 %v3510_v43  ;;  %1780 = vmatprep.subr.mxu1 %v4610_v45  ;;  %v800_v36 = vadd.f32 %v799_v37, %v3766_v25  ;;  %v1014_v47 = vpop.f32.mrf.mxu1  ;;  %v637_v43 = vld [vmem:[%s3120_s22 + $0x7a8] sm:$0xff] }
 0x18d   : > { %4614 = vst [vmem:[#allocation28_spill] sm:$0xff] %v3892_v57  ;;  %1592 = vmatprep.subr.mxu0 %v4610_v45  ;;  %1781 = vmatpush2.msra.mxu1 %v640_v33  ;;  %v801_v10 = vpop.f32.mrf.mxu0  ;;  %v634_v33 = vld [vmem:[%s3120_s22 + $0x790] sm:$0xff] }
 0x18e   : > { %1335 = vmatprep.mubr.f32.mxu0 %v3888_v59  ;;  %1593 = vmatpush2.msra.mxu0 %v541_v2  ;;  %v3903_v15 = vadd.f32 %v1014_v47, %v800_v36  ;;  %v802_v35 = vadd.f32 %v801_v10, %v3772_v42  ;;  %v1016_v57 = vpop.f32.mrf.mxu1  ;;  %v2721_v10 = vld [vmem:[#allocation2 + $0x18] sm:$0xff] }
 0x18f   : > { %1526 = vmatprep.mubr.f32.mxu1 %v3518_v3  ;;  %1336 = vmatmul.mubr.f32.gmra.mxu0 %v3896_v29  ;;  %v805_v37 = vpop.f32.mrf.mxu0 }
 0x190   : > { %4616 = vst [vmem:[#allocation30_spill] sm:$0xff] %v3903_v15  ;;  %1782 = vmatprep.subr.mxu1 %v4610_v45  ;;  %1527 = vmatmul.mubr.f32.gmra.mxu1 %v3522_v19  ;;  %v3911_v2 = vadd.f32 %v1016_v57, %v802_v35  ;;  %v806_v3 = vadd.f32 %v805_v37, %v3766_v25  ;;  %v2722_v19 = vld [vmem:[#allocation2 + $0x10] sm:$0xff]  ;;  %v2723_v35 = vld [vmem:[#allocation2 + $0x48] sm:$0xff] }
 0x191   : > { %1594 = vmatprep.subr.mxu0 %v4610_v45  ;;  %1783 = vmatpush2.msra.mxu1 %v637_v43  ;;  %v1020_v36 = vpop.f32.mrf.mxu1  ;;  %v807_v47 = vpop.f32.mrf.mxu0 }
 0x192   : > { %1595 = vmatpush2.msra.mxu0 %v538_v12  ;;  %1596 = vmatprep.mubr.f32.mxu0 %v2721_v10  ;;  %v3915_v15 = vadd.f32 %v1020_v36, %v806_v3  ;;  %v808_v18 = vadd.f32 %v807_v47, %v3772_v42  ;;  %v2724_v36 = vld [vmem:[#allocation2 + $0x40] sm:$0xff] }
 0x193   : > { %1784 = vmatprep.subr.mxu1 %v4610_v45  ;;  %1597 = vmatmul.mubr.f32.vlgmr.msra.gmra.mxu0 %v2722_v19  ;;  %v1022_v29 = vpop.f32.mrf.mxu1  ;;  %v811_v57 = vpop.f32.mrf.mxu0  ;;  %v2726_v19 = vld [vmem:[#allocation2 + $0x70] sm:$0xff] }
 0x194   : > { %1785 = vmatpush2.msra.mxu1 %v634_v33  ;;  %1786 = vmatprep.mubr.f32.mxu1 %v3530_v39  ;;  %v3919_v43 = vadd.f32 %v1022_v29, %v808_v18  ;;  %v812_v12 = vadd.f32 %v811_v57, %v3766_v25  ;;  %v2725_v39 = vld [vmem:[#allocation2 + $0x78] sm:$0xff] }
 0x195   : > { %1601 = vmatprep.mubr.f32.mxu0 %v2723_v35  ;;  %1787 = vmatmul.mubr.f32.vlgmr.msra.gmra.mxu1 %v3532_v40  ;;  %v813_v37 = vpop.f32.mrf.mxu0 }
 0x196   : > { %v1026_v45 = vpop.f32.mrf.mxu1  ;;  %1791 = vmatprep.mubr.f32.mxu1 %v3539_v52  ;;  %v814_v33 = vadd.f32 %v813_v37, %v3772_v42 }
 0x197   : > { %v3924_v3 = vadd.f32 %v1026_v45, %v812_v12  ;;  %1602 = vmatmul.mubr.f32.gmra.mxu0 %v2724_v36  ;;  %v2727_v45 = vld [vmem:[#allocation2 + $0xa8] sm:$0xff]  ;;  %v2728_v36 = vld [vmem:[#allocation2 + $0xa0] sm:$0xff] }
 0x198   : > { %v1028_v47 = vpop.f32.mrf.mxu1  ;;  %1606 = vmatprep.mubr.f32.mxu0 %v2725_v39  ;;  %v817_v18 = vpop.f32.mrf.mxu0  ;;  %v2729_v39 = vld [vmem:[#allocation2 + $0xd8] sm:$0xff] }
 0x199   : > { %v3927_v10 = vadd.f32 %v1028_v47, %v814_v33  ;;  %1792 = vmatmul.mubr.f32.gmra.mxu1 %v3544_v62  ;;  %v818_v40 = vadd.f32 %v817_v18, %v3766_v25 }
 0x19a   : > { %v1032_v29 = vpop.f32.mrf.mxu1  ;;  %1796 = vmatprep.mubr.f32.mxu1 %v3551_v7  ;;  %v819_v52 = vpop.f32.mrf.mxu0 }
 0x19b   : > { %1607 = vmatmul.mubr.f32.gmra.mxu0 %v2726_v19  ;;  %v3932_v57 = vadd.f32 %v1032_v29, %v818_v40  ;;  %v820_v35 = vadd.f32 %v819_v52, %v3772_v42  ;;  %v2730_v19 = vld [vmem:[#allocation2 + $0xd0] sm:$0xff] }
 0x19c   : > { %v1034_v12 = vpop.f32.mrf.mxu1  ;;  %1611 = vmatprep.mubr.f32.mxu0 %v2727_v45  ;;  %v2731_v45 = vld [vmem:[#allocation2 + $0x108] sm:$0xff] }
 0x19d   : > { %1797 = vmatmul.mubr.f32.gmra.mxu1 %v3557_v0  ;;  %v3936_v37 = vadd.f32 %v1034_v12, %v820_v35  ;;  %v823_v62 = vpop.f32.mrf.mxu0 }
 0x19e   : > { %1801 = vmatprep.mubr.f32.mxu1 %v3566_v24  ;;  %v824_v33 = vadd.f32 %v823_v62, %v3766_v25  ;;  %v1038_v7 = vpop.f32.mrf.mxu1 }
 0x19f   : > { %1612 = vmatmul.mubr.f32.gmra.mxu0 %v2728_v36  ;;  %v825_v47 = vpop.f32.mrf.mxu0  ;;  %v2732_v36 = vld [vmem:[#allocation2 + $0x100] sm:$0xff] }
 0x1a0   : > { %1616 = vmatprep.mubr.f32.mxu0 %v2729_v39  ;;  %v3940_v18 = vadd.f32 %v1038_v7, %v824_v33  ;;  %v826_v40 = vadd.f32 %v825_v47, %v3772_v42  ;;  %v1040_v29 = vpop.f32.mrf.mxu1 }
 0x1a1   : > { %1802 = vmatmul.mubr.f32.gmra.mxu1 %v3572_v27  ;;  %v829_v0 = vpop.f32.mrf.mxu0 }
 0x1a2   : > { %1806 = vmatprep.mubr.f32.mxu1 %v3580_v17  ;;  %v3945_v52 = vadd.f32 %v1040_v29, %v826_v40  ;;  %v830_v24 = vadd.f32 %v829_v0, %v3766_v25  ;;  %v2733_v40 = vld [vmem:[#allocation2 + $0x138] sm:$0xff] }
 0x1a3   : > { %1617 = vmatmul.mubr.f32.gmra.mxu0 %v2730_v19  ;;  %v831_v12 = vpop.f32.mrf.mxu0 }
 0x1a4   : > { %v1044_v35 = vpop.f32.mrf.mxu1  ;;  %1621 = vmatprep.mubr.f32.mxu0 %v2731_v45  ;;  %v832_v33 = vadd.f32 %v831_v12, %v3772_v42  ;;  %v2735_v12 = vld [vmem:[#allocation2 + $0x168] sm:$0xff] }
 0x1a5   : > { %v3948_v62 = vadd.f32 %v1044_v35, %v830_v24  ;;  %1807 = vmatmul.mubr.f32.gmra.mxu1 %v3584_v46 }
 0x1a6   : > { %v1046_v27 = vpop.f32.mrf.mxu1  ;;  %1811 = vmatprep.mubr.f32.mxu1 %v3592_v54  ;;  %v835_v7 = vpop.f32.mrf.mxu0  ;;  %v2734_v54 = vld [vmem:[#allocation2 + $0x130] sm:$0xff] }
 0x1a7   : > { %v3953_v17 = vadd.f32 %v1046_v27, %v832_v33  ;;  %1622 = vmatmul.mubr.f32.gmra.mxu0 %v2732_v36  ;;  %v836_v47 = vadd.f32 %v835_v7, %v3766_v25  ;;  %v2736_v36 = vld [vmem:[#allocation2 + $0x160] sm:$0xff] }
 0x1a8   : > { %v1050_v39 = vpop.f32.mrf.mxu1  ;;  %1626 = vmatprep.mubr.f32.mxu0 %v2733_v40  ;;  %v837_v29 = vpop.f32.mrf.mxu0 }
 0x1a9   : > { %1812 = vmatmul.mubr.f32.gmra.mxu1 %v3597_v4  ;;  %v3957_v0 = vadd.f32 %v1050_v39, %v836_v47  ;;  %v838_v46 = vadd.f32 %v837_v29, %v3772_v42  ;;  %v2737_v39 = vld [vmem:[#allocation2 + $0x198] sm:$0xff] }
 0x1aa   : > { %v1052_v24 = vpop.f32.mrf.mxu1  ;;  %1816 = vmatprep.mubr.f32.mxu1 %v3606_v22 }
 0x1ab   : > { %1627 = vmatmul.mubr.f32.gmra.mxu0 %v2734_v54  ;;  %v3961_v19 = vadd.f32 %v1052_v24, %v838_v46  ;;  %v841_v35 = vpop.f32.mrf.mxu0 }
 0x1ac   : > { %1631 = vmatprep.mubr.f32.mxu0 %v2735_v12  ;;  %v842_v45 = vadd.f32 %v841_v35, %v3766_v25  ;;  %v1056_v33 = vpop.f32.mrf.mxu1  ;;  %v2738_v35 = vld [vmem:[#allocation2 + $0x190] sm:$0xff] }
 0x1ad   : > { %1817 = vmatmul.mubr.f32.gmra.mxu1 %v3612_v6  ;;  %v843_v4 = vpop.f32.mrf.mxu0 }
 0x1ae   : > { %1821 = vmatprep.mubr.f32.mxu1 %v3620_v41  ;;  %v3966_v27 = vadd.f32 %v1056_v33, %v842_v45  ;;  %v844_v7 = vadd.f32 %v843_v4, %v3772_v42  ;;  %v1058_v22 = vpop.f32.mrf.mxu1  ;;  %v2739_v45 = vld [vmem:[#allocation2 + $0x1c8] sm:$0xff] }
 0x1af   : > { %1632 = vmatmul.mubr.f32.gmra.mxu0 %v2736_v36  ;;  %v847_v47 = vpop.f32.mrf.mxu0  ;;  %v2740_v36 = vld [vmem:[#allocation2 + $0x1c0] sm:$0xff] }
 0x1b0   : > { %1636 = vmatprep.mubr.f32.mxu0 %v2737_v39  ;;  %v3969_v40 = vadd.f32 %v1058_v22, %v844_v7  ;;  %v848_v29 = vadd.f32 %v847_v47, %v3766_v25  ;;  %v1062_v46 = vpop.f32.mrf.mxu1  ;;  %v2741_v39 = vld [vmem:[#allocation2 + $0x1f8] sm:$0xff] }
 0x1b1   : > { %1822 = vmatmul.mubr.f32.gmra.mxu1 %v3624_v14  ;;  %v849_v6 = vpop.f32.mrf.mxu0 }
 0x1b2   : > { %1826 = vmatprep.mubr.f32.mxu1 %v3632_v50  ;;  %v3974_v41 = vadd.f32 %v1062_v46, %v848_v29  ;;  %v850_v24 = vadd.f32 %v849_v6, %v3772_v42  ;;  %v1064_v54 = vpop.f32.mrf.mxu1 }
 0x1b3   : > { %1637 = vmatmul.mubr.f32.gmra.mxu0 %v2738_v35  ;;  %v853_v12 = vpop.f32.mrf.mxu0 }
 0x1b4   : > { %1641 = vmatprep.mubr.f32.mxu0 %v2739_v45  ;;  %v3977_v33 = vadd.f32 %v1064_v54, %v850_v24  ;;  %v854_v4 = vadd.f32 %v853_v12, %v3766_v25  ;;  %v2742_v24 = vld [vmem:[#allocation2 + $0x1f0] sm:$0xff]  ;;  %v2743_v45 = vld [vmem:[#allocation2 + $0x228] sm:$0xff] }
 0x1b5   : > { %1827 = vmatmul.mubr.f32.gmra.mxu1 %v3635_v48  ;;  %v855_v7 = vpop.f32.mrf.mxu0 }
 0x1b6   : > { %v1068_v14 = vpop.f32.mrf.mxu1  ;;  %1831 = vmatprep.mubr.f32.mxu1 %v3644_v55  ;;  %v856_v22 = vadd.f32 %v855_v7, %v3772_v42  ;;  %v2744_v7 = vld [vmem:[#allocation2 + $0x220] sm:$0xff] }
 0x1b7   : > { %v3982_v50 = vadd.f32 %v1068_v14, %v854_v4  ;;  %1642 = vmatmul.mubr.f32.gmra.mxu0 %v2740_v36  ;;  %v2745_v36 = vld [vmem:[#allocation2 + $0x258] sm:$0xff] }
 0x1b8   : > { %v1070_v47 = vpop.f32.mrf.mxu1  ;;  %1646 = vmatprep.mubr.f32.mxu0 %v2741_v39  ;;  %v859_v46 = vpop.f32.mrf.mxu0 }
 0x1b9   : > { %v3985_v29 = vadd.f32 %v1070_v47, %v856_v22  ;;  %1832 = vmatmul.mubr.f32.gmra.mxu1 %v3649_v61  ;;  %v860_v48 = vadd.f32 %v859_v46, %v3766_v25 }
 0x1ba   : > { %v1074_v6 = vpop.f32.mrf.mxu1  ;;  %1836 = vmatprep.mubr.f32.mxu1 %v3658_v32  ;;  %v861_v55 = vpop.f32.mrf.mxu0 }
 0x1bb   : > { %1647 = vmatmul.mubr.f32.gmra.mxu0 %v2742_v24  ;;  %v3990_v54 = vadd.f32 %v1074_v6, %v860_v48  ;;  %v862_v35 = vadd.f32 %v861_v55, %v3772_v42  ;;  %v2746_v6 = vld [vmem:[#allocation2 + $0x250] sm:$0xff] }
 0x1bc   : > { %v1076_v12 = vpop.f32.mrf.mxu1  ;;  %1651 = vmatprep.mubr.f32.mxu0 %v2743_v45 }
 0x1bd   : > { %1837 = vmatmul.mubr.f32.gmra.mxu1 %v3664_v38  ;;  %v3994_v4 = vadd.f32 %v1076_v12, %v862_v35  ;;  %v865_v61 = vpop.f32.mrf.mxu0  ;;  %v2747_v35 = vld [vmem:[#allocation2 + $0x288] sm:$0xff] }
 0x1be   : > { %1841 = vmatprep.mubr.f32.mxu1 %v3672_v13  ;;  %v866_v14 = vadd.f32 %v865_v61, %v3766_v25  ;;  %v1080_v32 = vpop.f32.mrf.mxu1 }
 0x1bf   : > { %1652 = vmatmul.mubr.f32.gmra.mxu0 %v2744_v7  ;;  %v867_v22 = vpop.f32.mrf.mxu0 }
 0x1c0   : > { %1656 = vmatprep.mubr.f32.mxu0 %v2745_v36  ;;  %v3998_v47 = vadd.f32 %v1080_v32, %v866_v14  ;;  %v868_v39 = vadd.f32 %v867_v22, %v3772_v42  ;;  %v1082_v46 = vpop.f32.mrf.mxu1  ;;  %v2748_v14 = vld [vmem:[#allocation2 + $0x280] sm:$0xff]  ;;  %v2749_v22 = vld [vmem:[#allocation2 + $0x2b8] sm:$0xff] }
 0x1c1   : > { %1842 = vmatmul.mubr.f32.gmra.mxu1 %v3676_v30  ;;  %v871_v38 = vpop.f32.mrf.mxu0 }
 0x1c2   : > { %1846 = vmatprep.mubr.f32.mxu1 %v3684_v23  ;;  %v4003_v48 = vadd.f32 %v1082_v46, %v868_v39  ;;  %v872_v13 = vadd.f32 %v871_v38, %v3766_v25  ;;  %v2750_v38 = vld [vmem:[#allocation2 + $0x2b0] sm:$0xff] }
 0x1c3   : > { %1657 = vmatmul.mubr.f32.gmra.mxu0 %v2746_v6  ;;  %v873_v24 = vpop.f32.mrf.mxu0 }
 0x1c4   : > { %v1086_v55 = vpop.f32.mrf.mxu1  ;;  %1661 = vmatprep.mubr.f32.mxu0 %v2747_v35  ;;  %v874_v45 = vadd.f32 %v873_v24, %v3772_v42  ;;  %v2751_v24 = vld [vmem:[#allocation2 + $0x2e8] sm:$0xff] }
 0x1c5   : > { %v4006_v12 = vadd.f32 %v1086_v55, %v872_v13  ;;  %1847 = vmatmul.mubr.f32.gmra.mxu1 %v3689_v26 }
 0x1c6   : > { %v1088_v30 = vpop.f32.mrf.mxu1  ;;  %1851 = vmatprep.mubr.f32.mxu1 %v3698_v31  ;;  %v877_v61 = vpop.f32.mrf.mxu0 }
 0x1c7   : > { %v4011_v23 = vadd.f32 %v1088_v30, %v874_v45  ;;  %1662 = vmatmul.mubr.f32.gmra.mxu0 %v2748_v14  ;;  %v878_v32 = vadd.f32 %v877_v61, %v3766_v25 }
 0x1c8   : > { %v1092_v7 = vpop.f32.mrf.mxu1  ;;  %1666 = vmatprep.mubr.f32.mxu0 %v2749_v22  ;;  %v879_v36 = vpop.f32.mrf.mxu0 }
 0x1c9   : > { %1852 = vmatmul.mubr.f32.gmra.mxu1 %v3704_v63  ;;  %v4015_v39 = vadd.f32 %v1092_v7, %v878_v32  ;;  %v880_v26 = vadd.f32 %v879_v36, %v3772_v42  ;;  %v2753_v32 = vld [vmem:[#allocation2 + $0x318] sm:$0xff] }
 0x1ca   : > { %v1094_v46 = vpop.f32.mrf.mxu1  ;;  %1856 = vmatprep.mubr.f32.mxu1 %v3709_v1  ;;  %v883_v31 = vpop.f32.mrf.mxu0  ;;  %v2752_v1 = vld [vmem:[#allocation2 + $0x2e0] sm:$0xff] }
 0x1cb   : > { %1667 = vmatmul.mubr.f32.gmra.mxu0 %v2750_v38  ;;  %v4019_v13 = vadd.f32 %v1094_v46, %v880_v26  ;;  %v884_v6 = vadd.f32 %v883_v31, %v3766_v25  ;;  %v2754_v46 = vld [vmem:[#allocation2 + $0x310] sm:$0xff]  ;;  %v2755_v38 = vld [vmem:[#allocation2 + $0x348] sm:$0xff] }
 0x1cc   : > { %v1098_v55 = vpop.f32.mrf.mxu1  ;;  %1671 = vmatprep.mubr.f32.mxu0 %v2751_v24  ;;  %v885_v35 = vpop.f32.mrf.mxu0 }
 0x1cd   : > { %1857 = vmatmul.mubr.f32.gmra.mxu1 %v3716_v9  ;;  %v4023_v63 = vadd.f32 %v1098_v55, %v884_v6  ;;  %v886_v45 = vadd.f32 %v885_v35, %v3772_v42  ;;  %v4617_v35 = vld [vmem:[#allocation14_spill] sm:$0xff] }
 0x1ce   : > { %v1100_v30 = vpop.f32.mrf.mxu1  ;;  %1861 = vmatprep.mubr.f32.mxu1 %v3724_v58 }
 0x1cf   : > { %1672 = vmatmul.mubr.f32.gmra.mxu0 %v2752_v1  ;;  %v4027_v61 = vadd.f32 %v1100_v30, %v886_v45  ;;  %v889_v14 = vpop.f32.mrf.mxu0  ;;  %v2756_v30 = vld [vmem:[#allocation2 + $0x340] sm:$0xff] }
 0x1d0   : > { %1676 = vmatprep.mubr.f32.mxu0 %v2753_v32  ;;  %v890_v7 = vadd.f32 %v889_v14, %v3766_v25  ;;  %v1104_v22 = vpop.f32.mrf.mxu1  ;;  %v2757_v14 = vld [vmem:[#allocation2 + $0x378] sm:$0xff] }
 0x1d1   : > { %1862 = vmatmul.mubr.f32.gmra.mxu1 %v3728_v21  ;;  %v891_v9 = vpop.f32.mrf.mxu0 }
 0x1d2   : > { %1866 = vmatprep.mubr.f32.mxu1 %v3739_v5  ;;  %v4032_v36 = vadd.f32 %v1104_v22, %v890_v7  ;;  %v892_v26 = vadd.f32 %v891_v9, %v3772_v42  ;;  %v1106_v58 = vpop.f32.mrf.mxu1  ;;  %v4618_v22 = vld [vmem:[#allocation15_spill] sm:$0xff] }
 0x1d3   : > { %1677 = vmatmul.mubr.f32.gmra.mxu0 %v2754_v46  ;;  %v895_v31 = vpop.f32.mrf.mxu0  ;;  %v2758_v46 = vld [vmem:[#allocation2 + $0x370] sm:$0xff] }
 0x1d4   : > { %1681 = vmatprep.mubr.f32.mxu0 %v2755_v38  ;;  %v4035_v6 = vadd.f32 %v1106_v58, %v892_v26  ;;  %v896_v55 = vadd.f32 %v895_v31, %v3766_v25  ;;  %v4619_v26 = vld [vmem:[#allocation16_spill] sm:$0xff] }
 0x1d5   : > { %1867 = vmatmul.mubr.f32.gmra.mxu1 %v3744_v34  ;;  %v897_v24 = vpop.f32.mrf.mxu0 }
 0x1d6   : > { %v1110_v21 = vpop.f32.mrf.mxu1  ;;  %1871 = vmatprep.mubr.f32.mxu1 %v4617_v35  ;;  %v898_v45 = vadd.f32 %v897_v24, %v3772_v42  ;;  %v4620_v24 = vld [vmem:[#allocation17_spill] sm:$0xff] }
 0x1d7   : > { %v4040_v5 = vadd.f32 %v1110_v21, %v896_v55  ;;  %1682 = vmatmul.mubr.f32.gmra.mxu0 %v2756_v30  ;;  %v2759_v21 = vld [vmem:[#allocation2 + $0x3a8] sm:$0xff] }
 0x1d8   : > { %v1112_v1 = vpop.f32.mrf.mxu1  ;;  %1686 = vmatprep.mubr.f32.mxu0 %v2757_v14  ;;  %v901_v7 = vpop.f32.mrf.mxu0  ;;  %v2760_v14 = vld [vmem:[#allocation2 + $0x3a0] sm:$0xff] }
 0x1d9   : > { %v4043_v32 = vadd.f32 %v1112_v1, %v898_v45  ;;  %1872 = vmatmul.mubr.f32.gmra.mxu1 %v4618_v22  ;;  %v902_v34 = vadd.f32 %v901_v7, %v3766_v25  ;;  %v2761_v22 = vld [vmem:[#allocation2 + $0x3d8] sm:$0xff] }
 0x1da   : > { %v1116_v9 = vpop.f32.mrf.mxu1  ;;  %1876 = vmatprep.mubr.f32.mxu1 %v4619_v26  ;;  %v903_v58 = vpop.f32.mrf.mxu0 }
 0x1db   : > { %1687 = vmatmul.mubr.f32.gmra.mxu0 %v2758_v46  ;;  %v4048_v31 = vadd.f32 %v1116_v9, %v902_v34  ;;  %v904_v38 = vadd.f32 %v903_v58, %v3772_v42 }
 0x1dc   : > { %v1118_v55 = vpop.f32.mrf.mxu1  ;;  %1691 = vmatprep.mubr.f32.mxu0 %v2759_v21 }
 0x1dd   : > { %1877 = vmatmul.mubr.f32.gmra.mxu1 %v4620_v24  ;;  %v4052_v35 = vadd.f32 %v1118_v55, %v904_v38  ;;  %v907_v45 = vpop.f32.mrf.mxu0  ;;  %v2762_v38 = vld [vmem:[#allocation2 + $0x3d0] sm:$0xff]  ;;  %v2763_v24 = vld [vmem:[#allocation2 + $0x408] sm:$0xff] }
 0x1de   : > { %1881 = vmatprep.mubr.f32.mxu1 %v3792_v28  ;;  %v908_v30 = vadd.f32 %v907_v45, %v3766_v25  ;;  %v1122_v1 = vpop.f32.mrf.mxu1  ;;  %v4621_v28 = vld [vmem:[#allocation18_spill] sm:$0xff] }
 0x1df   : > { %1692 = vmatmul.mubr.f32.gmra.mxu0 %v2760_v14  ;;  %v909_v7 = vpop.f32.mrf.mxu0 }
 0x1e0   : > { %1696 = vmatprep.mubr.f32.mxu0 %v2761_v22  ;;  %v4056_v34 = vadd.f32 %v1122_v1, %v908_v30  ;;  %v910_v9 = vadd.f32 %v909_v7, %v3772_v42  ;;  %v1124_v26 = vpop.f32.mrf.mxu1  ;;  %v4622_v1 = vld [vmem:[#allocation19_spill] sm:$0xff]  ;;  %v2764_v7 = vld [vmem:[#allocation2 + $0x400] sm:$0xff] }
 0x1e1   : > { %1882 = vmatmul.mubr.f32.gmra.mxu1 %v3800_v8  ;;  %v1193_v58 = vpop.f32.mrf.mxu0 }
 0x1e2   : > { %1886 = vmatprep.mubr.f32.mxu1 %v3809_v60  ;;  %v4061_v46 = vadd.f32 %v1124_v26, %v910_v9  ;;  %v4064_v25 = vadd.f32 %v1193_v58, %v4621_v28  ;;  %v2765_v26 = vld [vmem:[#allocation2 + $0x438] sm:$0xff] }
 0x1e3   : > { %1697 = vmatmul.mubr.f32.gmra.mxu0 %v2762_v38  ;;  %v4066_v55 = vpop.f32.mrf.mxu1  ;;  %v1195_v21 = vpop.f32.mrf.mxu0  ;;  %v4624_v58 = vld [vmem:[#allocation20_spill] sm:$0xff] }
 0x1e4   : > { %1701 = vmatprep.mubr.f32.mxu0 %v2763_v24  ;;  %v1987_v42 = vmul.f32 0.70710677, %v4064_v25  ;;  %v4070_v45 = vadd.f32 %v1195_v21, %v3796_v53  ;;  %v2766_v21 = vld [vmem:[#allocation2 + $0x430] sm:$0xff] }
 0x1e5   : > { %1887 = vmatmul.mubr.f32.gmra.mxu1 %v3817_v44  ;;  %v1410_v8 = vpop.f32.mrf.mxu1  ;;  %v4623_v44 = vld [vmem:[#allocation23_spill] sm:$0xff] }
 0x1e6   : > { %v1199_v60 = vpop.f32.mrf.mxu0  ;;  %1891 = vmatprep.mubr.f32.mxu1 %v3830_v16  ;;  %2571 = verf.f32 %v1987_v42  ;;  %v1988_v30 = vmul.f32 0.70710677, %v4070_v45  ;;  %v4625_v42 = vld [vmem:[#allocation21_spill] sm:$0xff] }
 0x1e7   : > { %v4076_v14 = vadd.f32 %v1199_v60, %v4622_v1  ;;  %1702 = vmatmul.mubr.f32.gmra.mxu0 %v2764_v7  ;;  %v4078_v22 = vpop.f32.mrf.mxu1  ;;  %v4627_v7 = vld [vmem:[#allocation22_spill] sm:$0xff] }
 0x1e8   : > { %v1201_v9 = vpop.f32.mrf.mxu0  ;;  %1706 = vmatprep.mubr.f32.mxu0 %v2765_v26  ;;  %2573 = verf.f32 %v1988_v30  ;;  %v2767_v30 = vld [vmem:[#allocation2 + $0x468] sm:$0xff] }
 0x1e9   : > { %v1990_v53 = vmul.f32 0.70710677, %v4076_v14  ;;  %1892 = vmatmul.mubr.f32.gmra.mxu1 %v4623_v44  ;;  %v4083_v16 = vadd.f32 %v1201_v9, %v4624_v58  ;;  %v1415_v28 = vpop.f32.mrf.mxu1 }
 0x1ea   : > { %1896 = vmatprep.mubr.f32.mxu1 %v3850_v56  ;;  %v1205_v38 = vpop.f32.mrf.mxu0  ;;  %v2769_v28 = vld [vmem:[#allocation2 + $0x498] sm:$0xf] }
 0x1eb   : > { %2575 = verf.f32 %v1990_v53  ;;  %1707 = vmatmul.mubr.f32.gmra.mxu0 %v2766_v21  ;;  %v1991_v24 = vmul.f32 0.70710677, %v4083_v16  ;;  %v4088_v8 = vadd.f32 %v1205_v38, %v4625_v42  ;;  %v2768_v53 = vld [vmem:[#allocation2 + $0x460] sm:$0xff] }
 0x1ec   : > { %v4090_v60 = vpop.f32.mrf.mxu1  ;;  %1711 = vmatprep.mubr.f32.mxu0 %v2767_v30  ;;  %v1207_v1 = vpop.f32.mrf.mxu0  ;;  %v4628_v38 = vld [vmem:[#allocation24_spill] sm:$0xff] }
 0x1ed   : > { %4626 = vst [vmem:[#allocation14_spill] sm:$0xff] %v4090_v60  ;;  %1897 = vmatmul.mubr.f32.gmra.mxu1 %v3854_v51  ;;  %2577 = verf.f32 %v1991_v24  ;;  %v1993_v56 = vmul.f32 0.70710677, %v4088_v8  ;;  %v4095_v9 = vadd.f32 %v1207_v1, %v4627_v7 }
 0x1ee   : > { %v1420_v26 = vpop.f32.mrf.mxu1  ;;  %1901 = vmatprep.mubr.f32.mxu1 %v3868_v11 }
 0x1ef   : > { %1712 = vmatmul.mubr.f32.gmra.mxu0 %v2768_v53  ;;  %2579 = verf.f32 %v1993_v56  ;;  %v1994_v44 = vmul.f32 0.70710677, %v4095_v9  ;;  %v1211_v58 = vpop.f32.mrf.mxu0  ;;  %v2770_v56 = vld [vmem:[#allocation2 + $0x490] sm:$0xf]  ;;  %v1912_v26 = vmul.f32 0.5, %v4064_v25 }
 0x1f0   : > { %1716 = vmatprep.mubr.f32.mxu0 %v2769_v28  ;;  %v4100_v21 = vadd.f32 %v1211_v58, %v4628_v38  ;;  %v4102_v51 = vpop.f32.mrf.mxu1  ;;  %v4630_v58 = vld [vmem:[#allocation29_spill] sm:$0xff] }
 0x1f1   : > { %4629 = vst [vmem:[#allocation15_spill] sm:$0xff] %v4102_v51  ;;  %1902 = vmatmul.mubr.f32.gmra.mxu1 %v3875_v20  ;;  %2581 = verf.f32 %v1994_v44  ;;  %v1213_v24 = vpop.f32.mrf.mxu0 }
 0x1f2   : > { %1906 = vmatprep.mubr.f32.mxu1 %v3888_v59  ;;  %v1996_v11 = vmul.f32 0.70710677, %v4100_v21  ;;  %v4109_v42 = vadd.f32 %v1213_v24, %v3856_v49  ;;  %v1425_v30 = vpop.f32.mrf.mxu1  ;;  %v4631_v59 = vld [vmem:[#allocation25_spill] sm:$0xff] }
 0x1f3   : > { %v2572_v1 = vpop.eup %2571  ;;  %1717 = vmatmul.mubr.f32.gmra.mxu0 %v2770_v56  ;;  %v1217_v7 = vpop.f32.mrf.mxu0  ;;  %v1913_v30 = vmul.f32 0.5, %v4070_v45 }
 0x1f4   : > { %v2137_v53 = vadd.f32 1.0, %v2572_v1  ;;  %2583 = verf.f32 %v1996_v11  ;;  %v1997_v20 = vmul.f32 0.70710677, %v4109_v42  ;;  %v4115_v28 = vadd.f32 %v1217_v7, %v4631_v59  ;;  %v4633_v11 = vld [vmem:[#allocation26_spill] sm:$0xff] }
 0x1f5   : > { %v2574_v44 = vpop.eup %2573  ;;  %1907 = vmatmul.mubr.f32.gmra.mxu1 %v4630_v58  ;;  %v1219_v49 = vpop.f32.mrf.mxu0  ;;  %v1915_v58 = vmul.f32 0.5, %v4076_v14 }
 0x1f6   : > { %v4117_v38 = vpop.f32.mrf.mxu1  ;;  %v2212_v24 = vmul.f32 %v2137_v53, %v1912_v26  ;;  %v2138_v56 = vadd.f32 1.0, %v2574_v44  ;;  %2585 = verf.f32 %v1997_v20  ;;  %v1999_v25 = vmul.f32 0.70710677, %v4115_v28  ;;  %v4634_v20 = vld [vmem:[#allocation27_spill] sm:$0xff] }
 0x1f7   : > { %4632 = vst [vmem:[#allocation16_spill] sm:$0xff] %v4117_v38  ;;  %v4122_v1 = vadd.f32 %v1219_v49, %v4633_v11 }
 0x1f8   : > { %v2576_v51 = vpop.eup %2575  ;;  %v1430_v60 = vpop.f32.mrf.mxu1  ;;  %2287 = vst [vmem:[%s4124_s17] sm:$0xff] %v2212_v24  ;;  %v2213_v7 = vmul.f32 %v2138_v56, %v1913_v30  ;;  %2587 = verf.f32 %v1999_v25  ;;  %v1916_v24 = vmul.f32 0.5, %v4083_v16  ;;  %v4636_v25 = vld [vmem:[#allocation28_spill] sm:$0xff] }
 0x1f9   : > { %v2140_v26 = vadd.f32 1.0, %v2576_v51  ;;  %v1223_v45 = vpop.f32.mrf.mxu0  ;;  %v2000_v53 = vmul.f32 0.70710677, %v4122_v1 }
 0x1fa   : > { %v4130_v44 = vadd.f32 %v1223_v45, %v4634_v20  ;;  %v4132_v59 = vpop.f32.mrf.mxu1  ;;  %v2578_v60 = vpop.eup %2577  ;;  %2288 = vst [vmem:[%s4124_s17 + $0x8] sm:$0xff] %v2213_v7  ;;  %v1918_v20 = vmul.f32 0.5, %v4088_v8 }
 0x1fb   : > { %4635 = vst [vmem:[#allocation17_spill] sm:$0xff] %v4132_v59  ;;  %v2215_v49 = vmul.f32 %v2140_v26, %v1915_v58  ;;  %v1225_v11 = vpop.f32.mrf.mxu0  ;;  %v2141_v30 = vadd.f32 1.0, %v2578_v60  ;;  %2589 = verf.f32 %v2000_v53  ;;  %v4637_v26 = vld [vmem:[#allocation30_spill] sm:$0xff] }
 0x1fc   : > { %v2002_v14 = vmul.f32 0.70710677, %v4130_v44  ;;  %v1435_v51 = vpop.f32.mrf.mxu1  ;;  %v2580_v56 = vpop.eup %2579  ;;  %v4139_v38 = vadd.f32 %v1225_v11, %v4636_v25  ;;  %v1919_v11 = vmul.f32 0.5, %v4095_v9 }
 0x1fd   : > { %2290 = vst [vmem:[%s4124_s17 + $0x18] sm:$0xff] %v2215_v49  ;;  %v2216_v45 = vmul.f32 %v2141_v30, %v1916_v24  ;;  %v2143_v59 = vadd.f32 1.0, %v2580_v56  ;;  %v1229_v7 = vpop.f32.mrf.mxu0 }
 0x1fe   : > { %2591 = verf.f32 %v2002_v14  ;;  %v2582_v58 = vpop.eup %2581  ;;  %v2003_v16 = vmul.f32 0.70710677, %v4139_v38  ;;  %v4144_v53 = vadd.f32 %v1229_v7, %v4637_v26  ;;  %v4146_v60 = vpop.f32.mrf.mxu1  ;;  %v1921_v26 = vmul.f32 0.5, %v4100_v21 }
 0x1ff   : > { %2291 = vst [vmem:[%s4124_s17 + $0x20] sm:$0xff] %v2216_v45  ;;  %v2218_v49 = vmul.f32 %v2143_v59, %v1918_v20  ;;  %v2144_v24 = vadd.f32 1.0, %v2582_v58  ;;  %v1231_v30 = vpop.f32.mrf.mxu0 }
 0x200   : > { %2593 = verf.f32 %v2003_v16  ;;  %v2005_v8 = vmul.f32 0.70710677, %v4144_v53  ;;  %v4152_v14 = vadd.f32 %v1231_v30, %v3911_v2  ;;  %v1440_v51 = vpop.f32.mrf.mxu1 }
 0x201   : > { %v2584_v56 = vpop.eup %2583  ;;  %2293 = vst [vmem:[%s4124_s17 + $0x30] sm:$0xff] %v2218_v49  ;;  %v2219_v25 = vmul.f32 %v2144_v24, %v1919_v11  ;;  %v1235_v7 = vpop.f32.mrf.mxu0  ;;  %v1922_v49 = vmul.f32 0.5, %v4109_v42 }
 0x202   : > { %v2146_v45 = vadd.f32 1.0, %v2584_v56  ;;  %2595 = verf.f32 %v2005_v8  ;;  %v2006_v9 = vmul.f32 0.70710677, %v4152_v14  ;;  %v4159_v20 = vadd.f32 %v1235_v7, %v3915_v15 }
 0x203   : > { %v2586_v59 = vpop.eup %2585  ;;  %2294 = vst [vmem:[%s4124_s17 + $0x38] sm:$0xff] %v2219_v25  ;;  %v4161_v58 = vpop.f32.mrf.mxu1  ;;  %v1924_v25 = vmul.f32 0.5, %v4115_v28 }
 0x204   : > { %v1237_v2 = vpop.f32.mrf.mxu0  ;;  %v2221_v16 = vmul.f32 %v2146_v45, %v1921_v26  ;;  %v2147_v11 = vadd.f32 1.0, %v2586_v59  ;;  %2597 = verf.f32 %v2006_v9  ;;  %v2008_v21 = vmul.f32 0.70710677, %v4159_v20 }
 0x205   : > { %v4166_v24 = vadd.f32 %v1237_v2, %v3919_v43  ;;  %v1445_v30 = vpop.f32.mrf.mxu1  ;;  %v2588_v51 = vpop.eup %2587 }
 0x206   : > { %v1241_v8 = vpop.f32.mrf.mxu0  ;;  %2296 = vst [vmem:[%s4124_s17 + $0x48] sm:$0xff] %v2221_v16  ;;  %v2222_v15 = vmul.f32 %v2147_v11, %v1922_v49  ;;  %v2149_v7 = vadd.f32 1.0, %v2588_v51  ;;  %2599 = verf.f32 %v2008_v21 }
 0x207   : > { %v4170_v56 = vadd.f32 %v1241_v8, %v3924_v3  ;;  %v2009_v42 = vmul.f32 0.70710677, %v4166_v24  ;;  %v1925_v3 = vmul.f32 0.5, %v4122_v1  ;;  %v1927_v8 = vmul.f32 0.5, %v4130_v44 }
 0x208   : > { %v4174_v26 = vpop.f32.mrf.mxu1  ;;  %v1243_v45 = vpop.f32.mrf.mxu0  ;;  %2297 = vst [vmem:[%s4124_s17 + $0x50] sm:$0xff] %v2222_v15  ;;  %v2224_v2 = vmul.f32 %v2149_v7, %v1924_v25  ;;  %v1928_v44 = vmul.f32 0.5, %v4139_v38 }
 0x209   : > { %v2590_v43 = vpop.eup %2589  ;;  %v2011_v9 = vmul.f32 0.70710677, %v4170_v56  ;;  %v4179_v59 = vadd.f32 %v1243_v45, %v3927_v10  ;;  %2601 = verf.f32 %v2009_v42 }
 0x20a   : > { %v2150_v16 = vadd.f32 1.0, %v2590_v43  ;;  %v1450_v28 = vpop.f32.mrf.mxu1  ;;  %v1247_v21 = vpop.f32.mrf.mxu0  ;;  %2299 = vst [vmem:[%s4124_s17 + $0x60] sm:$0xff] %v2224_v2 }
 0x20b   : > { %v2592_v49 = vpop.eup %2591  ;;  %2603 = verf.f32 %v2011_v9  ;;  %v2012_v11 = vmul.f32 0.70710677, %v4179_v59  ;;  %v4186_v10 = vadd.f32 %v1247_v21, %v3932_v57  ;;  %v1930_v28 = vmul.f32 0.5, %v4144_v53 }
 0x20c   : > { %v2225_v30 = vmul.f32 %v2150_v16, %v1925_v3  ;;  %v2152_v51 = vadd.f32 1.0, %v2592_v49  ;;  %v4188_v15 = vpop.f32.mrf.mxu1  ;;  %v1249_v1 = vpop.f32.mrf.mxu0 }
 0x20d   : > { %2605 = verf.f32 %v2012_v11  ;;  %v2594_v25 = vpop.eup %2593  ;;  %v2014_v42 = vmul.f32 0.70710677, %v4186_v10  ;;  %v4193_v45 = vadd.f32 %v1249_v1, %v3936_v37 }
 0x20e   : > { %2300 = vst [vmem:[%s4124_s17 + $0x68] sm:$0xff] %v2225_v30  ;;  %v2227_v7 = vmul.f32 %v2152_v51, %v1927_v8  ;;  %v1455_v43 = vpop.f32.mrf.mxu1  ;;  %v2153_v9 = vadd.f32 1.0, %v2594_v25  ;;  %v1931_v8 = vmul.f32 0.5, %v4152_v14 }
 0x20f   : > { %v2596_v2 = vpop.eup %2595  ;;  %2607 = verf.f32 %v2014_v42  ;;  %v2015_v57 = vmul.f32 0.70710677, %v4193_v45  ;;  %v1253_v3 = vpop.f32.mrf.mxu0 }
 0x210   : > { %2302 = vst [vmem:[%s4124_s17 + $0x78] sm:$0xff] %v2227_v7  ;;  %v2228_v16 = vmul.f32 %v2153_v9, %v1928_v44  ;;  %v2155_v49 = vadd.f32 1.0, %v2596_v2  ;;  %v4200_v11 = vadd.f32 %v1253_v3, %v3940_v18  ;;  %v4202_v37 = vpop.f32.mrf.mxu1  ;;  %v1933_v44 = vmul.f32 0.5, %v4159_v20 }
 0x211   : > { %v2598_v21 = vpop.eup %2597  ;;  %2609 = verf.f32 %v2015_v57  ;;  %v1255_v38 = vpop.f32.mrf.mxu0 }
 0x212   : > { %2303 = vst [vmem:[%s4124_s17 + $0x80] sm:$0xff] %v2228_v16  ;;  %v2230_v30 = vmul.f32 %v2155_v49, %v1930_v28  ;;  %v2156_v51 = vadd.f32 1.0, %v2598_v21  ;;  %v2017_v1 = vmul.f32 0.70710677, %v4200_v11  ;;  %v1460_v25 = vpop.f32.mrf.mxu1  ;;  %v4208_v53 = vadd.f32 %v1255_v38, %v3945_v52 }
 0x213   : > { %v1259_v7 = vpop.f32.mrf.mxu0  ;;  %v2600_v18 = vpop.eup %2599  ;;  %v1936_v38 = vmul.f32 0.5, %v4170_v56 }
 0x214   : > { %2305 = vst [vmem:[%s4124_s17 + $0x90] sm:$0xff] %v2230_v30  ;;  %v2231_v42 = vmul.f32 %v2156_v51, %v1931_v8  ;;  %2611 = verf.f32 %v2017_v1  ;;  %v4212_v43 = vadd.f32 %v1259_v7, %v3948_v62  ;;  %v2158_v9 = vadd.f32 1.0, %v2600_v18 }
 0x215   : > { %v2018_v14 = vmul.f32 0.70710677, %v4208_v53  ;;  %v1261_v57 = vpop.f32.mrf.mxu0  ;;  %v1934_v62 = vmul.f32 0.5, %v4166_v24  ;;  %v1937_v18 = vmul.f32 0.5, %v4179_v59 }
 0x216   : > { %v4216_v2 = vpop.f32.mrf.mxu1  ;;  %v2602_v3 = vpop.eup %2601  ;;  %2306 = vst [vmem:[%s4124_s17 + $0x98] sm:$0xff] %v2231_v42  ;;  %v2020_v52 = vmul.f32 0.70710677, %v4212_v43  ;;  %v4221_v16 = vadd.f32 %v1261_v57, %v3953_v17  ;;  %v2233_v49 = vmul.f32 %v2158_v9, %v1933_v44 }
 0x217   : > { %v2159_v21 = vadd.f32 1.0, %v2602_v3  ;;  %2613 = verf.f32 %v2018_v14  ;;  %v1939_v3 = vmul.f32 0.5, %v4186_v10 }
 0x218   : > { %v2604_v28 = vpop.eup %2603  ;;  %v1465_v20 = vpop.f32.mrf.mxu1  ;;  %2615 = verf.f32 %v2020_v52  ;;  %v2021_v8 = vmul.f32 0.70710677, %v4221_v16  ;;  %2308 = vst [vmem:[%s4124_s17 + $0xa8] sm:$0xff] %v2233_v49 }
 0x219   : > { %v2161_v30 = vadd.f32 1.0, %v2604_v28  ;;  %v1265_v51 = vpop.f32.mrf.mxu0  ;;  %v2234_v17 = vmul.f32 %v2159_v21, %v1934_v62  ;;  %v1940_v20 = vmul.f32 0.5, %v4193_v45 }
 0x21a   : > { %v2606_v1 = vpop.eup %2605  ;;  %v4228_v25 = vadd.f32 %v1265_v51, %v3957_v0  ;;  %v4230_v7 = vpop.f32.mrf.mxu1  ;;  %2617 = verf.f32 %v2021_v8 }
 0x21b   : > { %v2236_v24 = vmul.f32 %v2161_v30, %v1936_v38  ;;  %v2162_v42 = vadd.f32 1.0, %v2606_v1  ;;  %v1267_v56 = vpop.f32.mrf.mxu0  ;;  %2309 = vst [vmem:[%s4124_s17 + $0xb0] sm:$0xff] %v2234_v17 }
 0x21c   : > { %v2023_v44 = vmul.f32 0.70710677, %v4228_v25  ;;  %v4236_v9 = vadd.f32 %v1267_v56, %v3961_v19  ;;  %v1470_v14 = vpop.f32.mrf.mxu1  ;;  %v2608_v57 = vpop.eup %2607 }
 0x21d   : > { %2311 = vst [vmem:[%s4124_s17 + $0xc0] sm:$0xff] %v2236_v24  ;;  %v2237_v0 = vmul.f32 %v2162_v42, %v1937_v18  ;;  %v2164_v52 = vadd.f32 1.0, %v2608_v57  ;;  %v1271_v28 = vpop.f32.mrf.mxu0  ;;  %v1942_v24 = vmul.f32 0.5, %v4200_v11 }
 0x21e   : > { %2619 = verf.f32 %v2023_v44  ;;  %v2024_v59 = vmul.f32 0.70710677, %v4236_v9  ;;  %v2610_v49 = vpop.eup %2609  ;;  %v4243_v62 = vadd.f32 %v1271_v28, %v3966_v27  ;;  %v4245_v21 = vpop.f32.mrf.mxu1 }
 0x21f   : > { %2312 = vst [vmem:[%s4124_s17 + $0xc8] sm:$0xff] %v2237_v0  ;;  %v2239_v19 = vmul.f32 %v2164_v52, %v1939_v3  ;;  %v2165_v38 = vadd.f32 1.0, %v2610_v49  ;;  %v1273_v10 = vpop.f32.mrf.mxu0  ;;  %v1943_v3 = vmul.f32 0.5, %v4208_v53 }
 0x220   : > { %2621 = verf.f32 %v2024_v59  ;;  %v2026_v30 = vmul.f32 0.70710677, %v4243_v62  ;;  %v4250_v8 = vadd.f32 %v1273_v10, %v3969_v40  ;;  %v1475_v51 = vpop.f32.mrf.mxu1 }
 0x221   : > { %v2612_v1 = vpop.eup %2611  ;;  %2314 = vst [vmem:[%s4124_s17 + $0xd8] sm:$0xff] %v2239_v19  ;;  %v2240_v17 = vmul.f32 %v2165_v38, %v1940_v20  ;;  %v1277_v27 = vpop.f32.mrf.mxu0  ;;  %v1946_v51 = vmul.f32 0.5, %v4221_v16 }
 0x222   : > { %v2167_v18 = vadd.f32 1.0, %v2612_v1  ;;  %2623 = verf.f32 %v2026_v30  ;;  %v2027_v45 = vmul.f32 0.70710677, %v4250_v8  ;;  %v4255_v42 = vpop.f32.mrf.mxu1  ;;  %v4259_v56 = vadd.f32 %v1277_v27, %v3974_v41 }
 0x223   : > { %2315 = vst [vmem:[%s4124_s17 + $0xe0] sm:$0xff] %v2240_v17  ;;  %v1279_v40 = vpop.f32.mrf.mxu0  ;;  %v1945_v41 = vmul.f32 0.5, %v4212_v43 }
 0x224   : > { %v2614_v44 = vpop.eup %2613  ;;  %v2242_v14 = vmul.f32 %v2167_v18, %v1942_v24  ;;  %2625 = verf.f32 %v2027_v45  ;;  %v4262_v57 = vadd.f32 %v1279_v40, %v3977_v33  ;;  %v1480_v0 = vpop.f32.mrf.mxu1  ;;  %v2029_v59 = vmul.f32 0.70710677, %v4259_v56 }
 0x225   : > { %v2616_v11 = vpop.eup %2615  ;;  %v2168_v52 = vadd.f32 1.0, %v2614_v44  ;;  %v1283_v28 = vpop.f32.mrf.mxu0  ;;  %v1948_v45 = vmul.f32 0.5, %v4228_v25  ;;  %v1949_v0 = vmul.f32 0.5, %v4236_v9 }
 0x226   : > { %2317 = vst [vmem:[%s4124_s17 + $0xf0] sm:$0xff] %v2242_v14  ;;  %v2170_v49 = vadd.f32 1.0, %v2616_v11  ;;  %v2030_v19 = vmul.f32 0.70710677, %v4262_v57  ;;  %v4270_v20 = vadd.f32 %v1283_v28, %v3982_v50  ;;  %2627 = verf.f32 %v2029_v59 }
 0x227   : > { %v2618_v33 = vpop.eup %2617  ;;  %v2243_v38 = vmul.f32 %v2168_v52, %v1943_v3  ;;  %v1285_v53 = vpop.f32.mrf.mxu0 }
 0x228   : > { %v4272_v10 = vpop.f32.mrf.mxu1  ;;  %v2245_v30 = vmul.f32 %v2170_v49, %v1945_v41  ;;  %v2171_v1 = vadd.f32 1.0, %v2618_v33  ;;  %2629 = verf.f32 %v2030_v19  ;;  %v2032_v43 = vmul.f32 0.70710677, %v4270_v20 }
 0x229   : > { %2318 = vst [vmem:[%s4124_s17 + $0xf8] sm:$0xff] %v2243_v38  ;;  %v4278_v17 = vadd.f32 %v1285_v53, %v3985_v29 }
 0x22a   : > { %v1485_v50 = vpop.f32.mrf.mxu1  ;;  %2320 = vst [vmem:[%s4124_s17 + $0x108] sm:$0xff] %v2245_v30  ;;  %v2246_v24 = vmul.f32 %v2171_v1, %v1946_v51  ;;  %v1289_v18 = vpop.f32.mrf.mxu0  ;;  %2631 = verf.f32 %v2032_v43  ;;  %v1952_v1 = vmul.f32 0.5, %v4250_v8 }
 0x22b   : > { %v2620_v27 = vpop.eup %2619  ;;  %v2033_v16 = vmul.f32 0.70710677, %v4278_v17  ;;  %v4288_v29 = vadd.f32 %v1289_v18, %v3990_v54  ;;  %v1951_v54 = vmul.f32 0.5, %v4243_v62 }
 0x22c   : > { %v2173_v40 = vadd.f32 1.0, %v2620_v27  ;;  %v4283_v44 = vpop.f32.mrf.mxu1  ;;  %2321 = vst [vmem:[%s4124_s17 + $0x110] sm:$0xff] %v2246_v24  ;;  %v1291_v11 = vpop.f32.mrf.mxu0 }
 0x22d   : > { %v2622_v14 = vpop.eup %2621  ;;  %2633 = verf.f32 %v2033_v16  ;;  %v4291_v25 = vadd.f32 %v1291_v11, %v3994_v4  ;;  %v2035_v28 = vmul.f32 0.70710677, %v4288_v29  ;;  %v1954_v16 = vmul.f32 0.5, %v4259_v56 }
 0x22e   : > { %v2248_v3 = vmul.f32 %v2173_v40, %v1948_v45  ;;  %v2174_v52 = vadd.f32 1.0, %v2622_v14  ;;  %v1490_v59 = vpop.f32.mrf.mxu1 }
 0x22f   : > { %v2624_v41 = vpop.eup %2623  ;;  %v2036_v19 = vmul.f32 0.70710677, %v4291_v25  ;;  %v1295_v9 = vpop.f32.mrf.mxu0  ;;  %2635 = verf.f32 %v2035_v28 }
 0x230   : > { %2323 = vst [vmem:[%s4124_s17 + $0x120] sm:$0xff] %v2248_v3  ;;  %v2249_v49 = vmul.f32 %v2174_v52, %v1949_v0  ;;  %v2176_v33 = vadd.f32 1.0, %v2624_v41  ;;  %v4298_v38 = vadd.f32 %v1295_v9, %v3998_v47  ;;  %v4300_v53 = vpop.f32.mrf.mxu1 }
 0x231   : > { %v2626_v4 = vpop.eup %2625  ;;  %2637 = verf.f32 %v2036_v19  ;;  %v1297_v30 = vpop.f32.mrf.mxu0  ;;  %v1957_v19 = vmul.f32 0.5, %v4270_v20 }
 0x232   : > { %2324 = vst [vmem:[%s4124_s17 + $0x128] sm:$0xff] %v2249_v49  ;;  %v2251_v51 = vmul.f32 %v2176_v33, %v1951_v54  ;;  %v2177_v43 = vadd.f32 1.0, %v2626_v4  ;;  %v2038_v50 = vmul.f32 0.70710677, %v4298_v38  ;;  %v1495_v62 = vpop.f32.mrf.mxu1  ;;  %v4306_v27 = vadd.f32 %v1297_v30, %v4003_v48 }
 0x233   : > { %v1301_v24 = vpop.f32.mrf.mxu0  ;;  %v2628_v47 = vpop.eup %2627  ;;  %v1955_v48 = vmul.f32 0.5, %v4262_v57 }
 0x234   : > { %2326 = vst [vmem:[%s4124_s17 + $0x138] sm:$0xff] %v2251_v51  ;;  %v2252_v18 = vmul.f32 %v2177_v43, %v1952_v1  ;;  %2639 = verf.f32 %v2038_v50  ;;  %v4310_v45 = vadd.f32 %v1301_v24, %v4006_v12  ;;  %v2179_v8 = vadd.f32 1.0, %v2628_v47 }
 0x235   : > { %v2630_v40 = vpop.eup %2629  ;;  %v2039_v14 = vmul.f32 0.70710677, %v4306_v27  ;;  %v1303_v11 = vpop.f32.mrf.mxu0  ;;  %v1958_v51 = vmul.f32 0.5, %v4278_v17  ;;  %v1960_v17 = vmul.f32 0.5, %v4288_v29 }
 0x236   : > { %v4314_v0 = vpop.f32.mrf.mxu1  ;;  %2327 = vst [vmem:[%s4124_s17 + $0x140] sm:$0xff] %v2252_v18  ;;  %v2180_v3 = vadd.f32 1.0, %v2630_v40  ;;  %v2041_v52 = vmul.f32 0.70710677, %v4310_v45  ;;  %v2254_v59 = vmul.f32 %v2179_v8, %v1954_v16  ;;  %v4320_v12 = vadd.f32 %v1303_v11, %v4011_v23 }
 0x237   : > { %2641 = verf.f32 %v2039_v14  ;;  %v2632_v28 = vpop.eup %2631 }
 0x238   : > { %v1500_v56 = vpop.f32.mrf.mxu1  ;;  %v2255_v41 = vmul.f32 %v2180_v3, %v1955_v48  ;;  %2643 = verf.f32 %v2041_v52  ;;  %v1307_v49 = vpop.f32.mrf.mxu0  ;;  %2329 = vst [vmem:[%s4124_s17 + $0x150] sm:$0xff] %v2254_v59  ;;  %v2182_v9 = vadd.f32 1.0, %v2632_v28  ;;  %v2042_v57 = vmul.f32 0.70710677, %v4320_v12 }
 0x239   : > { %v4326_v54 = vadd.f32 %v1307_v49, %v4015_v39  ;;  %v1963_v28 = vmul.f32 0.5, %v4298_v38  ;;  %v1964_v38 = vmul.f32 0.5, %v4306_v27 }
 0x23a   : > { %v4328_v33 = vpop.f32.mrf.mxu1  ;;  %v2634_v4 = vpop.eup %2633  ;;  %2330 = vst [vmem:[%s4124_s17 + $0x158] sm:$0xff] %v2255_v41  ;;  %v2257_v30 = vmul.f32 %v2182_v9, %v1957_v19  ;;  %2645 = verf.f32 %v2042_v57 }
 0x23b   : > { %v1309_v23 = vpop.f32.mrf.mxu0  ;;  %v2183_v1 = vadd.f32 1.0, %v2634_v4  ;;  %v2044_v20 = vmul.f32 0.70710677, %v4326_v54 }
 0x23c   : > { %v1505_v43 = vpop.f32.mrf.mxu1  ;;  %v4334_v50 = vadd.f32 %v1309_v23, %v4019_v13  ;;  %v2636_v39 = vpop.eup %2635  ;;  %2332 = vst [vmem:[%s4124_s17 + $0x168] sm:$0xff] %v2257_v30  ;;  %v1961_v13 = vmul.f32 0.5, %v4291_v25 }
 0x23d   : > { %v1313_v62 = vpop.f32.mrf.mxu0  ;;  %v2258_v24 = vmul.f32 %v2183_v1, %v1958_v51  ;;  %v2185_v16 = vadd.f32 1.0, %v2636_v39  ;;  %2647 = verf.f32 %v2044_v20  ;;  %v1966_v43 = vmul.f32 0.5, %v4310_v45 }
 0x23e   : > { %v4338_v47 = vadd.f32 %v1313_v62, %v4023_v63  ;;  %v4340_v18 = vpop.f32.mrf.mxu1  ;;  %v2638_v40 = vpop.eup %2637  ;;  %v2045_v8 = vmul.f32 0.70710677, %v4334_v50 }
 0x23f   : > { %v1315_v14 = vpop.f32.mrf.mxu0  ;;  %2333 = vst [vmem:[%s4124_s17 + $0x170] sm:$0xff] %v2258_v24  ;;  %v2186_v11 = vadd.f32 1.0, %v2638_v40  ;;  %v2260_v3 = vmul.f32 %v2185_v16, %v1960_v17 }
 0x240   : > { %v2047_v48 = vmul.f32 0.70710677, %v4338_v47  ;;  %v1510_v63 = vpop.f32.mrf.mxu1  ;;  %2649 = verf.f32 %v2045_v8  ;;  %v4348_v52 = vadd.f32 %v1315_v14, %v4027_v61  ;;  %v1967_v8 = vmul.f32 0.5, %v4320_v12 }
 0x241   : > { %v2640_v29 = vpop.eup %2639  ;;  %v2261_v59 = vmul.f32 %v2186_v11, %v1961_v13  ;;  %v1319_v56 = vpop.f32.mrf.mxu0  ;;  %2335 = vst [vmem:[%s4124_s17 + $0x180] sm:$0xff] %v2260_v3  ;;  %v4638_v13 = vld [vmem:[#allocation13_spill] sm:$0xff] }
 0x242   : > { %2651 = verf.f32 %v2047_v48  ;;  %v2188_v41 = vadd.f32 1.0, %v2640_v29  ;;  %v2048_v25 = vmul.f32 0.70710677, %v4348_v52  ;;  %v4354_v49 = vadd.f32 %v1319_v56, %v4032_v36  ;;  %v4356_v19 = vpop.f32.mrf.mxu1 }
 0x243   : > { %2336 = vst [vmem:[%s4124_s17 + $0x188] sm:$0xff] %v2261_v59  ;;  %v1321_v9 = vpop.f32.mrf.mxu0  ;;  %v692_v11 = vsub.s32 2, %v4638_v13  ;;  %v1969_v56 = vmul.f32 0.5, %v4326_v54  ;;  %v1970_v54 = vmul.f32 0.5, %v4334_v50 }
 0x244   : > { %v2642_v61 = vpop.eup %2641  ;;  %v2263_v57 = vmul.f32 %v2188_v41, %v1963_v28  ;;  %2653 = verf.f32 %v2048_v25  ;;  %v2050_v4 = vmul.f32 0.70710677, %v4354_v49  ;;  %v1515_v23 = vpop.f32.mrf.mxu1  ;;  %v4362_v1 = vadd.f32 %v1321_v9, %v4035_v6 }
 0x245   : > { %v2644_v30 = vpop.eup %2643  ;;  %v2189_v51 = vadd.f32 1.0, %v2642_v61  ;;  %v1325_v36 = vpop.f32.mrf.mxu0 }
 0x246   : > { %2338 = vst [vmem:[%s4124_s17 + $0x198] sm:$0xff] %v2263_v57  ;;  %v2191_v20 = vadd.f32 1.0, %v2644_v30  ;;  %2655 = verf.f32 %v2050_v4  ;;  %v4367_v62 = vadd.f32 %v1325_v36, %v4040_v5  ;;  %v2051_v24 = vmul.f32 0.70710677, %v4362_v1  ;;  %v2771_v4 = vld [vmem:[%s3751_s28] sm:$0x7] }
 0x247   : > { %v2264_v39 = vmul.f32 %v2189_v51, %v1964_v38  ;;  %v1327_v27 = vpop.f32.mrf.mxu0  ;;  %v2646_v17 = vpop.eup %2645  ;;  %v1972_v38 = vmul.f32 0.5, %v4338_v47  ;;  %v1973_v47 = vmul.f32 0.5, %v4348_v52 }
 0x248   : > { %v4370_v40 = vpop.f32.mrf.mxu1  ;;  %v2266_v16 = vmul.f32 %v2191_v20, %v1966_v43  ;;  %v2053_v6 = vmul.f32 0.70710677, %v4367_v62  ;;  %v2192_v45 = vadd.f32 1.0, %v2646_v17  ;;  %2657 = verf.f32 %v2051_v24 }
 0x249   : > { %2339 = vst [vmem:[%s4124_s17 + $0x1a0] sm:$0xff] %v2264_v39  ;;  %v4376_v14 = vadd.f32 %v1327_v27, %v4043_v32 }
 0x24a   : > { %v1520_v5 = vpop.f32.mrf.mxu1  ;;  %2341 = vst [vmem:[%s4124_s17 + $0x1b0] sm:$0xff] %v2266_v16  ;;  %2659 = verf.f32 %v2053_v6  ;;  %v1331_v48 = vpop.f32.mrf.mxu0  ;;  %v2267_v3 = vmul.f32 %v2192_v45, %v1967_v8 }
 0x24b   : > { %v2648_v63 = vpop.eup %2647  ;;  %v2054_v29 = vmul.f32 0.70710677, %v4376_v14  ;;  %v4382_v59 = vadd.f32 %v1331_v48, %v4048_v31  ;;  %v4393_v31 = vrot.slane %v2771_v4, %v692_v11  ;;  %v1975_v11 = vmul.f32 0.5, %v4354_v49 }
 0x24c   : > { %v4384_v12 = vpop.f32.mrf.mxu1  ;;  %v2194_v32 = vadd.f32 1.0, %v2648_v63  ;;  %v1333_v28 = vpop.f32.mrf.mxu0  ;;  %2342 = vst [vmem:[%s4124_s17 + $0x1b8] sm:$0xff] %v2267_v3 }
 0x24d   : > { %v2650_v41 = vpop.eup %2649  ;;  %2661 = verf.f32 %v2054_v29  ;;  %v2056_v25 = vmul.f32 0.70710677, %v4382_v59  ;;  %v4390_v9 = vadd.f32 %v1333_v28, %v4052_v35  ;;  %v1976_v28 = vmul.f32 0.5, %v4362_v1  ;;  %v4639_v1 = vld [vmem:[#allocation14_spill] sm:$0xff] }
 0x24e   : > { %v1525_v61 = vpop.f32.mrf.mxu1  ;;  %v2269_v23 = vmul.f32 %v2194_v32, %v1969_v56  ;;  %v2195_v30 = vadd.f32 1.0, %v2650_v41  ;;  %v1414_v56 = vadd.f32 %v4078_v22, %v4393_v31 }
 0x24f   : > { %v2652_v57 = vpop.eup %2651  ;;  %2663 = verf.f32 %v2056_v25  ;;  %v2057_v36 = vmul.f32 0.70710677, %v4390_v9  ;;  %v1337_v43 = vpop.f32.mrf.mxu0 }
 0x250   : > { %v2197_v51 = vadd.f32 1.0, %v2652_v57  ;;  %2344 = vst [vmem:[%s4124_s17 + $0x1c8] sm:$0xff] %v2269_v23  ;;  %v2270_v35 = vmul.f32 %v2195_v30, %v1970_v54  ;;  %v4400_v20 = vadd.f32 %v1337_v43, %v4056_v34  ;;  %v4402_v39 = vpop.f32.mrf.mxu1  ;;  %v1409_v34 = vadd.f32 %v4066_v55, %v4393_v31 }
 0x251   : > { %v2654_v24 = vpop.eup %2653  ;;  %2665 = verf.f32 %v2057_v36  ;;  %v1339_v50 = vpop.f32.mrf.mxu0  ;;  %v1978_v57 = vmul.f32 0.5, %v4367_v62  ;;  %v1419_v36 = vadd.f32 %v4639_v1, %v4393_v31 }
 0x252   : > { %v2272_v27 = vmul.f32 %v2197_v51, %v1972_v38  ;;  %2345 = vst [vmem:[%s4124_s17 + $0x1d0] sm:$0xff] %v2270_v35  ;;  %v2198_v17 = vadd.f32 1.0, %v2654_v24  ;;  %v2059_v16 = vmul.f32 0.70710677, %v4400_v20  ;;  %v4408_v6 = vadd.f32 %v1339_v50, %v4061_v46  ;;  %v1530_v8 = vpop.f32.mrf.mxu1 }
 0x253   : > { %v2656_v45 = vpop.eup %2655  ;;  %v1598_v5 = vpop.f32.mrf.mxu0  ;;  %v1979_v24 = vmul.f32 0.5, %v4376_v14  ;;  %v4640_v14 = vld [vmem:[#allocation15_spill] sm:$0xff] }
 0x254   : > { %2347 = vst [vmem:[%s4124_s17 + $0x1e0] sm:$0xff] %v2272_v27  ;;  %v2273_v13 = vmul.f32 %v2198_v17, %v1973_v47  ;;  %v2200_v48 = vadd.f32 1.0, %v2656_v45  ;;  %2667 = verf.f32 %v2059_v16  ;;  %v2060_v52 = vmul.f32 0.70710677, %v4408_v6 }
 0x255   : > { %v1599_v63 = vadd.f32 %v1598_v5, %v1409_v34  ;;  %v1788_v3 = vpop.f32.mrf.mxu1  ;;  %v1600_v46 = vpop.f32.mrf.mxu0  ;;  %v1981_v45 = vmul.f32 0.5, %v4382_v59 }
 0x256   : > { %v2658_v29 = vpop.eup %2657  ;;  %2348 = vst [vmem:[%s4124_s17 + $0x1e8] sm:$0xff] %v2273_v13  ;;  %v2275_v32 = vmul.f32 %v2200_v48, %v1975_v11  ;;  %2669 = verf.f32 %v2060_v52  ;;  %v1424_v48 = vadd.f32 %v4640_v14, %v4393_v31  ;;  %v1439_v14 = vadd.f32 %v4146_v60, %v4393_v31 }
 0x257   : > { %v2660_v55 = vpop.eup %2659  ;;  %v2201_v41 = vadd.f32 1.0, %v2658_v29  ;;  %v4419_v49 = vadd.f32 %v1788_v3, %v1599_v63  ;;  %v1790_v25 = vpop.f32.mrf.mxu1  ;;  %v1982_v3 = vmul.f32 0.5, %v4390_v9 }
 0x258   : > { %v1603_v61 = vpop.f32.mrf.mxu0  ;;  %2350 = vst [vmem:[%s4124_s17 + $0x1f8] sm:$0xff] %v2275_v32  ;;  %v2203_v4 = vadd.f32 1.0, %v2660_v55 }
 0x259   : > { %v1604_v23 = vadd.f32 %v1603_v61, %v1414_v56  ;;  %v2276_v54 = vmul.f32 %v2201_v41, %v1976_v28  ;;  %v1989_v22 = vmul.f32 0.70710677, %v4419_v49  ;;  %v1793_v30 = vpop.f32.mrf.mxu1  ;;  %v4641_v28 = vld [vmem:[#allocation16_spill] sm:$0xff] }
 0x25a   : > { %v1605_v38 = vpop.f32.mrf.mxu0  ;;  %v2662_v51 = vpop.eup %2661  ;;  %v2278_v43 = vmul.f32 %v2203_v4, %v1978_v57  ;;  %v1429_v41 = vadd.f32 %v4641_v28, %v4393_v31  ;;  %v1984_v4 = vmul.f32 0.5, %v4400_v20 }
 0x25b   : > { %v4426_v35 = vadd.f32 %v1793_v30, %v1604_v23  ;;  %2351 = vst [vmem:[%s4124_s17 + $0x200] sm:$0xff] %v2276_v54  ;;  %v2204_v27 = vadd.f32 1.0, %v2662_v51  ;;  %2671 = verf.f32 %v1989_v22  ;;  %v1795_v62 = vpop.f32.mrf.mxu1 }
 0x25c   : > { %v1608_v50 = vpop.f32.mrf.mxu0  ;;  %v2664_v47 = vpop.eup %2663  ;;  %2353 = vst [vmem:[%s4124_s17 + $0x210] sm:$0xff] %v2278_v43  ;;  %v4642_v62 = vld [vmem:[#allocation17_spill] sm:$0xff] }
 0x25d   : > { %v1992_v17 = vmul.f32 0.70710677, %v4426_v35  ;;  %v1609_v16 = vadd.f32 %v1608_v50, %v1419_v36  ;;  %v2279_v8 = vmul.f32 %v2204_v27, %v1979_v24  ;;  %v2206_v34 = vadd.f32 1.0, %v2664_v47  ;;  %v1798_v5 = vpop.f32.mrf.mxu1 }
 0x25e   : > { %v1610_v13 = vpop.f32.mrf.mxu0  ;;  %v2666_v11 = vpop.eup %2665  ;;  %v1985_v36 = vmul.f32 0.5, %v4408_v6  ;;  %v1434_v20 = vadd.f32 %v4642_v62, %v4393_v31 }
 0x25f   : > { %2673 = verf.f32 %v1992_v17  ;;  %v4435_v52 = vadd.f32 %v1798_v5, %v1609_v16  ;;  %2354 = vst [vmem:[%s4124_s17 + $0x218] sm:$0xff] %v2279_v8  ;;  %v2281_v63 = vmul.f32 %v2206_v34, %v1981_v45  ;;  %v2207_v46 = vadd.f32 1.0, %v2666_v11  ;;  %v1800_v29 = vpop.f32.mrf.mxu1 }
 0x260   : > { %v1613_v56 = vpop.f32.mrf.mxu0  ;;  %v1914_v5 = vmul.f32 0.5, %v4419_v49 }
 0x261   : > { %v1995_v59 = vmul.f32 0.70710677, %v4435_v52  ;;  %v1614_v32 = vadd.f32 %v1613_v56, %v1424_v48  ;;  %v2668_v55 = vpop.eup %2667  ;;  %2356 = vst [vmem:[%s4124_s17 + $0x228] sm:$0xff] %v2281_v63  ;;  %v2282_v25 = vmul.f32 %v2207_v46, %v1982_v3  ;;  %v1803_v61 = vpop.f32.mrf.mxu1  ;;  %v1917_v56 = vmul.f32 0.5, %v4426_v35 }
 0x262   : > { %v1615_v57 = vpop.f32.mrf.mxu0  ;;  %v2209_v23 = vadd.f32 1.0, %v2668_v55 }
 0x263   : > { %2675 = verf.f32 %v1995_v59  ;;  %v1804_v9 = vadd.f32 %v1803_v61, %v1614_v32  ;;  %2357 = vst [vmem:[%s4124_s17 + $0x230] sm:$0xff] %v2282_v25  ;;  %v1805_v54 = vpop.f32.mrf.mxu1  ;;  %v2670_v30 = vpop.eup %2669 }
 0x264   : > { %v1618_v22 = vpop.f32.mrf.mxu0  ;;  %v2284_v38 = vmul.f32 %v2209_v23, %v1984_v4  ;;  %v2210_v43 = vadd.f32 1.0, %v2670_v30  ;;  %v1920_v23 = vmul.f32 0.5, %v4435_v52 }
 0x265   : > { %v1998_v51 = vmul.f32 0.70710677, %v1804_v9  ;;  %v1619_v1 = vadd.f32 %v1618_v22, %v1429_v41  ;;  %v1808_v24 = vpop.f32.mrf.mxu1  ;;  %v1444_v41 = vadd.f32 %v4161_v58, %v4393_v31 }
 0x266   : > { %v1620_v27 = vpop.f32.mrf.mxu0  ;;  %2359 = vst [vmem:[%s4124_s17 + $0x240] sm:$0xf] %v2284_v38  ;;  %v2285_v47 = vmul.f32 %v2210_v43, %v1985_v36 }
 0x267   : > { %2677 = verf.f32 %v1998_v51  ;;  %v1809_v50 = vadd.f32 %v1808_v24, %v1619_v1  ;;  %v1810_v17 = vpop.f32.mrf.mxu1  ;;  %v1449_v51 = vadd.f32 %v4174_v26, %v4393_v31  ;;  %v1923_v27 = vmul.f32 0.5, %v1804_v9 }
 0x268   : > { %v1623_v16 = vpop.f32.mrf.mxu0  ;;  %v2672_v8 = vpop.eup %2671  ;;  %2360 = vst [vmem:[%s4124_s17 + $0x248] sm:$0xf] %v2285_v47 }
 0x269   : > { %v2001_v45 = vmul.f32 0.70710677, %v1809_v50  ;;  %v1624_v34 = vadd.f32 %v1623_v16, %v1434_v20  ;;  %v2139_v6 = vadd.f32 1.0, %v2672_v8  ;;  %v1813_v13 = vpop.f32.mrf.mxu1  ;;  %v1454_v16 = vadd.f32 %v4188_v15, %v4393_v31 }
 0x26a   : > { %v1625_v11 = vpop.f32.mrf.mxu0 }
 0x26b   : > { %2679 = verf.f32 %v2001_v45  ;;  %v1814_v48 = vadd.f32 %v1813_v13, %v1624_v34  ;;  %v2214_v3 = vmul.f32 %v2139_v6, %v1914_v5  ;;  %v1815_v46 = vpop.f32.mrf.mxu1  ;;  %v1926_v6 = vmul.f32 0.5, %v1809_v50 }
 0x26c   : > { %v2674_v63 = vpop.eup %2673  ;;  %v1628_v29 = vpop.f32.mrf.mxu0 }
 0x26d   : > { %v2142_v59 = vadd.f32 1.0, %v2674_v63  ;;  %v2004_v32 = vmul.f32 0.70710677, %v1814_v48  ;;  %v1629_v55 = vadd.f32 %v1628_v29, %v1439_v14  ;;  %2289 = vst [vmem:[%s4124_s17 + $0x10] sm:$0xff] %v2214_v3  ;;  %v1818_v49 = vpop.f32.mrf.mxu1  ;;  %v1459_v3 = vadd.f32 %v4202_v37, %v4393_v31 }
 0x26e   : > { %v1630_v28 = vpop.f32.mrf.mxu0 }
 0x26f   : > { %v2217_v25 = vmul.f32 %v2142_v59, %v1917_v56  ;;  %2681 = verf.f32 %v2004_v32  ;;  %v1819_v60 = vadd.f32 %v1818_v49, %v1629_v55  ;;  %v1820_v57 = vpop.f32.mrf.mxu1  ;;  %v1929_v32 = vmul.f32 0.5, %v1814_v48 }
 0x270   : > { %v2676_v61 = vpop.eup %2675  ;;  %v1633_v4 = vpop.f32.mrf.mxu0 }
 0x271   : > { %2292 = vst [vmem:[%s4124_s17 + $0x28] sm:$0xff] %v2217_v25  ;;  %v2145_v35 = vadd.f32 1.0, %v2676_v61  ;;  %v2007_v54 = vmul.f32 0.70710677, %v1819_v60  ;;  %v1634_v22 = vadd.f32 %v1633_v4, %v1444_v41  ;;  %v1823_v30 = vpop.f32.mrf.mxu1  ;;  %v1464_v25 = vadd.f32 %v4216_v2, %v4393_v31 }
 0x272   : > { %v1635_v38 = vpop.f32.mrf.mxu0 }
 0x273   : > { %v2220_v1 = vmul.f32 %v2145_v35, %v1920_v23  ;;  %2683 = verf.f32 %v2007_v54  ;;  %v1824_v58 = vadd.f32 %v1823_v30, %v1634_v22  ;;  %v1825_v43 = vpop.f32.mrf.mxu1  ;;  %v1932_v35 = vmul.f32 0.5, %v1819_v60 }
 0x274   : > { %v2678_v36 = vpop.eup %2677  ;;  %v1638_v24 = vpop.f32.mrf.mxu0 }
 0x275   : > { %2295 = vst [vmem:[%s4124_s17 + $0x40] sm:$0xff] %v2220_v1  ;;  %v2148_v62 = vadd.f32 1.0, %v2678_v36  ;;  %v2010_v20 = vmul.f32 0.70710677, %v1824_v58  ;;  %v1639_v52 = vadd.f32 %v1638_v24, %v1449_v51  ;;  %v1828_v47 = vpop.f32.mrf.mxu1  ;;  %v1469_v51 = vadd.f32 %v4230_v7, %v4393_v31 }
 0x276   : > { %v1640_v17 = vpop.f32.mrf.mxu0 }
 0x277   : > { %v2223_v8 = vmul.f32 %v2148_v62, %v1923_v27  ;;  %2685 = verf.f32 %v2010_v20  ;;  %v1829_v26 = vadd.f32 %v1828_v47, %v1639_v52  ;;  %v1830_v34 = vpop.f32.mrf.mxu1  ;;  %v1935_v27 = vmul.f32 0.5, %v1824_v58 }
 0x278   : > { %v2680_v45 = vpop.eup %2679  ;;  %v1643_v5 = vpop.f32.mrf.mxu0  ;;  %v1474_v17 = vadd.f32 %v4245_v21, %v4393_v31 }
 0x279   : > { %2298 = vst [vmem:[%s4124_s17 + $0x58] sm:$0xff] %v2223_v8  ;;  %v2151_v13 = vadd.f32 1.0, %v2680_v45  ;;  %v2013_v11 = vmul.f32 0.70710677, %v1829_v26  ;;  %v1644_v9 = vadd.f32 %v1643_v5, %v1454_v16  ;;  %v1833_v14 = vpop.f32.mrf.mxu1  ;;  %v1938_v5 = vmul.f32 0.5, %v1829_v26 }
 0x27a   : > { %v1645_v63 = vpop.f32.mrf.mxu0 }
 0x27b   : > { %v2226_v46 = vmul.f32 %v2151_v13, %v1926_v6  ;;  %2687 = verf.f32 %v2013_v11  ;;  %v1834_v15 = vadd.f32 %v1833_v14, %v1644_v9  ;;  %v1835_v56 = vpop.f32.mrf.mxu1  ;;  %v1479_v14 = vadd.f32 %v4255_v42, %v4393_v31 }
 0x27c   : > { %v2682_v29 = vpop.eup %2681  ;;  %v1648_v59 = vpop.f32.mrf.mxu0 }
 0x27d   : > { %2301 = vst [vmem:[%s4124_s17 + $0x70] sm:$0xff] %v2226_v46  ;;  %v2154_v55 = vadd.f32 1.0, %v2682_v29  ;;  %v2016_v49 = vmul.f32 0.70710677, %v1834_v15  ;;  %v1649_v50 = vadd.f32 %v1648_v59, %v1459_v3  ;;  %v1838_v28 = vpop.f32.mrf.mxu1  ;;  %v1941_v56 = vmul.f32 0.5, %v1834_v15 }
 0x27e   : > { %v1650_v41 = vpop.f32.mrf.mxu0 }
 0x27f   : > { %v2229_v61 = vmul.f32 %v2154_v55, %v1929_v32  ;;  %2689 = verf.f32 %v2016_v49  ;;  %v1839_v37 = vadd.f32 %v1838_v28, %v1649_v50  ;;  %v1840_v4 = vpop.f32.mrf.mxu1  ;;  %v1484_v50 = vadd.f32 %v4272_v10, %v4393_v31 }
 0x280   : > { %v2684_v57 = vpop.eup %2683  ;;  %v1653_v23 = vpop.f32.mrf.mxu0 }
 0x281   : > { %2304 = vst [vmem:[%s4124_s17 + $0x88] sm:$0xff] %v2229_v61  ;;  %v2157_v54 = vadd.f32 1.0, %v2684_v57  ;;  %v2019_v22 = vmul.f32 0.70710677, %v1839_v37  ;;  %v1654_v48 = vadd.f32 %v1653_v23, %v1464_v25  ;;  %v1843_v30 = vpop.f32.mrf.mxu1  ;;  %v1944_v57 = vmul.f32 0.5, %v1839_v37 }
 0x282   : > { %v1655_v38 = vpop.f32.mrf.mxu0 }
 0x283   : > { %v2232_v1 = vmul.f32 %v2157_v54, %v1932_v35  ;;  %2691 = verf.f32 %v2019_v22  ;;  %v1844_v2 = vadd.f32 %v1843_v30, %v1654_v48  ;;  %v1845_v43 = vpop.f32.mrf.mxu1  ;;  %v1489_v22 = vadd.f32 %v4283_v44, %v4393_v31 }
 0x284   : > { %v2686_v36 = vpop.eup %2685  ;;  %v1658_v24 = vpop.f32.mrf.mxu0 }
 0x285   : > { %2307 = vst [vmem:[%s4124_s17 + $0xa0] sm:$0xff] %v2232_v1  ;;  %v2160_v62 = vadd.f32 1.0, %v2686_v36  ;;  %v2022_v20 = vmul.f32 0.70710677, %v1844_v2  ;;  %v1659_v60 = vadd.f32 %v1658_v24, %v1469_v51  ;;  %v1848_v52 = vpop.f32.mrf.mxu1  ;;  %v1947_v1 = vmul.f32 0.5, %v1844_v2 }
 0x286   : > { %v1660_v47 = vpop.f32.mrf.mxu0 }
 0x287   : > { %v2235_v16 = vmul.f32 %v2160_v62, %v1935_v27  ;;  %2693 = verf.f32 %v2022_v20  ;;  %v1849_v7 = vadd.f32 %v1848_v52, %v1659_v60  ;;  %v1850_v45 = vpop.f32.mrf.mxu1  ;;  %v1494_v62 = vadd.f32 %v4300_v53, %v4393_v31 }
 0x288   : > { %v2688_v8 = vpop.eup %2687  ;;  %v1663_v34 = vpop.f32.mrf.mxu0 }
 0x289   : > { %2310 = vst [vmem:[%s4124_s17 + $0xb8] sm:$0xff] %v2235_v16  ;;  %v2163_v6 = vadd.f32 1.0, %v2688_v8  ;;  %v2025_v13 = vmul.f32 0.70710677, %v1849_v7  ;;  %v1664_v58 = vadd.f32 %v1663_v34, %v1474_v17  ;;  %v1853_v11 = vpop.f32.mrf.mxu1  ;;  %v1950_v17 = vmul.f32 0.5, %v1849_v7 }
 0x28a   : > { %v1665_v9 = vpop.f32.mrf.mxu0 }
 0x28b   : > { %v2238_v63 = vmul.f32 %v2163_v6, %v1938_v5  ;;  %2695 = verf.f32 %v2025_v13  ;;  %v1854_v21 = vadd.f32 %v1853_v11, %v1664_v58  ;;  %v1855_v46 = vpop.f32.mrf.mxu1  ;;  %v1499_v5 = vadd.f32 %v4314_v0, %v4393_v31 }
 0x28c   : > { %v2690_v3 = vpop.eup %2689  ;;  %v1668_v29 = vpop.f32.mrf.mxu0 }
 0x28d   : > { %2313 = vst [vmem:[%s4124_s17 + $0xd0] sm:$0xff] %v2238_v63  ;;  %v2166_v59 = vadd.f32 1.0, %v2690_v3  ;;  %v2028_v32 = vmul.f32 0.70710677, %v1854_v21  ;;  %v1669_v26 = vadd.f32 %v1668_v29, %v1479_v14  ;;  %v1858_v55 = vpop.f32.mrf.mxu1  ;;  %v1953_v9 = vmul.f32 0.5, %v1854_v21 }
 0x28e   : > { %v1670_v49 = vpop.f32.mrf.mxu0  ;;  %v1504_v29 = vadd.f32 %v4328_v33, %v4393_v31 }
 0x28f   : > { %v2241_v28 = vmul.f32 %v2166_v59, %v1941_v56  ;;  %2697 = verf.f32 %v2028_v32  ;;  %v1859_v42 = vadd.f32 %v1858_v55, %v1669_v26  ;;  %v1860_v25 = vpop.f32.mrf.mxu1 }
 0x290   : > { %v2692_v41 = vpop.eup %2691  ;;  %v1673_v61 = vpop.f32.mrf.mxu0  ;;  %v1509_v25 = vadd.f32 %v4340_v18, %v4393_v31 }
 0x291   : > { %2316 = vst [vmem:[%s4124_s17 + $0xe8] sm:$0xff] %v2241_v28  ;;  %v2169_v4 = vadd.f32 1.0, %v2692_v41  ;;  %v2031_v23 = vmul.f32 0.70710677, %v1859_v42  ;;  %v1674_v15 = vadd.f32 %v1673_v61, %v1484_v50  ;;  %v1863_v35 = vpop.f32.mrf.mxu1  ;;  %v1956_v55 = vmul.f32 0.5, %v1859_v42 }
 0x292   : > { %v1675_v54 = vpop.f32.mrf.mxu0 }
 0x293   : > { %v2244_v48 = vmul.f32 %v2169_v4, %v1944_v57  ;;  %2699 = verf.f32 %v2031_v23  ;;  %v1864_v10 = vadd.f32 %v1863_v35, %v1674_v15  ;;  %v1865_v38 = vpop.f32.mrf.mxu1 }
 0x294   : > { %v2694_v30 = vpop.eup %2693  ;;  %v1678_v51 = vpop.f32.mrf.mxu0 }
 0x295   : > { %2319 = vst [vmem:[%s4124_s17 + $0x100] sm:$0xff] %v2244_v48  ;;  %v2172_v36 = vadd.f32 1.0, %v2694_v30  ;;  %v2034_v43 = vmul.f32 0.70710677, %v1864_v10  ;;  %v1679_v37 = vadd.f32 %v1678_v51, %v1489_v22  ;;  %v1868_v24 = vpop.f32.mrf.mxu1  ;;  %v1959_v15 = vmul.f32 0.5, %v1864_v10 }
 0x296   : > { %v1680_v27 = vpop.f32.mrf.mxu0  ;;  %v1514_v30 = vadd.f32 %v4356_v19, %v4393_v31 }
 0x297   : > { %v2247_v20 = vmul.f32 %v2172_v36, %v1947_v1  ;;  %2701 = verf.f32 %v2034_v43  ;;  %v1869_v44 = vadd.f32 %v1868_v24, %v1679_v37  ;;  %v1870_v52 = vpop.f32.mrf.mxu1 }
 0x298   : > { %v2696_v60 = vpop.eup %2695  ;;  %v1683_v47 = vpop.f32.mrf.mxu0 }
 0x299   : > { %2322 = vst [vmem:[%s4124_s17 + $0x118] sm:$0xff] %v2247_v20  ;;  %v2175_v16 = vadd.f32 1.0, %v2696_v60  ;;  %v2037_v8 = vmul.f32 0.70710677, %v1869_v44  ;;  %v1684_v2 = vadd.f32 %v1683_v47, %v1494_v62  ;;  %v1873_v45 = vpop.f32.mrf.mxu1  ;;  %v1962_v43 = vmul.f32 0.5, %v1869_v44 }
 0x29a   : > { %v1685_v34 = vpop.f32.mrf.mxu0  ;;  %v1519_v20 = vadd.f32 %v4370_v40, %v4393_v31 }
 0x29b   : > { %v2250_v6 = vmul.f32 %v2175_v16, %v1950_v17  ;;  %2703 = verf.f32 %v2037_v8  ;;  %v1874_v53 = vadd.f32 %v1873_v45, %v1684_v2  ;;  %v1875_v58 = vpop.f32.mrf.mxu1 }
 0x29c   : > { %v2698_v13 = vpop.eup %2697  ;;  %v1688_v11 = vpop.f32.mrf.mxu0 }
 0x29d   : > { %2325 = vst [vmem:[%s4124_s17 + $0x130] sm:$0xff] %v2250_v6  ;;  %v2178_v14 = vadd.f32 1.0, %v2698_v13  ;;  %v2040_v63 = vmul.f32 0.70710677, %v1874_v53  ;;  %v1689_v7 = vadd.f32 %v1688_v11, %v1499_v5  ;;  %v1878_v3 = vpop.f32.mrf.mxu1  ;;  %v1965_v16 = vmul.f32 0.5, %v1874_v53 }
 0x29e   : > { %v1690_v46 = vpop.f32.mrf.mxu0  ;;  %v1524_v5 = vadd.f32 %v4384_v12, %v4393_v31 }
 0x29f   : > { %v2253_v56 = vmul.f32 %v2178_v14, %v1953_v9  ;;  %2705 = verf.f32 %v2040_v63  ;;  %v1879_v0 = vadd.f32 %v1878_v3, %v1689_v7  ;;  %v1880_v32 = vpop.f32.mrf.mxu1  ;;  %v1529_v46 = vadd.f32 %v4402_v39, %v4393_v31 }
 0x2a0   : > { %v2700_v59 = vpop.eup %2699  ;;  %v1693_v26 = vpop.f32.mrf.mxu0 }
 0x2a1   : > { %2328 = vst [vmem:[%s4124_s17 + $0x148] sm:$0xff] %v2253_v56  ;;  %v2181_v49 = vadd.f32 1.0, %v2700_v59  ;;  %v2043_v50 = vmul.f32 0.70710677, %v1879_v0  ;;  %v1694_v21 = vadd.f32 %v1693_v26, %v1504_v29  ;;  %v1883_v28 = vpop.f32.mrf.mxu1  ;;  %v1968_v9 = vmul.f32 0.5, %v1879_v0 }
 0x2a2   : > { %v1695_v41 = vpop.f32.mrf.mxu0 }
 0x2a3   : > { %v2256_v61 = vmul.f32 %v2181_v49, %v1956_v55  ;;  %2707 = verf.f32 %v2043_v50  ;;  %v1884_v33 = vadd.f32 %v1883_v28, %v1694_v21  ;;  %v1885_v4 = vpop.f32.mrf.mxu1 }
 0x2a4   : > { %v2702_v57 = vpop.eup %2701  ;;  %v1698_v23 = vpop.f32.mrf.mxu0 }
 0x2a5   : > { %2331 = vst [vmem:[%s4124_s17 + $0x160] sm:$0xff] %v2256_v61  ;;  %v2184_v35 = vadd.f32 1.0, %v2702_v57  ;;  %v2046_v54 = vmul.f32 0.70710677, %v1884_v33  ;;  %v1699_v42 = vadd.f32 %v1698_v23, %v1509_v25  ;;  %v1888_v22 = vpop.f32.mrf.mxu1  ;;  %v1971_v26 = vmul.f32 0.5, %v1884_v33 }
 0x2a6   : > { %v1700_v48 = vpop.f32.mrf.mxu0 }
 0x2a7   : > { %v2259_v38 = vmul.f32 %v2184_v35, %v1959_v15  ;;  %2709 = verf.f32 %v2046_v54  ;;  %v1889_v18 = vadd.f32 %v1888_v22, %v1699_v42  ;;  %v1890_v1 = vpop.f32.mrf.mxu1 }
 0x2a8   : > { %v2704_v51 = vpop.eup %2703  ;;  %v1703_v36 = vpop.f32.mrf.mxu0 }
 0x2a9   : > { %2334 = vst [vmem:[%s4124_s17 + $0x178] sm:$0xff] %v2259_v38  ;;  %v2187_v37 = vadd.f32 1.0, %v2704_v51  ;;  %v2049_v24 = vmul.f32 0.70710677, %v1889_v18  ;;  %v1704_v10 = vadd.f32 %v1703_v36, %v1514_v30  ;;  %v1893_v27 = vpop.f32.mrf.mxu1  ;;  %v1974_v25 = vmul.f32 0.5, %v1889_v18 }
 0x2aa   : > { %v1705_v62 = vpop.f32.mrf.mxu0 }
 0x2ab   : > { %v2262_v60 = vmul.f32 %v2187_v37, %v1962_v43  ;;  %2711 = verf.f32 %v2049_v24  ;;  %v1894_v19 = vadd.f32 %v1893_v27, %v1704_v10  ;;  %v1895_v47 = vpop.f32.mrf.mxu1 }
 0x2ac   : > { %v2706_v52 = vpop.eup %2705  ;;  %v1708_v17 = vpop.f32.mrf.mxu0 }
 0x2ad   : > { %2337 = vst [vmem:[%s4124_s17 + $0x190] sm:$0xff] %v2262_v60  ;;  %v2190_v8 = vadd.f32 1.0, %v2706_v52  ;;  %v2052_v2 = vmul.f32 0.70710677, %v1894_v19  ;;  %v1709_v44 = vadd.f32 %v1708_v17, %v1519_v20  ;;  %v1898_v45 = vpop.f32.mrf.mxu1  ;;  %v1977_v23 = vmul.f32 0.5, %v1894_v19 }
 0x2ae   : > { %v1710_v34 = vpop.f32.mrf.mxu0 }
 0x2af   : > { %v2265_v6 = vmul.f32 %v2190_v8, %v1965_v16  ;;  %2713 = verf.f32 %v2052_v2  ;;  %v1899_v40 = vadd.f32 %v1898_v45, %v1709_v44  ;;  %v1900_v58 = vpop.f32.mrf.mxu1 }
 0x2b0   : > { %v2708_v13 = vpop.eup %2707  ;;  %v1713_v11 = vpop.f32.mrf.mxu0 }
 0x2b1   : > { %2340 = vst [vmem:[%s4124_s17 + $0x1a8] sm:$0xff] %v2265_v6  ;;  %v2193_v14 = vadd.f32 1.0, %v2708_v13  ;;  %v2055_v63 = vmul.f32 0.70710677, %v1899_v40  ;;  %v1714_v53 = vadd.f32 %v1713_v11, %v1524_v5  ;;  %v1903_v7 = vpop.f32.mrf.mxu1  ;;  %v1980_v42 = vmul.f32 0.5, %v1899_v40 }
 0x2b2   : > { %v1715_v3 = vpop.f32.mrf.mxu0 }
 0x2b3   : > { %v2268_v29 = vmul.f32 %v2193_v14, %v1968_v9  ;;  %2715 = verf.f32 %v2055_v63  ;;  %v1904_v12 = vadd.f32 %v1903_v7, %v1714_v53  ;;  %v1905_v59 = vpop.f32.mrf.mxu1 }
 0x2b4   : > { %v2710_v56 = vpop.eup %2709  ;;  %v1718_v32 = vpop.f32.mrf.mxu0 }
 0x2b5   : > { %2343 = vst [vmem:[%s4124_s17 + $0x1c0] sm:$0xff] %v2268_v29  ;;  %v2196_v55 = vadd.f32 1.0, %v2710_v56  ;;  %v2058_v49 = vmul.f32 0.70710677, %v1904_v12  ;;  %v1719_v0 = vadd.f32 %v1718_v32, %v1529_v46  ;;  %v1908_v50 = vpop.f32.mrf.mxu1  ;;  %v1983_v38 = vmul.f32 0.5, %v1904_v12 }
 0x2b6   : > { %v1720_v21 = vpop.f32.mrf.mxu0 }
 0x2b7   : > { %v2271_v28 = vmul.f32 %v2196_v55, %v1971_v26  ;;  %2717 = verf.f32 %v2058_v49  ;;  %v1909_v41 = vadd.f32 %v1908_v50, %v1719_v0  ;;  %v1910_v39 = vpop.f32.mrf.mxu1 }
 0x2b8   : > { %v2712_v31 = vpop.eup %2711 }
 0x2b9   : > { %2346 = vst [vmem:[%s4124_s17 + $0x1d8] sm:$0xff] %v2271_v28  ;;  %v2199_v61 = vadd.f32 1.0, %v2712_v31  ;;  %v2061_v57 = vmul.f32 0.70710677, %v1909_v41  ;;  %v1986_v36 = vmul.f32 0.5, %v1909_v41 }
 0x2bb   : > { %v2274_v4 = vmul.f32 %v2199_v61, %v1974_v25  ;;  %2719 = verf.f32 %v2061_v57 }
 0x2bc   : > { %v2714_v33 = vpop.eup %2713 }
 0x2bd   : > { %2349 = vst [vmem:[%s4124_s17 + $0x1f0] sm:$0xff] %v2274_v4  ;;  %v2202_v15 = vadd.f32 1.0, %v2714_v33 }
 0x2bf   : > { %v2277_v35 = vmul.f32 %v2202_v15, %v1977_v23 }
 0x2c0   : > { %v2716_v54 = vpop.eup %2715 }
 0x2c1   : > { %2352 = vst [vmem:[%s4124_s17 + $0x208] sm:$0xff] %v2277_v35  ;;  %v2205_v22 = vadd.f32 1.0, %v2716_v54 }
 0x2c3   : > { %v2280_v48 = vmul.f32 %v2205_v22, %v1980_v42 }
 0x2c4   : > { %v2718_v30 = vpop.eup %2717 }
 0x2c5   : > { %2355 = vst [vmem:[%s4124_s17 + $0x220] sm:$0xff] %v2280_v48  ;;  %v2208_v18 = vadd.f32 1.0, %v2718_v30 }
 0x2c7   : > { %v2283_v51 = vmul.f32 %v2208_v18, %v1983_v38 }
 0x2c8   : > { %v2720_v1 = vpop.eup %2719 }
 0x2c9   : > { %2358 = vst [vmem:[%s4124_s17 + $0x238] sm:$0xff] %v2283_v51  ;;  %v2211_v43 = vadd.f32 1.0, %v2720_v1 }
 0x2cb   : > { %v2286_v37 = vmul.f32 %v2211_v43, %v1986_v36 }
 0x2cd   : > { %2361 = vst [vmem:[%s4124_s17 + $0x250] sm:$0xf] %v2286_v37 }
 0x2ce   : > { %2867 = shalt.err (!%p2864_p9)
}
 0x2cf   : > { %s2868_s8 = scalar_lea.hbm %s4520_s10, 9600  ;;  %s2872_s23 = scalar_lea.hbm %s4568_s3, 76800 }
 0x2d0   : > { %p2869_p7 = scmp.ne.s32.totalorder %s4520_s10, %s2868_s8  ;;  %p2873_p11 = scmp.lt.s32.totalorder %s4520_s10, %s4568_s3 }
 0x2d1   : > { %p2874_p3 = scmp.lt.s32.totalorder %s2872_s23, %s2868_s8 }
 0x2d2   : > { %p2870_p4 = pnand %p2869_p7, %p4643_p8 }
 0x2d3   : > { %p2875_p5 = por %p2874_p3, %p2873_p11 }
 0x2d4   : > { %p2871_p12 = pneg %p2870_p4 }
 0x2d6   : > { %p2876_p2 = pnand %p2875_p5, %p2871_p12 }
 0x2d8   : > { %2879 = shalt.err (!%p2876_p2)
}
 0x2d9   : > { %s2934_s30 = smov 384   ;;  %s2935_s28 = smov 3072  }
 0x2da   : > { %s2936_s4 = smov 24  }
 0x2db   : > { %2508 = dma.vmem_to_hbm [thread:$0]  (%p4643_p8), %s4522_s26, 9600, %s4520_s10, %s2363_s11, %s2934_s30, %s2935_s28, %s2936_s4  }
 0x2dc PF: > { %p2528_p13 = scmp.ge.s32.totalorder %s2922_s15, 2  ;;  %s2391_s17 = sand.u32 1, %s2910_s12  }
 0x2dd   : > { %p4644_p1 = scmp.ne.s32.totalorder %s4589_s29, 0  ;;  %s2392_s24 = scalar_lea.sflag [#allocation4], %s2391_s17 }
 0x2df   : > { %p2522_p6 = pnand %p2528_p13, %p4644_p1 }
 0x2e1   : > { %p2523_p0 = pneg %p2522_p6 }
 0x2e3   : > { %2905 = dma.done.wait (%p2523_p0), %s2392_s24, 9600  }
 0x2e4   : > { %2907 = vsyncadd (%p2523_p0), %s2392_s24, 4294957696  ;;  %s4645_s5 = sld [smem:[#allocation12_spill]]  ;;  %p17_p10 = scmp.ge.s32.totalorder %s2978_s16, 10  }
 0x2e5   : > { %s4646_s12 = smov %s2914_s13  ;;  %s4647_s13 = smov %s2918_s14 }
 0x2e6   : > { %s4649_s15 = smov %s2978_s16  ;;  %19 = sbr.rel (!%p17_p10) target bundleno = 8 (0x8), region = 93 }
 0x2ea   : > { %s4648_s14 = smov %s4645_s5 }
 0x2eb   :  { %2397 = vsyncpa [#allocation3], 1 }
 0x2ec   :  { %2399 = vsyncpa [#allocation3 + $0x1], 1 }
 0x2ed   :  { %2400 = vsyncpa [#allocation6], 1 }
 0x2ee   :  { %2402 = vsyncpa [#allocation6 + $0x1], 1 }
 0x2ef   :  { %2403 = vsyncpa [#allocation4], 1 }
 0x2f0   :  { %2405 = vsyncpa [#allocation4 + $0x1], 1 }

</bundles_post_ra>
